<compile_context>
chip_gen: v7x
topology: tpu7x:2x2x1
jax: 0.10.0
libtpu: 0.0.40
codegen_flags: <defaults>
</compile_context>

<pallas_src>
import jax
import jax.numpy as jnp
from jax.experimental import pallas as pl
from jax.experimental.pallas import tpu as pltpu


def xdeepfm_kernel(z9_ref, h0_ref, fo_ref,
                   w1_ref, b1_ref, w2_ref, b2_ref, wc1_ref, wc2_ref,
                   out_ref):
    """CIN (2 layers) + output projection, transposed layout (samples in lanes).

    z9_ref : (9, tn*D)         bf16  pairwise field products, row c = h*3 + m
    h0_ref : (3, tn*D)         f32   field vectors (layer-2 scaling rows)
    fo_ref : (1, tn)           f32   first-order + deep-MLP + bias logits
    w1_ref : (s_pad, 9)        bf16  w1[c, o] transposed
    b1_ref : (s_pad, 1)        f32
    w2_ref : (3, s_pad, s_pad) bf16  w2t[m][o, h] = w2[h*3+m, o]
    b2_ref : (s_pad, 1)        f32
    wc1/wc2: (1, s_pad)        bf16  output rows for the two CIN states
    out_ref: (1, tn)           f32   sigmoid ratings (lane-dense)
    """
    F = h0_ref.shape[0]
    tnd = z9_ref.shape[1]
    tn = out_ref.shape[1]
    D = tnd // tn

    # ---- CIN layer 1: one K=9 matmul (products precomputed in the wrapper) ---
    h1 = jnp.tanh(
        jnp.dot(w1_ref[...], z9_ref[...], preferred_element_type=jnp.float32)
        + b1_ref[...])                                     # (s_pad, tn*D) f32

    # ---- CIN layer 2: F matmuls; field scale is a cheap row broadcast --------
    h0 = h0_ref[...]                                       # (F, tn*D) f32
    acc = None
    for m in range(F):                                     # F = 3, static unroll
        scaled = (h1 * h0[m:m + 1, :]).astype(jnp.bfloat16)
        term = jnp.dot(w2_ref[m], scaled, preferred_element_type=jnp.float32)
        acc = term if acc is None else acc + term
    h2 = jnp.tanh(acc + b2_ref[...])                       # (s_pad, tn*D) f32

    # ---- sum over embedding dim D: aligned lane-slice adds (cols d-major) ----
    h1s = h1[:, 0:tn]
    h2s = h2[:, 0:tn]
    for d in range(1, D):
        h1s = h1s + h1[:, d * tn:(d + 1) * tn]
        h2s = h2s + h2[:, d * tn:(d + 1) * tn]             # (s_pad, tn)

    # ---- output layer: lane-dense (1, tn) logits row --------------------------
    cin = (jnp.dot(wc1_ref[...], h1s.astype(jnp.bfloat16),
                   preferred_element_type=jnp.float32)
           + jnp.dot(wc2_ref[...], h2s.astype(jnp.bfloat16),
                     preferred_element_type=jnp.float32))
    out_ref[...] = jax.nn.sigmoid(cin + fo_ref[...])


def _round_up(x, m):
    return ((x + m - 1) // m) * m


def _vmem_bytes(tn, D, s_pad):
    """Per-tile working-set estimate (f32 state + bf16 temps + 2x input blocks)."""
    tnd = tn * D
    live = tnd * s_pad * (3 * 4 + 2 * 2)                   # h1/h2/acc f32 + bf16 temps
    dbuf = 2 * (tnd * 16 * 2 + tnd * 8 * 4 + tn * 4) + 2 * tn * 4
    wts = s_pad * (16 * 2 + 4 + 4) + 3 * s_pad * s_pad * 2 + 2 * s_pad * 2
    return live + dbuf + wts


def xdeepfm_pallas(emb, first, params, tn=512, s_pad=128):
    """emb: (N, F, D) gathered embeddings; first: (N, F) first-order embeddings.

    Returns sigmoid ratings of shape (N, 1).
    """
    N, F, D = emb.shape
    S = params['b1'].shape[1]                               # 100
    FD = F * D
    assert tn % 128 == 0 and s_pad % 128 == 0 and s_pad >= S

    # ---- tile-size selection ---------------------------------------------------
    tn = max(128, min(tn, _round_up(N, 128)))               # don't pay for padding
    while _vmem_bytes(tn, D, s_pad) > (40 << 20) and tn > 128:
        tn = max(128, (tn // 2) // 128 * 128)               # v7x: stay << 64 MiB
    n_pad = _round_up(N, tn)
    # v7x has 2 TensorCores: prefer >= 2 grid steps so "parallel" shards them.
    while n_pad // tn < 2 and tn > 128:
        tn = max(128, (tn // 2) // 128 * 128)
        n_pad = _round_up(N, tn)
    g = n_pad // tn

    # ---- wrapper-side layout plumbing (keep relayouts out of the kernel) -------
    emb32 = emb.astype(jnp.float32)
    emb_p = jnp.pad(emb32, ((0, n_pad - N), (0, 0), (0, 0)))
    # Transposed CIN field table: rows = fields, cols ordered (tile, d, sample).
    h0t = jnp.transpose(emb_p, (1, 2, 0)).reshape(F, D, g, tn)
    h0t = jnp.transpose(h0t, (0, 2, 1, 3)).reshape(F, n_pad * D)
    # Layer-1 LHS: 9 pairwise products, row c = h*F + m (torch flatten order).
    z9 = (h0t[:, None, :] * h0t[None, :, :]).reshape(F * F, n_pad * D)
    z9 = z9.astype(jnp.bfloat16)

    # Deep MLP (tiny, lane-sparse) + first-order + output bias: computed in XLA
    # and folded into a single lane-dense logits row `fo`.
    # TODO(synk): nn.Dropout(0.2) in deep_projection_layers is training-only
    # noise; treated as identity (eval semantics).
    ef = emb32.reshape(N, FD)
    d1 = jnp.tanh(ef @ params['wd1'] + params['bd1'])
    d2 = jnp.tanh(d1 @ params['wd2'] + params['bd2'])
    fo = (first.astype(jnp.float32) @ params['wo_first']
          + d2 @ params['wo_deep'] + params['bo'][0, 0])    # (N, 1)
    fo = jnp.pad(fo[:, 0], (0, n_pad - N)).reshape(1, n_pad)

    # ---- weight prep: transposed CIN layout, zero-pad S -> s_pad, bf16 cast ----
    pc = s_pad - S
    w1t = jnp.pad(params['w1'].T, ((0, pc), (0, 0))).astype(jnp.bfloat16)  # (sp,9)
    b1t = jnp.pad(params['b1'].reshape(S, 1), ((0, pc), (0, 0)))           # (sp,1)
    w2r = params['w2'].reshape(S, F, S)                     # [h, m, o]
    w2t = jnp.transpose(w2r, (1, 2, 0))                     # [m, o, h]
    w2t = jnp.pad(w2t, ((0, 0), (0, pc), (0, pc))).astype(jnp.bfloat16)
    b2t = jnp.pad(params['b2'].reshape(S, 1), ((0, pc), (0, 0)))
    wc1 = jnp.pad(params['wo_cin'][:S, 0], (0, pc)).reshape(1, s_pad).astype(jnp.bfloat16)
    wc2 = jnp.pad(params['wo_cin'][S:, 0], (0, pc)).reshape(1, s_pad).astype(jnp.bfloat16)

    weights = [w1t, b1t, w2t, b2t, wc1, wc2]

    def full_spec(a):
        nd = a.ndim
        return pl.BlockSpec(a.shape, lambda i, nd=nd: (0,) * nd)

    in_specs = ([pl.BlockSpec((F * F, tn * D), lambda i: (0, i)),
                 pl.BlockSpec((F, tn * D), lambda i: (0, i)),
                 pl.BlockSpec((1, tn), lambda i: (0, i))]
                + [full_spec(w) for w in weights])
    out_specs = pl.BlockSpec((1, tn), lambda i: (0, i))

    cp = dict(dimension_semantics=("parallel",))
    est = _vmem_bytes(tn, D, s_pad)
    if est > (24 << 20):
        # Headroom over the estimate, but capped <= 48 MiB (safe on v7x).
        cp["vmem_limit_bytes"] = min(_round_up(est * 5 // 4, 1 << 20), 48 << 20)

    out = pl.pallas_call(
        xdeepfm_kernel,
        out_shape=jax.ShapeDtypeStruct((1, n_pad), jnp.float32),
        grid=(g,),
        in_specs=in_specs,
        out_specs=out_specs,
        compiler_params=pltpu.CompilerParams(**cp),
    )(z9, h0t, fo, *weights)
    return out[0, :N].reshape(N, 1)


# ------------------------- glue: params, gather, reference --------------------
def xavier_normal(key, shape):
    fan_out, fan_in = shape[0], shape[1]
    std = (2.0 / (fan_in + fan_out)) ** 0.5
    return std * jax.random.normal(key, shape, dtype=jnp.float32)


def reference(emb, first, p):
    """Pure-JAX (f32, HIGHEST) re-implementation of xDeepFM.forward."""
    N, F, D = emb.shape
    layers = [emb]
    for w, b in ((p['w1'], p['b1']), (p['w2'], p['b2'])):
        z = jnp.einsum('bhd,bmd->bhmd', layers[-1], layers[0],
                       precision=jax.lax.Precision.HIGHEST)
        z = z.reshape(N, -1, D)
        x = jnp.einsum('bcd,co->bod', z, w,
                       precision=jax.lax.Precision.HIGHEST) + b.reshape(1, -1, 1)
        layers.append(jnp.tanh(x))
    result = jnp.sum(jnp.concatenate(layers[1:], axis=1), axis=-1)
    emb_flat = emb.reshape(N, F * D)
    d1 = jnp.tanh(emb_flat @ p['wd1'] + p['bd1'])
    d2 = jnp.tanh(d1 @ p['wd2'] + p['bd2'])
    logits = (first @ p['wo_first'] + result @ p['wo_cin']
              + d2 @ p['wo_deep'] + p['bo'])
    return jax.nn.sigmoid(logits)


if __name__ == "__main__":
    key = jax.random.PRNGKey(0)
    ks = jax.random.split(key, 20)

    # small, module-consistent sizes
    batch, dim = 2, 8
    user_num, cate1_num, item_num = 10, 7, 16     # Brand / Cate1 / Region cards
    F = 3
    feat_dim = F * dim                            # 24
    size = 100                                    # CIN layer size (hardcoded)

    # embedding tables (nn.Embedding, xavier_normal_)
    brand_tab = xavier_normal(ks[0], (user_num, dim))
    cate_tab = xavier_normal(ks[1], (cate1_num, dim))
    region_tab = xavier_normal(ks[2], (item_num, dim))
    brand_fo = xavier_normal(ks[3], (user_num, 1))
    cate_fo = xavier_normal(ks[4], (cate1_num, 1))
    region_fo = xavier_normal(ks[5], (item_num, 1))

    # CIN conv1d(kernel=1) weights: torch shape (out, in, 1) -> stored (in, out)
    params = {
        'w1': xavier_normal(ks[6], (size, F * F)).T,
        'b1': (0.01 * jax.random.normal(ks[7], (1, size))).astype(jnp.float32),
        'w2': xavier_normal(ks[8], (size, size * F)).T,
        'b2': (0.01 * jax.random.normal(ks[9], (1, size))).astype(jnp.float32),
        # deep projection Linear(feat_dim, feat_dim): torch (out,in) -> (in,out)
        'wd1': xavier_normal(ks[10], (feat_dim, feat_dim)).T,
        'bd1': (0.01 * jax.random.normal(ks[11], (1, feat_dim))).astype(jnp.float32),
        'wd2': xavier_normal(ks[12], (feat_dim, feat_dim)).T,
        'bd2': (0.01 * jax.random.normal(ks[13], (1, feat_dim))).astype(jnp.float32),
    }
    # output Linear(field_dim + 2*size + feat_dim, 1), split by concat segments
    wo_full = xavier_normal(ks[14], (1, F + 2 * size + feat_dim)).T   # (227, 1)
    params['wo_first'] = wo_full[:F]
    params['wo_cin'] = wo_full[F:F + 2 * size]
    params['wo_deep'] = wo_full[F + 2 * size:]
    params['bo'] = (0.01 * jax.random.normal(ks[15], (1, 1))).astype(jnp.float32)

    # ---- generate_batch + embedding lookups (plain-JAX glue) ----
    brand_ids = jax.random.randint(ks[16], (batch,), 0, user_num)
    cate_ids = jax.random.randint(ks[17], (batch,), 0, cate1_num)
    brand_flat = jnp.repeat(brand_ids, item_num)              # (N,)
    cate_flat = jnp.repeat(cate_ids, item_num)                # (N,)
    region_flat = jnp.tile(jnp.arange(item_num), batch)       # (N,)

    emb = jnp.stack([brand_tab[brand_flat],
                     cate_tab[cate_flat],
                     region_tab[region_flat]], axis=1)        # (N, 3, D)
    first = jnp.concatenate([brand_fo[brand_flat],
                             cate_fo[cate_flat],
                             region_fo[region_flat]], axis=1)  # (N, 3)

    out = xdeepfm_pallas(emb, first, params)                  # (N, 1)
    out = jax.block_until_ready(out)
    ratings = out.reshape(batch, item_num)                    # (batch, num_items)

    ref = reference(emb, first, params).reshape(batch, item_num)
    assert ratings.shape == (batch, item_num)
    # bf16 MXU operands -> compare to the f32 HIGHEST reference with a
    # correspondingly looser (but still tight for sigmoid outputs) tolerance.
    assert jnp.allclose(ratings, ref, atol=2e-2), "mismatch vs JAX reference"
    print("KERNEL_OK")
</pallas_src>

<mosaic_0001>
module attributes {stable_mosaic.version = 11 : i64} {
  func.func @xdeepfm_kernel(%arg0: i32, %arg1: memref<9x1024xbf16, #tpu.memory_space<vmem>>, %arg2: memref<3x1024xf32, #tpu.memory_space<vmem>>, %arg3: memref<1x128xf32, #tpu.memory_space<vmem>>, %arg4: memref<128x9xbf16, #tpu.memory_space<vmem>>, %arg5: memref<128x1xf32, #tpu.memory_space<vmem>>, %arg6: memref<3x128x128xbf16, #tpu.memory_space<vmem>>, %arg7: memref<128x1xf32, #tpu.memory_space<vmem>>, %arg8: memref<1x128xbf16, #tpu.memory_space<vmem>>, %arg9: memref<1x128xbf16, #tpu.memory_space<vmem>>, %arg10: memref<1x128xf32, #tpu.memory_space<vmem>>) attributes {dimension_semantics = [#tpu.dimension_semantics<parallel>], iteration_bounds = array<i64: 1>, scalar_prefetch = 0 : i64, scratch_operands = 0 : i64, tpu.core_type = #tpu.core_type<tc>, window_params = [{transform_indices = @transform_0, window_bounds = array<i64: 9, 1024>}, {transform_indices = @transform_1, window_bounds = array<i64: 3, 1024>}, {transform_indices = @transform_2, window_bounds = array<i64: 1, 128>}, {pipeline_mode = #tpu.pipeline_mode<synchronous>, transform_indices = @transform_3, window_bounds = array<i64: 128, 9>}, {pipeline_mode = #tpu.pipeline_mode<synchronous>, transform_indices = @transform_4, window_bounds = array<i64: 128, 1>}, {pipeline_mode = #tpu.pipeline_mode<synchronous>, transform_indices = @transform_5, window_bounds = array<i64: 3, 128, 128>}, {pipeline_mode = #tpu.pipeline_mode<synchronous>, transform_indices = @transform_6, window_bounds = array<i64: 128, 1>}, {pipeline_mode = #tpu.pipeline_mode<synchronous>, transform_indices = @transform_7, window_bounds = array<i64: 1, 128>}, {pipeline_mode = #tpu.pipeline_mode<synchronous>, transform_indices = @transform_8, window_bounds = array<i64: 1, 128>}, {transform_indices = @transform_9, window_bounds = array<i64: 1, 128>}]} {
    %c0 = arith.constant 0 : index
    %c0_0 = arith.constant 0 : index
    %0 = vector.load %arg4[%c0, %c0_0] : memref<128x9xbf16, #tpu.memory_space<vmem>>, vector<128x9xbf16>
    %c0_1 = arith.constant 0 : index
    %c0_2 = arith.constant 0 : index
    %1 = vector.load %arg1[%c0_1, %c0_2] : memref<9x1024xbf16, #tpu.memory_space<vmem>>, vector<9x1024xbf16>
    %cst = arith.constant dense<0.000000e+00> : vector<128x1024xf32>
    %2 = tpu.matmul %0, %1, %cst {dimension_numbers = #tpu.dot_dimension_numbers<[1], [0], [0], [1], [0, 0, 1, 1], [], []>} : vector<128x9xbf16>, vector<9x1024xbf16>, vector<128x1024xf32> -> vector<128x1024xf32>
    %c0_3 = arith.constant 0 : index
    %c0_4 = arith.constant 0 : index
    %3 = vector.load %arg5[%c0_3, %c0_4] : memref<128x1xf32, #tpu.memory_space<vmem>>, vector<128x1xf32>
    %4 = vector.broadcast %3 : vector<128x1xf32> to vector<128x1024xf32>
    %5 = arith.addf %2, %4 : vector<128x1024xf32>
    %6 = math.tanh %5 : vector<128x1024xf32>
    %c0_5 = arith.constant 0 : index
    %c0_6 = arith.constant 0 : index
    %7 = vector.load %arg2[%c0_5, %c0_6] : memref<3x1024xf32, #tpu.memory_space<vmem>>, vector<3x1024xf32>
    %8 = vector.extract_strided_slice %7 {offsets = [0, 0], sizes = [1, 1024], strides = [1, 1]} : vector<3x1024xf32> to vector<1x1024xf32>
    %9 = vector.broadcast %8 : vector<1x1024xf32> to vector<128x1024xf32>
    %10 = arith.mulf %6, %9 : vector<128x1024xf32>
    %11 = arith.truncf %10 : vector<128x1024xf32> to vector<128x1024xbf16>
    %c0_7 = arith.constant 0 : index
    %c0_8 = arith.constant 0 : index
    %c0_9 = arith.constant 0 : index
    %12 = vector.load %arg6[%c0_7, %c0_8, %c0_9] : memref<3x128x128xbf16, #tpu.memory_space<vmem>>, vector<1x128x128xbf16>
    %13 = vector.shape_cast %12 : vector<1x128x128xbf16> to vector<128x128xbf16>
    %cst_10 = arith.constant dense<0.000000e+00> : vector<128x1024xf32>
    %14 = tpu.matmul %13, %11, %cst_10 {dimension_numbers = #tpu.dot_dimension_numbers<[1], [0], [0], [1], [0, 0, 1, 1], [], []>} : vector<128x128xbf16>, vector<128x1024xbf16>, vector<128x1024xf32> -> vector<128x1024xf32>
    %15 = vector.extract_strided_slice %7 {offsets = [1, 0], sizes = [1, 1024], strides = [1, 1]} : vector<3x1024xf32> to vector<1x1024xf32>
    %16 = vector.broadcast %15 : vector<1x1024xf32> to vector<128x1024xf32>
    %17 = arith.mulf %6, %16 : vector<128x1024xf32>
    %18 = arith.truncf %17 : vector<128x1024xf32> to vector<128x1024xbf16>
    %c1 = arith.constant 1 : index
    %c0_11 = arith.constant 0 : index
    %c0_12 = arith.constant 0 : index
    %19 = vector.load %arg6[%c1, %c0_11, %c0_12] : memref<3x128x128xbf16, #tpu.memory_space<vmem>>, vector<1x128x128xbf16>
    %20 = vector.shape_cast %19 : vector<1x128x128xbf16> to vector<128x128xbf16>
    %cst_13 = arith.constant dense<0.000000e+00> : vector<128x1024xf32>
    %21 = tpu.matmul %20, %18, %cst_13 {dimension_numbers = #tpu.dot_dimension_numbers<[1], [0], [0], [1], [0, 0, 1, 1], [], []>} : vector<128x128xbf16>, vector<128x1024xbf16>, vector<128x1024xf32> -> vector<128x1024xf32>
    %22 = arith.addf %14, %21 : vector<128x1024xf32>
    %23 = vector.extract_strided_slice %7 {offsets = [2, 0], sizes = [1, 1024], strides = [1, 1]} : vector<3x1024xf32> to vector<1x1024xf32>
    %24 = vector.broadcast %23 : vector<1x1024xf32> to vector<128x1024xf32>
    %25 = arith.mulf %6, %24 : vector<128x1024xf32>
    %26 = arith.truncf %25 : vector<128x1024xf32> to vector<128x1024xbf16>
    %c2 = arith.constant 2 : index
    %c0_14 = arith.constant 0 : index
    %c0_15 = arith.constant 0 : index
    %27 = vector.load %arg6[%c2, %c0_14, %c0_15] : memref<3x128x128xbf16, #tpu.memory_space<vmem>>, vector<1x128x128xbf16>
    %28 = vector.shape_cast %27 : vector<1x128x128xbf16> to vector<128x128xbf16>
    %cst_16 = arith.constant dense<0.000000e+00> : vector<128x1024xf32>
    %29 = tpu.matmul %28, %26, %cst_16 {dimension_numbers = #tpu.dot_dimension_numbers<[1], [0], [0], [1], [0, 0, 1, 1], [], []>} : vector<128x128xbf16>, vector<128x1024xbf16>, vector<128x1024xf32> -> vector<128x1024xf32>
    %30 = arith.addf %22, %29 : vector<128x1024xf32>
    %c0_17 = arith.constant 0 : index
    %c0_18 = arith.constant 0 : index
    %31 = vector.load %arg7[%c0_17, %c0_18] : memref<128x1xf32, #tpu.memory_space<vmem>>, vector<128x1xf32>
    %32 = vector.broadcast %31 : vector<128x1xf32> to vector<128x1024xf32>
    %33 = arith.addf %30, %32 : vector<128x1024xf32>
    %34 = math.tanh %33 : vector<128x1024xf32>
    %35 = vector.extract_strided_slice %6 {offsets = [0, 0], sizes = [128, 128], strides = [1, 1]} : vector<128x1024xf32> to vector<128x128xf32>
    %36 = vector.extract_strided_slice %34 {offsets = [0, 0], sizes = [128, 128], strides = [1, 1]} : vector<128x1024xf32> to vector<128x128xf32>
    %37 = vector.extract_strided_slice %6 {offsets = [0, 128], sizes = [128, 128], strides = [1, 1]} : vector<128x1024xf32> to vector<128x128xf32>
    %38 = arith.addf %35, %37 : vector<128x128xf32>
    %39 = vector.extract_strided_slice %34 {offsets = [0, 128], sizes = [128, 128], strides = [1, 1]} : vector<128x1024xf32> to vector<128x128xf32>
    %40 = arith.addf %36, %39 : vector<128x128xf32>
    %41 = vector.extract_strided_slice %6 {offsets = [0, 256], sizes = [128, 128], strides = [1, 1]} : vector<128x1024xf32> to vector<128x128xf32>
    %42 = arith.addf %38, %41 : vector<128x128xf32>
    %43 = vector.extract_strided_slice %34 {offsets = [0, 256], sizes = [128, 128], strides = [1, 1]} : vector<128x1024xf32> to vector<128x128xf32>
    %44 = arith.addf %40, %43 : vector<128x128xf32>
    %45 = vector.extract_strided_slice %6 {offsets = [0, 384], sizes = [128, 128], strides = [1, 1]} : vector<128x1024xf32> to vector<128x128xf32>
    %46 = arith.addf %42, %45 : vector<128x128xf32>
    %47 = vector.extract_strided_slice %34 {offsets = [0, 384], sizes = [128, 128], strides = [1, 1]} : vector<128x1024xf32> to vector<128x128xf32>
    %48 = arith.addf %44, %47 : vector<128x128xf32>
    %49 = vector.extract_strided_slice %6 {offsets = [0, 512], sizes = [128, 128], strides = [1, 1]} : vector<128x1024xf32> to vector<128x128xf32>
    %50 = arith.addf %46, %49 : vector<128x128xf32>
    %51 = vector.extract_strided_slice %34 {offsets = [0, 512], sizes = [128, 128], strides = [1, 1]} : vector<128x1024xf32> to vector<128x128xf32>
    %52 = arith.addf %48, %51 : vector<128x128xf32>
    %53 = vector.extract_strided_slice %6 {offsets = [0, 640], sizes = [128, 128], strides = [1, 1]} : vector<128x1024xf32> to vector<128x128xf32>
    %54 = arith.addf %50, %53 : vector<128x128xf32>
    %55 = vector.extract_strided_slice %34 {offsets = [0, 640], sizes = [128, 128], strides = [1, 1]} : vector<128x1024xf32> to vector<128x128xf32>
    %56 = arith.addf %52, %55 : vector<128x128xf32>
    %57 = vector.extract_strided_slice %6 {offsets = [0, 768], sizes = [128, 128], strides = [1, 1]} : vector<128x1024xf32> to vector<128x128xf32>
    %58 = arith.addf %54, %57 : vector<128x128xf32>
    %59 = vector.extract_strided_slice %34 {offsets = [0, 768], sizes = [128, 128], strides = [1, 1]} : vector<128x1024xf32> to vector<128x128xf32>
    %60 = arith.addf %56, %59 : vector<128x128xf32>
    %61 = vector.extract_strided_slice %6 {offsets = [0, 896], sizes = [128, 128], strides = [1, 1]} : vector<128x1024xf32> to vector<128x128xf32>
    %62 = arith.addf %58, %61 : vector<128x128xf32>
    %63 = vector.extract_strided_slice %34 {offsets = [0, 896], sizes = [128, 128], strides = [1, 1]} : vector<128x1024xf32> to vector<128x128xf32>
    %64 = arith.addf %60, %63 : vector<128x128xf32>
    %c0_19 = arith.constant 0 : index
    %c0_20 = arith.constant 0 : index
    %65 = vector.load %arg8[%c0_19, %c0_20] : memref<1x128xbf16, #tpu.memory_space<vmem>>, vector<1x128xbf16>
    %66 = arith.truncf %62 : vector<128x128xf32> to vector<128x128xbf16>
    %cst_21 = arith.constant dense<0.000000e+00> : vector<1x128xf32>
    %67 = tpu.matmul %65, %66, %cst_21 {dimension_numbers = #tpu.dot_dimension_numbers<[1], [0], [0], [1], [0, 0, 1, 1], [], []>} : vector<1x128xbf16>, vector<128x128xbf16>, vector<1x128xf32> -> vector<1x128xf32>
    %c0_22 = arith.constant 0 : index
    %c0_23 = arith.constant 0 : index
    %68 = vector.load %arg9[%c0_22, %c0_23] : memref<1x128xbf16, #tpu.memory_space<vmem>>, vector<1x128xbf16>
    %69 = arith.truncf %64 : vector<128x128xf32> to vector<128x128xbf16>
    %cst_24 = arith.constant dense<0.000000e+00> : vector<1x128xf32>
    %70 = tpu.matmul %68, %69, %cst_24 {dimension_numbers = #tpu.dot_dimension_numbers<[1], [0], [0], [1], [0, 0, 1, 1], [], []>} : vector<1x128xbf16>, vector<128x128xbf16>, vector<1x128xf32> -> vector<1x128xf32>
    %71 = arith.addf %67, %70 : vector<1x128xf32>
    %c0_25 = arith.constant 0 : index
    %c0_26 = arith.constant 0 : index
    %72 = vector.load %arg3[%c0_25, %c0_26] : memref<1x128xf32, #tpu.memory_space<vmem>>, vector<1x128xf32>
    %73 = arith.addf %71, %72 : vector<1x128xf32>
    %74 = arith.negf %73 : vector<1x128xf32>
    %75 = math.exp %74 : vector<1x128xf32>
    %cst_27 = arith.constant 1.000000e+00 : f32
    %76 = vector.broadcast %cst_27 : f32 to vector<1x128xf32>
    %77 = arith.addf %76, %75 : vector<1x128xf32>
    %78 = arith.divf %76, %77 : vector<1x128xf32>
    %c0_28 = arith.constant 0 : index
    %c0_29 = arith.constant 0 : index
    %79 = vector.load %arg10[%c0_28, %c0_29] : memref<1x128xf32, #tpu.memory_space<vmem>>, vector<1x128xf32>
    tpu.vector_store %arg10[%c0_28, %c0_29], %78 {strides = array<i32>} : memref<1x128xf32, #tpu.memory_space<vmem>>, vector<1x128xf32>,
    return
  }
  func.func @transform_0(%arg0: i32) -> (i32, i32) {
    %c0_i32 = arith.constant 0 : i32
    %c0_i32_0 = arith.constant 0 : i32
    return %c0_i32, %arg0 : i32, i32
  }
  func.func @transform_1(%arg0: i32) -> (i32, i32) {
    %c0_i32 = arith.constant 0 : i32
    %c0_i32_0 = arith.constant 0 : i32
    return %c0_i32, %arg0 : i32, i32
  }
  func.func @transform_2(%arg0: i32) -> (i32, i32) {
    %c0_i32 = arith.constant 0 : i32
    %c0_i32_0 = arith.constant 0 : i32
    return %c0_i32, %arg0 : i32, i32
  }
  func.func @transform_3(%arg0: i32) -> (i32, i32) {
    %c0_i32 = arith.constant 0 : i32
    %c0_i32_0 = arith.constant 0 : i32
    %c0_i32_1 = arith.constant 0 : i32
    return %c0_i32, %c0_i32_0 : i32, i32
  }
  func.func @transform_4(%arg0: i32) -> (i32, i32) {
    %c0_i32 = arith.constant 0 : i32
    %c0_i32_0 = arith.constant 0 : i32
    %c0_i32_1 = arith.constant 0 : i32
    return %c0_i32, %c0_i32_0 : i32, i32
  }
  func.func @transform_5(%arg0: i32) -> (i32, i32, i32) {
    %c0_i32 = arith.constant 0 : i32
    %c0_i32_0 = arith.constant 0 : i32
    %c0_i32_1 = arith.constant 0 : i32
    %c0_i32_2 = arith.constant 0 : i32
    return %c0_i32, %c0_i32_0, %c0_i32_1 : i32, i32, i32
  }
  func.func @transform_6(%arg0: i32) -> (i32, i32) {
    %c0_i32 = arith.constant 0 : i32
    %c0_i32_0 = arith.constant 0 : i32
    %c0_i32_1 = arith.constant 0 : i32
    return %c0_i32, %c0_i32_0 : i32, i32
  }
  func.func @transform_7(%arg0: i32) -> (i32, i32) {
    %c0_i32 = arith.constant 0 : i32
    %c0_i32_0 = arith.constant 0 : i32
    %c0_i32_1 = arith.constant 0 : i32
    return %c0_i32, %c0_i32_0 : i32, i32
  }
  func.func @transform_8(%arg0: i32) -> (i32, i32) {
    %c0_i32 = arith.constant 0 : i32
    %c0_i32_0 = arith.constant 0 : i32
    %c0_i32_1 = arith.constant 0 : i32
    return %c0_i32, %c0_i32_0 : i32, i32
  }
  func.func @transform_9(%arg0: i32) -> (i32, i32) {
    %c0_i32 = arith.constant 0 : i32
    %c0_i32_0 = arith.constant 0 : i32
    return %c0_i32, %arg0 : i32, i32
  }
}

</mosaic_0001>

<bundles_post_ra>
// kernel: tpu_custom_call.1
= control target key start
LH: loop header
LB: loop body
LE: loop exit
PB: predicated region body
PF: predicated region fallthrough
CT: control target
= control target key end

     0   :  { %vm251_vm0 = vcmask 1043456   ;;  %vm252_vm1 = vcmask 1044480   ;;  %v5036_v3 = vmov 65535   ;;  %v7384_v11 = vmov 0   ;;  %s7374_s0 = inlined_call_operand.vmem [shape: bf16[9,1024], index: 0, kind: input, shape index: {}]   ;;  %s7375_s1 = inlined_call_operand.vmem [shape: f32[3,1024], index: 1, kind: input, shape index: {}]   ;;  %s7376_s2 = inlined_call_operand.vmem [shape: f32[1,128], index: 2, kind: input, shape index: {}]   ;;  %s7377_s3 = inlined_call_operand.vmem [shape: bf16[128,9], index: 3, kind: input, shape index: {}]   ;;  %s7378_s4 = inlined_call_operand.vmem [shape: f32[128,1], index: 4, kind: input, shape index: {}]   ;;  %s7379_s5 = inlined_call_operand.vmem [shape: bf16[3,128,128], index: 5, kind: input, shape index: {}]   ;;  %s7380_s6 = inlined_call_operand.vmem [shape: f32[128,1], index: 6, kind: input, shape index: {}]   ;;  %s7381_s7 = inlined_call_operand.vmem [shape: bf16[1,128], index: 7, kind: input, shape index: {}]   ;;  %s7382_s8 = inlined_call_operand.vmem [shape: bf16[1,128], index: 8, kind: input, shape index: {}]   ;;  %s7383_s9 = inlined_call_operand.hbm [shape: f32[1,128], index: 9, kind: output, shape index: {}]  }
   0x1   :  { %v50_v0 = vld [vmem:[%s7374_s0] sm:$0xff]  ;;  %v253_v4 = vsel %vm251_vm0, 4294967295, %v5036_v3  ;;  %v51_v5 = vld [vmem:[%s7374_s0 + $0x8] sm:$0xff]  ;;  %311 = vmatprep.mubr.bf16.mxu0 %v7384_v11  ;;  %424 = vmatprep.mubr.bf16.mxu1 %v7384_v11  ;;  %v52_v14 = vld [vmem:[%s7374_s0 + $0x10] sm:$0xff]  ;;  %vm226_vm2 = vcmask 72704  }
   0x2   :  { %v54_v1 = vld [vmem:[%s7374_s0 + $0x20] sm:$0x11]  ;;  %v55_v6 = vld [vmem:[%s7374_s0 + $0x28] sm:$0x11]  ;;  %v254_v8 = vsel %vm252_vm1, %v253_v4, 0  ;;  %4458 = vset.pattern.permute.xlu0 %v7384_v11  ;;  %4459 = vset.pattern.permute.xlu1 %v7384_v11  ;;  %v53_v21 = vld [vmem:[%s7374_s0 + $0x18] sm:$0xff] }
   0x3   :  { %v4043_v2 = vcombine.high %v50_v0, %v54_v1  ;;  %v4042_v7 = vcombine.low %v50_v0, %v54_v1  ;;  %v4045_v9 = vcombine.high %v51_v5, %v55_v6  ;;  %v4044_v10 = vcombine.low %v51_v5, %v55_v6  ;;  %v56_v15 = vld [vmem:[%s7374_s0 + $0x30] sm:$0x11]  ;;  %v5116_v18 = vld [vmem:[%s7377_s3] sm:$0xff]   ;;  %v57_v22 = vld [vmem:[%s7374_s0 + $0x38] sm:$0x11] }
   0x4   :  { %v4046_v19 = vcombine.low %v52_v14, %v56_v15  ;;  %v4047_v20 = vcombine.high %v52_v14, %v56_v15  ;;  %v4048_v25 = vcombine.low %v53_v21, %v57_v22  ;;  %v58_v26 = vld [vmem:[%s7378_s4] sm:$0xff]  ;;  %v4049_v27 = vcombine.high %v53_v21, %v57_v22  ;;  %v60_v28 = vld [vmem:[%s7378_s4 + $0x10] sm:$0xff]  ;;  %v59_v31 = vld [vmem:[%s7378_s4 + $0x8] sm:$0xff] }
   0x5   :  { %v259_v12 = vand.u32 %v4043_v2, %v254_v8  ;;  %v256_v13 = vand.u32 %v4042_v7, %v254_v8  ;;  %v265_v16 = vand.u32 %v4045_v9, %v254_v8  ;;  %v262_v17 = vand.u32 %v4044_v10, %v254_v8  ;;  %76 = vperm.xlu0 %4458, %v58_v26   ;;  %v61_v32 = vld [vmem:[%s7378_s4 + $0x18] sm:$0xff]  ;;  %v5145_v33 = vld [vmem:[%s7377_s3 + $0x8] sm:$0xff]   ;;  %v62_v34 = vld [vmem:[%s7378_s4 + $0x20] sm:$0xff] }
   0x6   :  { %v271_v23 = vand.u32 %v4047_v20, %v254_v8  ;;  %v268_v24 = vand.u32 %v4046_v19, %v254_v8  ;;  %v277_v29 = vand.u32 %v4049_v27, %v254_v8  ;;  %v274_v30 = vand.u32 %v4048_v25, %v254_v8  ;;  %86 = vperm.xlu1 %4459, %v60_v28   ;;  %v63_v35 = vld [vmem:[%s7378_s4 + $0x28] sm:$0xff]  ;;  %v64_v36 = vld [vmem:[%s7378_s4 + $0x30] sm:$0xff]  ;;  %v65_v37 = vld [vmem:[%s7378_s4 + $0x38] sm:$0xff] }
   0x7   :  { %279 = vmatprep.subr.bf16.mxu0 %v259_v12  ;;  %392 = vmatprep.subr.bf16.mxu1 %v265_v16  ;;  %v5168_v38 = vld [vmem:[%s7377_s3 + $0x10] sm:$0xff]   ;;  %v66_v39 = vld [vmem:[%s7378_s4 + $0x40] sm:$0xff]  ;;  %v67_v40 = vld [vmem:[%s7378_s4 + $0x48] sm:$0xff] }
   0x8   :  { %280 = vmatpush1.bf16.msra.mxu0 %v256_v13  ;;  %393 = vmatpush1.bf16.msra.mxu1 %v262_v17  ;;  %v68_v41 = vld [vmem:[%s7378_s4 + $0x50] sm:$0xff]  ;;  %v69_v42 = vld [vmem:[%s7378_s4 + $0x58] sm:$0xff]  ;;  %v70_v44 = vld [vmem:[%s7378_s4 + $0x60] sm:$0xff] }
   0x9   :  { %505 = vmatprep.subr.bf16.mxu0 %v271_v23  ;;  %618 = vmatprep.subr.bf16.mxu1 %v277_v29  ;;  %v5191_v43 = vld [vmem:[%s7377_s3 + $0x18] sm:$0xff]   ;;  %v71_v45 = vld [vmem:[%s7378_s4 + $0x68] sm:$0xff]  ;;  %v72_v46 = vld [vmem:[%s7378_s4 + $0x70] sm:$0xff] }
   0xa   :  { %81 = vperm.xlu0 %4458, %v59_v31   ;;  %91 = vperm.xlu1 %4459, %v61_v32   ;;  %v73_v47 = vld [vmem:[%s7378_s4 + $0x78] sm:$0xff]  ;;  %v5214_v48 = vld [vmem:[%s7377_s3 + $0x20] sm:$0xff]   ;;  %v3338_v50 = vld [vmem:[%s7380_s6 + $0x8] sm:$0xff] }
   0xb   :  { %4050 = vmatmul.mubr.msk.bf16.vlgmr.msra.gmra.mrb[0].mxu0 %vm226_vm2, %v5116_v18  ;;  %4058 = vmatmul.mubr.msk.bf16.vlgmr.msra.gmra.mrb[0].mxu1 %vm226_vm2, %v5116_v18  ;;  %v3337_v49 = vld [vmem:[%s7380_s6] sm:$0xff] }
   0xc   :  { %506 = vmatpush1.bf16.msra.mxu0 %v268_v24  ;;  %321 = vmatprep.mubr.bf16.mxu0 %v7384_v11 }
   0xd   :  { %434 = vmatprep.mubr.bf16.mxu1 %v7384_v11  ;;  %619 = vmatpush1.bf16.msra.mxu1 %v274_v30 }
   0xe   :  { %96 = vperm.xlu0 %4458, %v62_v34   ;;  %101 = vperm.xlu1 %4459, %v63_v35  }
  0x12   :  { %106 = vperm.xlu0 %4458, %v64_v36   ;;  %111 = vperm.xlu1 %4459, %v65_v37  }
  0x13   :  { %4051 = vmatmul.mubr.msk.bf16.gmra.mrb[4].mxu0 %vm226_vm2, %v5145_v33  ;;  %4059 = vmatmul.mubr.msk.bf16.gmra.mrb[4].mxu1 %vm226_vm2, %v5145_v33 }
  0x14   :  { %331 = vmatprep.mubr.bf16.mxu0 %v7384_v11  ;;  %444 = vmatprep.mubr.bf16.mxu1 %v7384_v11 }
  0x16   :  { %116 = vperm.xlu0 %4458, %v66_v39   ;;  %121 = vperm.xlu1 %4459, %v67_v40  }
  0x1a   :  { %126 = vperm.xlu0 %4458, %v68_v41   ;;  %131 = vperm.xlu1 %4459, %v69_v42  }
  0x1b   :  { %4052 = vmatmul.mubr.msk.bf16.gmra.mrb[8].mxu0 %vm226_vm2, %v5168_v38  ;;  %4060 = vmatmul.mubr.msk.bf16.gmra.mrb[8].mxu1 %vm226_vm2, %v5168_v38 }
  0x1c   :  { %341 = vmatprep.mubr.bf16.mxu0 %v7384_v11  ;;  %454 = vmatprep.mubr.bf16.mxu1 %v7384_v11 }
  0x1e   :  { %136 = vperm.xlu0 %4458, %v70_v44   ;;  %141 = vperm.xlu1 %4459, %v71_v45  }
  0x22   :  { %146 = vperm.xlu0 %4458, %v72_v46   ;;  %151 = vperm.xlu1 %4459, %v73_v47  }
  0x23   :  { %4053 = vmatmul.mubr.msk.bf16.gmra.mrb[12].mxu0 %vm226_vm2, %v5191_v43  ;;  %4061 = vmatmul.mubr.msk.bf16.gmra.mrb[12].mxu1 %vm226_vm2, %v5191_v43 }
  0x24   :  { %351 = vmatprep.mubr.bf16.mxu0 %v7384_v11  ;;  %464 = vmatprep.mubr.bf16.mxu1 %v7384_v11 }
  0x25   :  { %14 = vsyncpa [#allocation3], 0  ;;  %v3339_v51 = vld [vmem:[%s7380_s6 + $0x10] sm:$0xff]  ;;  %v3340_v52 = vld [vmem:[%s7380_s6 + $0x18] sm:$0xff]  ;;  %v867_v6 = vlaneseq  ;;  %vm5039_vm3 = vmmov 0  }
  0x26   :  { %3355 = vperm.xlu0 %4458, %v3337_v49   ;;  %3360 = vperm.xlu1 %4459, %v3338_v50   ;;  %v4465_v53 = vld [vmem:[%s7377_s3 + $0x28] sm:$0xff]   ;;  %v3341_v54 = vld [vmem:[%s7380_s6 + $0x20] sm:$0xff]  ;;  %v3343_v56 = vld [vmem:[%s7380_s6 + $0x30] sm:$0xff] }
  0x27   :  { %v3342_v55 = vld [vmem:[%s7380_s6 + $0x28] sm:$0xff]  ;;  %v3344_v57 = vld [vmem:[%s7380_s6 + $0x38] sm:$0xff]  ;;  %v4466_v58 = vld [vmem:[%s7377_s3 + $0x30] sm:$0xff]   ;;  %v5344_v21 = vshrl.u32 %v867_v6, 7 }
  0x28   :  { %v3345_v59 = vld [vmem:[%s7380_s6 + $0x40] sm:$0xff]  ;;  %v3346_v60 = vld [vmem:[%s7380_s6 + $0x48] sm:$0xff]  ;;  %v3347_v61 = vld [vmem:[%s7380_s6 + $0x50] sm:$0xff] }
  0x29   :  { %v3348_v62 = vld [vmem:[%s7380_s6 + $0x58] sm:$0xff]  ;;  %v3349_v0 = vld [vmem:[%s7380_s6 + $0x60] sm:$0xff]  ;;  %v3350_v1 = vld [vmem:[%s7380_s6 + $0x68] sm:$0xff]  ;;  %v5353_v27 = vsub.s32 1, %v5344_v21  ;;  %v5356_v28 = vsub.s32 5, %v5344_v21 }
  0x2a   :  { %3365 = vperm.xlu0 %4458, %v3339_v51   ;;  %3370 = vperm.xlu1 %4459, %v3340_v52   ;;  %v4467_v63 = vld [vmem:[%s7377_s3 + $0x38] sm:$0xff]   ;;  %v3351_v2 = vld [vmem:[%s7380_s6 + $0x70] sm:$0xff]  ;;  %v860_v26 = vld [vmem:[%s7375_s1 + $0x8] sm:$0x77] }
  0x2b   :  { %4054 = vmatmul.mubr.msk.bf16.gmra.mrb[16].mxu0 %vm226_vm2, %v5214_v48  ;;  %4062 = vmatmul.mubr.msk.bf16.gmra.mrb[16].mxu1 %vm226_vm2, %v5214_v48  ;;  %v3352_v3 = vld [vmem:[%s7380_s6 + $0x78] sm:$0xff]  ;;  %v859_v34 = vld [vmem:[%s7375_s1] sm:$0x77]  ;;  %v1162_v35 = vrot.slane %v860_v26, %v5356_v28  ;;  %v1158_v36 = vrot.slane %v860_v26, %v5353_v27 }
  0x2c   :  { %361 = vmatprep.mubr.bf16.mxu0 %v7384_v11  ;;  %474 = vmatprep.mubr.bf16.mxu1 %v7384_v11  ;;  %v1154_v47 = vrot.slane %v859_v34, %v5356_v28 }
  0x2d   :  { %v5377_v51 = vrot.slane %v1162_v35, %v5353_v27  ;;  %v5380_v52 = vrot.slane %v1158_v36, %v5353_v27 }
  0x2e   :  { %3375 = vperm.xlu0 %4458, %v3341_v54   ;;  %3380 = vperm.xlu1 %4459, %v3342_v55  }
  0x32   :  { %3385 = vperm.xlu0 %4458, %v3343_v56   ;;  %3390 = vperm.xlu1 %4459, %v3344_v57  }
  0x33   :  { %4055 = vmatmul.mubr.msk.bf16.gmra.mrb[20].mxu0 %vm226_vm2, %v4465_v53  ;;  %4063 = vmatmul.mubr.msk.bf16.gmra.mrb[20].mxu1 %vm226_vm2, %v4465_v53 }
  0x34   :  { %371 = vmatprep.mubr.bf16.mxu0 %v7384_v11  ;;  %484 = vmatprep.mubr.bf16.mxu1 %v7384_v11 }
  0x36   :  { %3395 = vperm.xlu0 %4458, %v3345_v59   ;;  %3400 = vperm.xlu1 %4459, %v3346_v60   ;;  %v5394_v60 = vrot.slane %v1154_v47, %v5353_v27 }
  0x3a   :  { %3405 = vperm.xlu0 %4458, %v3347_v61   ;;  %3410 = vperm.xlu1 %4459, %v3348_v62  }
  0x3b   :  { %4056 = vmatmul.mubr.msk.bf16.gmra.mrb[24].mxu0 %vm226_vm2, %v4466_v58  ;;  %4064 = vmatmul.mubr.msk.bf16.gmra.mrb[24].mxu1 %vm226_vm2, %v4466_v58 }
  0x3c   :  { %381 = vmatprep.mubr.bf16.mxu0 %v7384_v11  ;;  %494 = vmatprep.mubr.bf16.mxu1 %v7384_v11 }
  0x3e   :  { %3415 = vperm.xlu0 %4458, %v3349_v0   ;;  %3420 = vperm.xlu1 %4459, %v3350_v1  }
  0x42   :  { %3425 = vperm.xlu0 %4458, %v3351_v2   ;;  %3430 = vperm.xlu1 %4459, %v3352_v3  }
  0x43   :  { %4057 = vmatmul.mubr.msk.bf16.gmra.mrb[28].mxu0 %vm226_vm2, %v4467_v63  ;;  %4065 = vmatmul.mubr.msk.bf16.gmra.mrb[28].mxu1 %vm226_vm2, %v4467_v63 }
  0x44   :  { %537 = vmatprep.mubr.bf16.mxu0 %v7384_v11  ;;  %650 = vmatprep.mubr.bf16.mxu1 %v7384_v11 }
  0x4b   :  { %4066 = vmatmul.mubr.msk.bf16.vlgmr.msra.gmra.mrb[32].mxu0 %vm226_vm2, %v5116_v18  ;;  %4074 = vmatmul.mubr.msk.bf16.vlgmr.msra.gmra.mrb[32].mxu1 %vm226_vm2, %v5116_v18 }
  0x4c   :  { %547 = vmatprep.mubr.bf16.mxu0 %v7384_v11  ;;  %660 = vmatprep.mubr.bf16.mxu1 %v7384_v11 }
  0x53   :  { %4067 = vmatmul.mubr.msk.bf16.gmra.mrb[36].mxu0 %vm226_vm2, %v5145_v33  ;;  %4075 = vmatmul.mubr.msk.bf16.gmra.mrb[36].mxu1 %vm226_vm2, %v5145_v33 }
  0x54   :  { %557 = vmatprep.mubr.bf16.mxu0 %v7384_v11  ;;  %670 = vmatprep.mubr.bf16.mxu1 %v7384_v11 }
  0x5b   :  { %4068 = vmatmul.mubr.msk.bf16.gmra.mrb[40].mxu0 %vm226_vm2, %v5168_v38  ;;  %4076 = vmatmul.mubr.msk.bf16.gmra.mrb[40].mxu1 %vm226_vm2, %v5168_v38 }
  0x5c   :  { %567 = vmatprep.mubr.bf16.mxu0 %v7384_v11  ;;  %680 = vmatprep.mubr.bf16.mxu1 %v7384_v11 }
  0x63   :  { %4069 = vmatmul.mubr.msk.bf16.gmra.mrb[44].mxu0 %vm226_vm2, %v5191_v43  ;;  %4077 = vmatmul.mubr.msk.bf16.gmra.mrb[44].mxu1 %vm226_vm2, %v5191_v43 }
  0x64   :  { %577 = vmatprep.mubr.bf16.mxu0 %v7384_v11  ;;  %690 = vmatprep.mubr.bf16.mxu1 %v7384_v11 }
  0x6b   :  { %4070 = vmatmul.mubr.msk.bf16.gmra.mrb[48].mxu0 %vm226_vm2, %v5214_v48  ;;  %4078 = vmatmul.mubr.msk.bf16.gmra.mrb[48].mxu1 %vm226_vm2, %v5214_v48  ;;  %v1150_v48 = vrot.slane %v859_v34, %v5353_v27 }
  0x6c   :  { %587 = vmatprep.mubr.bf16.mxu0 %v7384_v11  ;;  %700 = vmatprep.mubr.bf16.mxu1 %v7384_v11 }
  0x6d   :  { %v5397_v61 = vrot.slane %v1150_v48, %v5353_v27 }
  0x73   :  { %4071 = vmatmul.mubr.msk.bf16.gmra.mrb[52].mxu0 %vm226_vm2, %v4465_v53  ;;  %4079 = vmatmul.mubr.msk.bf16.gmra.mrb[52].mxu1 %vm226_vm2, %v4465_v53 }
  0x74   :  { %597 = vmatprep.mubr.bf16.mxu0 %v7384_v11  ;;  %710 = vmatprep.mubr.bf16.mxu1 %v7384_v11 }
  0x7b   :  { %4072 = vmatmul.mubr.msk.bf16.gmra.mrb[56].mxu0 %vm226_vm2, %v4466_v58  ;;  %4080 = vmatmul.mubr.msk.bf16.gmra.mrb[56].mxu1 %vm226_vm2, %v4466_v58 }
  0x7c   :  { %607 = vmatprep.mubr.bf16.mxu0 %v7384_v11  ;;  %720 = vmatprep.mubr.bf16.mxu1 %v7384_v11 }
  0x83   :  { %4073 = vmatmul.mubr.msk.bf16.gmra.mrb[60].mxu0 %vm226_vm2, %v4467_v63  ;;  %4081 = vmatmul.mubr.msk.bf16.gmra.mrb[60].mxu1 %vm226_vm2, %v4467_v63 }
  0x84   :  { %1508 = vmatprep.mubr.bf16.mxu0 %v7384_v11  ;;  %1621 = vmatprep.mubr.bf16.mxu1 %v7384_v11  ;;  %v5333_v4 = vpop.permute.xlu0 %76 }
  0x85   :  { %v5335_v5 = vpop.permute.xlu1 %86 }
  0x89   :  { %v5337_v7 = vpop.permute.xlu0 %81  ;;  %v5358_v29 = vpop.permute.xlu1 %91 }
  0x8d   :  { %v5387_v56 = vpop.permute.xlu0 %96  ;;  %v5391_v58 = vpop.permute.xlu1 %101 }
  0xde   :  { %v313_v8 = vpop.f32.mrb[0].mxu0  ;;  %v426_v10 = vpop.f32.mrb[0].mxu1 }
  0xdf   :  { %v314_v9 = vadd.f32 %v313_v8, %v5333_v4  ;;  %v315_v12 = vpop.f32.mrb[1].mxu0  ;;  %v427_v13 = vadd.f32 %v426_v10, %v5333_v4  ;;  %v428_v15 = vpop.f32.mrb[1].mxu1 }
  0xe0   :  { %v316_v14 = vadd.f32 %v315_v12, %v5333_v4  ;;  %v317_v16 = vpop.f32.mrb[2].mxu0  ;;  %v429_v17 = vadd.f32 %v428_v15, %v5333_v4  ;;  %v430_v19 = vpop.f32.mrb[2].mxu1 }
  0xe1   :  { %4492 = vtanh.f32 %v314_v9  ;;  %v318_v18 = vadd.f32 %v317_v16, %v5337_v7  ;;  %v319_v20 = vpop.f32.mrb[3].mxu0  ;;  %v431_v22 = vadd.f32 %v430_v19, %v5337_v7  ;;  %v432_v23 = vpop.f32.mrb[3].mxu1 }
  0xe2   :  { %4494 = vtanh.f32 %v427_v13  ;;  %v320_v24 = vadd.f32 %v319_v20, %v5337_v7  ;;  %v433_v25 = vadd.f32 %v432_v23, %v5337_v7 }
  0xe3   :  { %4496 = vtanh.f32 %v316_v14 }
  0xe4   :  { %4498 = vtanh.f32 %v429_v17 }
  0xe5   :  { %4500 = vtanh.f32 %v318_v18 }
  0xe6   :  { %4502 = vtanh.f32 %v431_v22  ;;  %v323_v30 = vpop.f32.mrb[4].mxu0  ;;  %v436_v32 = vpop.f32.mrb[4].mxu1 }
  0xe7   :  { %4504 = vtanh.f32 %v320_v24  ;;  %v324_v31 = vadd.f32 %v323_v30, %v5335_v5  ;;  %v325_v33 = vpop.f32.mrb[5].mxu0  ;;  %v437_v37 = vadd.f32 %v436_v32, %v5335_v5  ;;  %v438_v39 = vpop.f32.mrb[5].mxu1 }
  0xe8   :  { %4506 = vtanh.f32 %v433_v25  ;;  %v326_v38 = vadd.f32 %v325_v33, %v5335_v5  ;;  %v327_v40 = vpop.f32.mrb[6].mxu0  ;;  %v439_v41 = vadd.f32 %v438_v39, %v5335_v5  ;;  %v440_v43 = vpop.f32.mrb[6].mxu1 }
  0xe9   :  { %4508 = vtanh.f32 %v324_v31  ;;  %v328_v42 = vadd.f32 %v327_v40, %v5358_v29  ;;  %v329_v44 = vpop.f32.mrb[7].mxu0  ;;  %v441_v45 = vadd.f32 %v440_v43, %v5358_v29  ;;  %v442_v46 = vpop.f32.mrb[7].mxu1 }
  0xea   :  { %4510 = vtanh.f32 %v437_v37  ;;  %v330_v50 = vadd.f32 %v329_v44, %v5358_v29  ;;  %v443_v54 = vadd.f32 %v442_v46, %v5358_v29 }
  0xeb   :  { %v5373_v49 = vpop.eup %4492  ;;  %4512 = vtanh.f32 %v326_v38  ;;  %v5437_v38 = vpop.permute.xlu0 %106 }
  0xec   :  { %v5382_v53 = vpop.eup %4494  ;;  %4514 = vtanh.f32 %v439_v41  ;;  %v1219_v32 = vmul.f32 %v5373_v49, %v5397_v61 }
  0xed   :  { %7634 = vst [vmem:[#allocation5_spill] sm:$0xff] %v5382_v53  ;;  %v5385_v55 = vpop.eup %4496  ;;  %4516 = vtanh.f32 %v328_v42  ;;  %v1221_v3 = vmul.f32 %v5382_v53, %v5380_v52  ;;  %v5441_v42 = vpop.permute.xlu1 %111 }
  0xee   :  { %7635 = vst [vmem:[#allocation6_spill] sm:$0xff] %v5385_v55  ;;  %v5389_v57 = vpop.eup %4498  ;;  %4518 = vtanh.f32 %v441_v45  ;;  %v333_v59 = vpop.f32.mrb[8].mxu0  ;;  %v1220_v24 = vmul.f32 %v5385_v55, %v5394_v60 }
  0xef   :  { %7636 = vst [vmem:[#allocation7_spill] sm:$0xff] %v5389_v57  ;;  %v5399_v62 = vpop.eup %4500  ;;  %4520 = vtanh.f32 %v330_v50  ;;  %v334_v63 = vadd.f32 %v333_v59, %v5387_v56  ;;  %v446_v0 = vpop.f32.mrb[8].mxu1  ;;  %v1222_v2 = vmul.f32 %v5389_v57, %v5377_v51 }
  0xf0   :  { %7637 = vst [vmem:[#allocation8_spill] sm:$0xff] %v5399_v62  ;;  %v335_v1 = vpop.f32.mrb[9].mxu0  ;;  %v5406_v6 = vpop.eup %4502  ;;  %4522 = vtanh.f32 %v443_v54  ;;  %v447_v8 = vadd.f32 %v446_v0, %v5387_v56  ;;  %v1227_v13 = vmul.f32 %v5399_v62, %v5397_v61 }
  0xf1   :  { %7638 = vst [vmem:[#allocation9_spill] sm:$0xff] %v5406_v6  ;;  %v336_v9 = vadd.f32 %v335_v1, %v5387_v56  ;;  %v448_v10 = vpop.f32.mrb[9].mxu1  ;;  %v337_v12 = vpop.f32.mrb[10].mxu0  ;;  %4524 = vtanh.f32 %v334_v63  ;;  %v1229_v19 = vmul.f32 %v5406_v6, %v5380_v52 }
  0xf2   :  { %v5412_v14 = vpop.eup %4504  ;;  %v449_v15 = vadd.f32 %v448_v10, %v5387_v56  ;;  %v338_v16 = vadd.f32 %v337_v12, %v5391_v58  ;;  %v450_v17 = vpop.f32.mrb[10].mxu1  ;;  %4526 = vtanh.f32 %v447_v8  ;;  %v1347_v40 = vpack.c.bf16 %v1227_v13, %v1219_v32 }
  0xf3   :  { %7639 = vst [vmem:[#allocation10_spill] sm:$0xff] %v5412_v14  ;;  %v339_v18 = vpop.f32.mrb[11].mxu0  ;;  %v5418_v20 = vpop.eup %4506  ;;  %v451_v22 = vadd.f32 %v450_v17, %v5391_v58  ;;  %v1228_v25 = vmul.f32 %v5412_v14, %v5394_v60  ;;  %4528 = vtanh.f32 %v336_v9  ;;  %v1349_v36 = vpack.c.bf16 %v1229_v19, %v1221_v3 }
  0xf4   :  { %7640 = vst [vmem:[#allocation11_spill] sm:$0xff] %v5418_v20  ;;  %v452_v23 = vpop.f32.mrb[11].mxu1  ;;  %v5425_v26 = vpop.eup %4508  ;;  %v340_v30 = vadd.f32 %v339_v18, %v5391_v58  ;;  %v1230_v31 = vmul.f32 %v5418_v20, %v5377_v51  ;;  %4530 = vtanh.f32 %v449_v15 }
  0xf5   :  { %7641 = vst [vmem:[#allocation12_spill] sm:$0xff] %v5425_v26  ;;  %v5432_v33 = vpop.eup %4510  ;;  %v453_v34 = vadd.f32 %v452_v23, %v5391_v58  ;;  %v1348_v35 = vpack.c.bf16 %v1228_v25, %v1220_v24  ;;  %4532 = vtanh.f32 %v338_v16  ;;  %v1235_v25 = vmul.f32 %v5425_v26, %v5397_v61 }
  0xf6   :  { %7642 = vst [vmem:[#allocation13_spill] sm:$0xff] %v5432_v33  ;;  %v5435_v37 = vpop.eup %4512  ;;  %v1350_v39 = vpack.c.bf16 %v1230_v31, %v1222_v2  ;;  %4534 = vtanh.f32 %v451_v22  ;;  %v343_v43 = vpop.f32.mrb[12].mxu0  ;;  %v1237_v50 = vmul.f32 %v5432_v33, %v5380_v52 }
  0xf7   :  { %7643 = vst [vmem:[#allocation14_spill] sm:$0xff] %v5435_v37  ;;  %v5439_v41 = vpop.eup %4514  ;;  %1476 = vmatprep.subr.bf16.mxu0 %v1348_v35  ;;  %4536 = vtanh.f32 %v340_v30  ;;  %v344_v45 = vadd.f32 %v343_v43, %v5437_v38  ;;  %v456_v46 = vpop.f32.mrb[12].mxu1  ;;  %v1236_v18 = vmul.f32 %v5435_v37, %v5394_v60 }
  0xf8   :  { %7644 = vst [vmem:[#allocation15_spill] sm:$0xff] %v5439_v41  ;;  %v5443_v44 = vpop.eup %4516  ;;  %1589 = vmatprep.subr.bf16.mxu1 %v1350_v39  ;;  %1477 = vmatpush1.bf16.msra.mxu0 %v1347_v40  ;;  %v345_v47 = vpop.f32.mrb[13].mxu0  ;;  %v1238_v48 = vmul.f32 %v5439_v41, %v5377_v51  ;;  %4538 = vtanh.f32 %v453_v34  ;;  %v457_v59 = vadd.f32 %v456_v46, %v5437_v38 }
  0xf9   :  { %v5450_v54 = vpop.eup %4518  ;;  %1590 = vmatpush1.bf16.msra.mxu1 %v1349_v36  ;;  %v346_v63 = vadd.f32 %v345_v47, %v5437_v38  ;;  %v458_v0 = vpop.f32.mrb[13].mxu1  ;;  %v1243_v2 = vmul.f32 %v5443_v44, %v5397_v61  ;;  %4540 = vtanh.f32 %v344_v45 }
  0xfa   :  { %7645 = vst [vmem:[#allocation16_spill] sm:$0xff] %v5450_v54  ;;  %v347_v1 = vpop.f32.mrb[14].mxu0  ;;  %v5456_v3 = vpop.eup %4520  ;;  %v459_v8 = vadd.f32 %v458_v0, %v5437_v38  ;;  %v1245_v13 = vmul.f32 %v5450_v54, %v5380_v52  ;;  %4542 = vtanh.f32 %v457_v59 }
  0xfb   :  { %v348_v9 = vadd.f32 %v347_v1, %v5441_v42  ;;  %v460_v10 = vpop.f32.mrb[14].mxu1  ;;  %v349_v12 = vpop.f32.mrb[15].mxu0  ;;  %v1244_v19 = vmul.f32 %v5456_v3, %v5394_v60  ;;  %4544 = vtanh.f32 %v346_v63  ;;  %v1355_v40 = vpack.c.bf16 %v1243_v2, %v1235_v25 }
  0xfc   :  { %v5462_v15 = vpop.eup %4522  ;;  %v461_v16 = vadd.f32 %v460_v10, %v5441_v42  ;;  %v462_v17 = vpop.f32.mrb[15].mxu1  ;;  %v350_v23 = vadd.f32 %v349_v12, %v5441_v42  ;;  %4546 = vtanh.f32 %v459_v8  ;;  %v1357_v34 = vpack.c.bf16 %v1245_v13, %v1237_v50 }
  0xfd   :  { %7646 = vst [vmem:[#allocation17_spill] sm:$0xff] %v5462_v15  ;;  %v5469_v22 = vpop.eup %4524  ;;  %v1246_v24 = vmul.f32 %v5462_v15, %v5377_v51  ;;  %v463_v31 = vadd.f32 %v462_v17, %v5441_v42  ;;  %v1356_v32 = vpack.c.bf16 %v1244_v19, %v1236_v18  ;;  %v5481_v36 = vpop.permute.xlu0 %116  ;;  %4548 = vtanh.f32 %v348_v9 }
  0xfe   :  { %7647 = vst [vmem:[#allocation18_spill] sm:$0xff] %v5469_v22  ;;  %v5476_v30 = vpop.eup %4526  ;;  %v5485_v45 = vpop.permute.xlu1 %121  ;;  %4550 = vtanh.f32 %v461_v16 }
  0xff   :  { %7648 = vst [vmem:[#allocation19_spill] sm:$0xff] %v5476_v30  ;;  %v5479_v35 = vpop.eup %4528  ;;  %v1358_v39 = vpack.c.bf16 %v1246_v24, %v1238_v48  ;;  %1478 = vmatprep.subr.bf16.mxu0 %v1356_v32  ;;  %v353_v46 = vpop.f32.mrb[16].mxu0  ;;  %4552 = vtanh.f32 %v350_v23  ;;  %v1253_v0 = vmul.f32 %v5476_v30, %v5380_v52 }
 0x100   :  { %7649 = vst [vmem:[#allocation20_spill] sm:$0xff] %v5479_v35  ;;  %v5483_v43 = vpop.eup %4530  ;;  %1479 = vmatpush1.bf16.msra.mxu0 %v1355_v40  ;;  %v354_v50 = vadd.f32 %v353_v46, %v5481_v36  ;;  %v466_v59 = vpop.f32.mrb[16].mxu1  ;;  %4554 = vtanh.f32 %v463_v31  ;;  %v1252_v32 = vmul.f32 %v5479_v35, %v5394_v60 }
 0x101   :  { %7650 = vst [vmem:[#allocation21_spill] sm:$0xff] %v5483_v43  ;;  %v5487_v47 = vpop.eup %4532  ;;  %1591 = vmatprep.subr.bf16.mxu1 %v1358_v39  ;;  %v355_v63 = vpop.f32.mrb[17].mxu0  ;;  %v1254_v48 = vmul.f32 %v5483_v43, %v5377_v51  ;;  %v467_v2 = vadd.f32 %v466_v59, %v5481_v36 }
 0x102   :  { %7651 = vst [vmem:[#allocation22_spill] sm:$0xff] %v5487_v47  ;;  %v5494_v1 = vpop.eup %4534  ;;  %1592 = vmatpush1.bf16.msra.mxu1 %v1357_v34  ;;  %v356_v8 = vadd.f32 %v355_v63, %v5481_v36  ;;  %v468_v9 = vpop.f32.mrb[17].mxu1  ;;  %v1259_v12 = vmul.f32 %v5487_v47, %v5397_v61  ;;  %4556 = vtanh.f32 %v354_v50  ;;  %v1251_v50 = vmul.f32 %v5469_v22, %v5397_v61 }
 0x103   :  { %7652 = vst [vmem:[#allocation23_spill] sm:$0xff] %v5494_v1  ;;  %v357_v10 = vpop.f32.mrb[18].mxu0  ;;  %v5500_v13 = vpop.eup %4536  ;;  %v469_v16 = vadd.f32 %v468_v9, %v5481_v36  ;;  %v1261_v23 = vmul.f32 %v5494_v1, %v5380_v52  ;;  %4558 = vtanh.f32 %v467_v2 }
 0x104   :  { %7653 = vst [vmem:[#allocation24_spill] sm:$0xff] %v5500_v13  ;;  %v358_v17 = vadd.f32 %v357_v10, %v5485_v45  ;;  %v470_v18 = vpop.f32.mrb[18].mxu1  ;;  %v359_v19 = vpop.f32.mrb[19].mxu0  ;;  %v1260_v34 = vmul.f32 %v5500_v13, %v5394_v60  ;;  %4560 = vtanh.f32 %v356_v8 }
 0x105   :  { %v5506_v24 = vpop.eup %4538  ;;  %v471_v25 = vadd.f32 %v470_v18, %v5485_v45  ;;  %v472_v31 = vpop.f32.mrb[19].mxu1  ;;  %v360_v40 = vadd.f32 %v359_v19, %v5485_v45  ;;  %4562 = vtanh.f32 %v469_v16  ;;  %v1365_v9 = vpack.c.bf16 %v1261_v23, %v1253_v0 }
 0x106   :  { %7654 = vst [vmem:[#allocation25_spill] sm:$0xff] %v5506_v24  ;;  %v5513_v39 = vpop.eup %4540  ;;  %v1262_v46 = vmul.f32 %v5506_v24, %v5377_v51  ;;  %v473_v63 = vadd.f32 %v472_v31, %v5485_v45  ;;  %v1364_v2 = vpack.c.bf16 %v1260_v34, %v1252_v32  ;;  %v5525_v18 = vpop.permute.xlu0 %126  ;;  %4564 = vtanh.f32 %v358_v17 }
 0x107   :  { %7655 = vst [vmem:[#allocation26_spill] sm:$0xff] %v5513_v39  ;;  %v5520_v59 = vpop.eup %4542  ;;  %v1363_v19 = vpack.c.bf16 %v1259_v12, %v1251_v50  ;;  %v5529_v1 = vpop.permute.xlu1 %131  ;;  %4566 = vtanh.f32 %v471_v25 }
 0x108   :  { %7656 = vst [vmem:[#allocation27_spill] sm:$0xff] %v5520_v59  ;;  %v5523_v10 = vpop.eup %4544  ;;  %v1366_v8 = vpack.c.bf16 %v1262_v46, %v1254_v48  ;;  %1480 = vmatprep.subr.bf16.mxu0 %v1364_v2  ;;  %v363_v22 = vpop.f32.mrb[20].mxu0  ;;  %4568 = vtanh.f32 %v360_v40  ;;  %v1269_v12 = vmul.f32 %v5520_v59, %v5380_v52 }
 0x109   :  { %7657 = vst [vmem:[#allocation28_spill] sm:$0xff] %v5523_v10  ;;  %v5527_v11 = vpop.eup %4546  ;;  %1481 = vmatpush1.bf16.msra.mxu0 %v1363_v19  ;;  %v364_v0 = vadd.f32 %v363_v22, %v5525_v18  ;;  %v476_v16 = vpop.f32.mrb[20].mxu1  ;;  %4570 = vtanh.f32 %v473_v63 }
 0x10a   :  { %7658 = vst [vmem:[#allocation29_spill] sm:$0xff] %v5527_v11  ;;  %v5531_v30 = vpop.eup %4548  ;;  %1593 = vmatprep.subr.bf16.mxu1 %v1366_v8  ;;  %v365_v23 = vpop.f32.mrb[21].mxu0  ;;  %v1270_v48 = vmul.f32 %v5527_v11, %v5377_v51  ;;  %v477_v25 = vadd.f32 %v476_v16, %v5525_v18 }
 0x10b   :  { %7659 = vst [vmem:[#allocation30_spill] sm:$0xff] %v5531_v30  ;;  %v5538_v17 = vpop.eup %4550  ;;  %1594 = vmatpush1.bf16.msra.mxu1 %v1365_v9  ;;  %v366_v31 = vadd.f32 %v365_v23, %v5525_v18  ;;  %v478_v32 = vpop.f32.mrb[21].mxu1  ;;  %v1275_v22 = vmul.f32 %v5531_v30, %v5397_v61  ;;  %4572 = vtanh.f32 %v364_v0  ;;  %v1268_v23 = vmul.f32 %v5523_v10, %v5394_v60 }
 0x10c   :  { %7660 = vst [vmem:[#allocation31_spill] sm:$0xff] %v5538_v17  ;;  %v367_v34 = vpop.f32.mrb[22].mxu0  ;;  %v5544_v40 = vpop.eup %4552  ;;  %v479_v46 = vadd.f32 %v478_v32, %v5525_v18  ;;  %v1277_v63 = vmul.f32 %v5538_v17, %v5380_v52  ;;  %4574 = vtanh.f32 %v477_v25  ;;  %v1267_v25 = vmul.f32 %v5513_v39, %v5397_v61 }
 0x10d   :  { %7661 = vst [vmem:[#allocation32_spill] sm:$0xff] %v5544_v40  ;;  %v368_v50 = vadd.f32 %v367_v34, %v5529_v1  ;;  %v480_v2 = vpop.f32.mrb[22].mxu1  ;;  %v369_v8 = vpop.f32.mrb[23].mxu0  ;;  %v1276_v0 = vmul.f32 %v5544_v40, %v5394_v60  ;;  %4576 = vtanh.f32 %v366_v31 }
 0x10e   :  { %v5550_v9 = vpop.eup %4554  ;;  %v481_v19 = vadd.f32 %v480_v2, %v5529_v1  ;;  %v482_v16 = vpop.f32.mrb[23].mxu1  ;;  %v370_v34 = vadd.f32 %v369_v8, %v5529_v1  ;;  %4578 = vtanh.f32 %v479_v46  ;;  %v1373_v11 = vpack.c.bf16 %v1277_v63, %v1269_v12 }
 0x10f   :  { %7662 = vst [vmem:[#allocation33_spill] sm:$0xff] %v5550_v9  ;;  %v5557_v32 = vpop.eup %4556  ;;  %v1278_v17 = vmul.f32 %v5550_v9, %v5377_v51  ;;  %v483_v2 = vadd.f32 %v482_v16, %v5529_v1  ;;  %v1372_v30 = vpack.c.bf16 %v1276_v0, %v1268_v23  ;;  %v5569_v40 = vpop.permute.xlu0 %136  ;;  %4580 = vtanh.f32 %v368_v50 }
 0x110   :  { %7663 = vst [vmem:[#allocation34_spill] sm:$0xff] %v5557_v32  ;;  %v5564_v59 = vpop.eup %4558  ;;  %v1371_v8 = vpack.c.bf16 %v1275_v22, %v1267_v25  ;;  %v5573_v9 = vpop.permute.xlu1 %141  ;;  %4582 = vtanh.f32 %v481_v19 }
 0x111   :  { %7664 = vst [vmem:[#allocation35_spill] sm:$0xff] %v5564_v59  ;;  %v5567_v10 = vpop.eup %4560  ;;  %v1374_v31 = vpack.c.bf16 %v1278_v17, %v1270_v48  ;;  %1482 = vmatprep.subr.bf16.mxu0 %v1372_v30  ;;  %v373_v39 = vpop.f32.mrb[24].mxu0  ;;  %4584 = vtanh.f32 %v370_v34  ;;  %v1283_v48 = vmul.f32 %v5557_v32, %v5397_v61 }
 0x112   :  { %7665 = vst [vmem:[#allocation36_spill] sm:$0xff] %v5567_v10  ;;  %v5571_v47 = vpop.eup %4562  ;;  %1483 = vmatpush1.bf16.msra.mxu0 %v1371_v8  ;;  %v374_v12 = vadd.f32 %v373_v39, %v5569_v40  ;;  %v486_v46 = vpop.f32.mrb[24].mxu1  ;;  %4586 = vtanh.f32 %v483_v2  ;;  %v1284_v16 = vmul.f32 %v5567_v10, %v5394_v60 }
 0x113   :  { %7666 = vst [vmem:[#allocation37_spill] sm:$0xff] %v5571_v47  ;;  %v5575_v35 = vpop.eup %4564  ;;  %1595 = vmatprep.subr.bf16.mxu1 %v1374_v31  ;;  %v375_v63 = vpop.f32.mrb[25].mxu0  ;;  %v487_v22 = vadd.f32 %v486_v46, %v5569_v40 }
 0x114   :  { %7667 = vst [vmem:[#allocation38_spill] sm:$0xff] %v5575_v35  ;;  %v5580_v17 = vpop.eup %4566  ;;  %1596 = vmatpush1.bf16.msra.mxu1 %v1373_v11  ;;  %v376_v30 = vadd.f32 %v375_v63, %v5569_v40  ;;  %v488_v50 = vpop.f32.mrb[25].mxu1  ;;  %4588 = vtanh.f32 %v374_v12  ;;  %v1291_v11 = vmul.f32 %v5575_v35, %v5397_v61 }
 0x115   :  { %7668 = vst [vmem:[#allocation39_spill] sm:$0xff] %v5580_v17  ;;  %v377_v19 = vpop.f32.mrb[26].mxu0  ;;  %v5586_v23 = vpop.eup %4568  ;;  %v489_v39 = vadd.f32 %v488_v50, %v5569_v40  ;;  %4590 = vtanh.f32 %v487_v22  ;;  %v1293_v12 = vmul.f32 %v5580_v17, %v5380_v52  ;;  %v1285_v17 = vmul.f32 %v5564_v59, %v5380_v52 }
 0x116   :  { %7669 = vst [vmem:[#allocation40_spill] sm:$0xff] %v5586_v23  ;;  %v378_v0 = vadd.f32 %v377_v19, %v5573_v9  ;;  %v490_v34 = vpop.f32.mrb[26].mxu1  ;;  %v379_v25 = vpop.f32.mrb[27].mxu0  ;;  %v1292_v46 = vmul.f32 %v5586_v23, %v5394_v60  ;;  %4592 = vtanh.f32 %v376_v30  ;;  %v1286_v19 = vmul.f32 %v5571_v47, %v5377_v51 }
 0x117   :  { %v5592_v2 = vpop.eup %4570  ;;  %v491_v31 = vadd.f32 %v490_v34, %v5573_v9  ;;  %v492_v8 = vpop.f32.mrb[27].mxu1  ;;  %v380_v50 = vadd.f32 %v379_v25, %v5573_v9  ;;  %4594 = vtanh.f32 %v489_v39  ;;  %v1379_v23 = vpack.c.bf16 %v1291_v11, %v1283_v48 }
 0x118   :  { %7670 = vst [vmem:[#allocation41_spill] sm:$0xff] %v5592_v2  ;;  %v5599_v63 = vpop.eup %4572  ;;  %v1294_v22 = vmul.f32 %v5592_v2, %v5377_v51  ;;  %v493_v34 = vadd.f32 %v492_v8, %v5573_v9  ;;  %v1380_v35 = vpack.c.bf16 %v1292_v46, %v1284_v16  ;;  %v5613_v30 = vpop.permute.xlu0 %146  ;;  %4596 = vtanh.f32 %v378_v0 }
 0x119   :  { %7671 = vst [vmem:[#allocation42_spill] sm:$0xff] %v5599_v63  ;;  %v5606_v32 = vpop.eup %4574  ;;  %v5617_v24 = vpop.permute.xlu1 %151  ;;  %4598 = vtanh.f32 %v491_v31  ;;  %v1381_v39 = vpack.c.bf16 %v1293_v12, %v1285_v17  ;;  %v1299_v48 = vmul.f32 %v5599_v63, %v5397_v61 }
 0x11a   :  { %7672 = vst [vmem:[#allocation43_spill] sm:$0xff] %v5606_v32  ;;  %v5611_v10 = vpop.eup %4576  ;;  %v1382_v25 = vpack.c.bf16 %v1294_v22, %v1286_v19  ;;  %1484 = vmatprep.subr.bf16.mxu0 %v1380_v35  ;;  %v383_v2 = vpop.f32.mrb[28].mxu0  ;;  %4600 = vtanh.f32 %v380_v50 }
 0x11b   :  { %7673 = vst [vmem:[#allocation44_spill] sm:$0xff] %v5611_v10  ;;  %v5615_v47 = vpop.eup %4578  ;;  %1485 = vmatpush1.bf16.msra.mxu0 %v1379_v23  ;;  %v384_v16 = vadd.f32 %v383_v2, %v5613_v30  ;;  %v496_v46 = vpop.f32.mrb[28].mxu1  ;;  %4602 = vtanh.f32 %v493_v34  ;;  %v1300_v23 = vmul.f32 %v5611_v10, %v5394_v60 }
 0x11c   :  { %7674 = vst [vmem:[#allocation45_spill] sm:$0xff] %v5615_v47  ;;  %v5619_v8 = vpop.eup %4580  ;;  %1597 = vmatprep.subr.bf16.mxu1 %v1382_v25  ;;  %v385_v59 = vpop.f32.mrb[29].mxu0  ;;  %v497_v35 = vadd.f32 %v496_v46, %v5613_v30  ;;  %v1302_v63 = vmul.f32 %v5615_v47, %v5377_v51 }
 0x11d   :  { %7675 = vst [vmem:[#allocation46_spill] sm:$0xff] %v5619_v8  ;;  %v5624_v0 = vpop.eup %4582  ;;  %1598 = vmatpush1.bf16.msra.mxu1 %v1381_v39  ;;  %v386_v17 = vadd.f32 %v385_v59, %v5613_v30  ;;  %v498_v11 = vpop.f32.mrb[29].mxu1  ;;  %4604 = vtanh.f32 %v384_v16  ;;  %v1307_v34 = vmul.f32 %v5619_v8, %v5397_v61 }
 0x11e   :  { %7676 = vst [vmem:[#allocation47_spill] sm:$0xff] %v5624_v0  ;;  %v387_v31 = vpop.f32.mrb[30].mxu0  ;;  %v5630_v12 = vpop.eup %4584  ;;  %v499_v2 = vadd.f32 %v498_v11, %v5613_v30  ;;  %4606 = vtanh.f32 %v497_v35  ;;  %v1309_v16 = vmul.f32 %v5624_v0, %v5380_v52 }
 0x11f   :  { %7677 = vst [vmem:[#allocation48_spill] sm:$0xff] %v5630_v12  ;;  %v388_v50 = vadd.f32 %v387_v31, %v5617_v24  ;;  %v500_v19 = vpop.f32.mrb[30].mxu1  ;;  %v389_v22 = vpop.f32.mrb[31].mxu0  ;;  %v1308_v46 = vmul.f32 %v5630_v12, %v5394_v60  ;;  %4608 = vtanh.f32 %v386_v17  ;;  %v1301_v17 = vmul.f32 %v5606_v32, %v5380_v52 }
 0x120   :  { %v5636_v25 = vpop.eup %4586  ;;  %v501_v59 = vadd.f32 %v500_v19, %v5617_v24  ;;  %v502_v39 = vpop.f32.mrb[31].mxu1  ;;  %v390_v31 = vadd.f32 %v389_v22, %v5617_v24  ;;  %v5653_v19 = vld [vmem:[%s7375_s1 + $0x10] sm:$0x77]  ;;  %4610 = vtanh.f32 %v499_v2  ;;  %v1387_v12 = vpack.c.bf16 %v1307_v34, %v1299_v48 }
 0x121   :  { %7678 = vst [vmem:[#allocation49_spill] sm:$0xff] %v5636_v25  ;;  %v5643_v11 = vpop.eup %4588  ;;  %v1310_v35 = vmul.f32 %v5636_v25, %v5377_v51  ;;  %v503_v0 = vadd.f32 %v502_v39, %v5617_v24  ;;  %v1388_v10 = vpack.c.bf16 %v1308_v46, %v1300_v23  ;;  %4612 = vtanh.f32 %v388_v50  ;;  %v539_v13 = vpop.f32.mrb[32].mxu0 }
 0x122   :  { %7679 = vst [vmem:[#allocation50_spill] sm:$0xff] %v5643_v11  ;;  %v5655_v8 = vpop.eup %4590  ;;  %4614 = vtanh.f32 %v501_v59  ;;  %v1389_v43 = vpack.c.bf16 %v1309_v16, %v1301_v17  ;;  %v1166_v2 = vrot.slane %v5653_v19, %v5353_v27  ;;  %v540_v23 = vadd.f32 %v539_v13, %v5333_v4  ;;  %v652_v39 = vpop.f32.mrb[32].mxu1 }
 0x123   :  { %7680 = vst [vmem:[#allocation51_spill] sm:$0xff] %v5655_v8  ;;  %v5660_v22 = vpop.eup %4592  ;;  %v1390_v47 = vpack.c.bf16 %v1310_v35, %v1302_v63  ;;  %1486 = vmatprep.subr.bf16.mxu0 %v1388_v10  ;;  %4616 = vtanh.f32 %v390_v31  ;;  %v541_v50 = vpop.f32.mrb[33].mxu0  ;;  %v1315_v63 = vmul.f32 %v5643_v11, %v5397_v61  ;;  %v1170_v10 = vrot.slane %v5653_v19, %v5356_v28 }
 0x124   :  { %7681 = vst [vmem:[#allocation52_spill] sm:$0xff] %v5660_v22  ;;  %v5662_v25 = vpop.eup %4594  ;;  %1487 = vmatpush1.bf16.msra.mxu0 %v1387_v12  ;;  %4618 = vtanh.f32 %v503_v0  ;;  %v653_v34 = vadd.f32 %v652_v39, %v5333_v4  ;;  %v542_v59 = vadd.f32 %v541_v50, %v5333_v4  ;;  %v543_v12 = vpop.f32.mrb[34].mxu0  ;;  %v1316_v13 = vmul.f32 %v5660_v22, %v5394_v60 }
 0x125   :  { %7682 = vst [vmem:[#allocation53_spill] sm:$0xff] %v5662_v25  ;;  %v5666_v54 = vpop.eup %4596  ;;  %1599 = vmatprep.subr.bf16.mxu1 %v1390_v47  ;;  %v654_v47 = vpop.f32.mrb[33].mxu1  ;;  %4620 = vtanh.f32 %v540_v23  ;;  %v544_v31 = vadd.f32 %v543_v12, %v5337_v7  ;;  %v1317_v22 = vmul.f32 %v5655_v8, %v5380_v52 }
 0x126   :  { %7683 = vst [vmem:[#allocation54_spill] sm:$0xff] %v5666_v54  ;;  %v5673_v48 = vpop.eup %4598  ;;  %1600 = vmatpush1.bf16.msra.mxu1 %v1389_v43  ;;  %v655_v16 = vadd.f32 %v654_v47, %v5333_v4  ;;  %v656_v35 = vpop.f32.mrb[34].mxu1  ;;  %v1323_v43 = vmul.f32 %v5666_v54, %v5397_v61  ;;  %4622 = vtanh.f32 %v653_v34  ;;  %v5695_v4 = vld [vmem:[%s7375_s1 + $0x18] sm:$0x77]  ;;  %v1318_v34 = vmul.f32 %v5662_v25, %v5377_v51 }
 0x127   :  { %7684 = vst [vmem:[#allocation55_spill] sm:$0xff] %v5673_v48  ;;  %v5679_v46 = vpop.eup %4600  ;;  %v545_v19 = vpop.f32.mrb[35].mxu0  ;;  %v657_v17 = vadd.f32 %v656_v35, %v5337_v7  ;;  %v1325_v23 = vmul.f32 %v5673_v48, %v5380_v52  ;;  %4624 = vtanh.f32 %v542_v59  ;;  %v1174_v25 = vrot.slane %v5695_v4, %v5353_v27 }
 0x128   :  { %7685 = vst [vmem:[#allocation56_spill] sm:$0xff] %v5679_v46  ;;  %v5685_v0 = vpop.eup %4602  ;;  %v658_v39 = vpop.f32.mrb[35].mxu1  ;;  %v1324_v50 = vmul.f32 %v5679_v46, %v5394_v60  ;;  %v546_v12 = vadd.f32 %v545_v19, %v5337_v7  ;;  %4626 = vtanh.f32 %v655_v16  ;;  %v1395_v19 = vpack.c.bf16 %v1323_v43, %v1315_v63 }
 0x129   :  { %7686 = vst [vmem:[#allocation57_spill] sm:$0xff] %v5685_v0  ;;  %v5697_v47 = vpop.eup %4604  ;;  %v1326_v35 = vmul.f32 %v5685_v0, %v5377_v51  ;;  %v659_v48 = vadd.f32 %v658_v39, %v5337_v7  ;;  %4628 = vtanh.f32 %v544_v31  ;;  %v1397_v0 = vpack.c.bf16 %v1325_v23, %v1317_v22  ;;  %v549_v16 = vpop.f32.mrb[36].mxu0 }
 0x12a   :  { %7687 = vst [vmem:[#allocation58_spill] sm:$0xff] %v5697_v47  ;;  %v5704_v11 = vpop.eup %4606  ;;  %v1396_v54 = vpack.c.bf16 %v1324_v50, %v1316_v13  ;;  %4630 = vtanh.f32 %v657_v17  ;;  %v1178_v7 = vrot.slane %v5695_v4, %v5356_v28  ;;  %v5718_v13 = vrot.slane %v1166_v2, %v5353_v27  ;;  %v662_v31 = vpop.f32.mrb[36].mxu1 }
 0x12b   :  { %7688 = vst [vmem:[#allocation59_spill] sm:$0xff] %v5704_v11  ;;  %v5709_v32 = vpop.eup %4608  ;;  %v1398_v59 = vpack.c.bf16 %v1326_v35, %v1318_v34  ;;  %4632 = vtanh.f32 %v546_v12  ;;  %v550_v63 = vadd.f32 %v549_v16, %v5335_v5  ;;  %v551_v43 = vpop.f32.mrb[37].mxu0  ;;  %v5726_v22 = vrot.slane %v1170_v10, %v5353_v27 }
 0x12c   :  { %7689 = vst [vmem:[#allocation60_spill] sm:$0xff] %v5709_v32  ;;  %v5713_v46 = vpop.eup %4610  ;;  %1488 = vmatprep.subr.bf16.mxu0 %v1396_v54  ;;  %v1331_v54 = vmul.f32 %v5697_v47, %v5397_v61  ;;  %4634 = vtanh.f32 %v659_v48  ;;  %v663_v28 = vadd.f32 %v662_v31, %v5335_v5  ;;  %v552_v2 = vadd.f32 %v551_v43, %v5335_v5  ;;  %v664_v50 = vpop.f32.mrb[37].mxu1 }
 0x12d   :  { %7690 = vst [vmem:[#allocation61_spill] sm:$0xff] %v5713_v46  ;;  %v5720_v39 = vpop.eup %4612  ;;  %1601 = vmatprep.subr.bf16.mxu1 %v1398_v59  ;;  %1489 = vmatpush1.bf16.msra.mxu0 %v1395_v19  ;;  %v553_v23 = vpop.f32.mrb[38].mxu0  ;;  %v1332_v4 = vmul.f32 %v5709_v32, %v5394_v60  ;;  %4636 = vtanh.f32 %v550_v63  ;;  %v665_v34 = vadd.f32 %v664_v50, %v5335_v5 }
 0x12e   :  { %7691 = vst [vmem:[#allocation62_spill] sm:$0xff] %v5720_v39  ;;  %v5728_v17 = vpop.eup %4614  ;;  %1602 = vmatpush1.bf16.msra.mxu1 %v1397_v0  ;;  %v554_v10 = vadd.f32 %v553_v23, %v5358_v29  ;;  %v666_v35 = vpop.f32.mrb[38].mxu1  ;;  %v1339_v48 = vmul.f32 %v5720_v39, %v5397_v61  ;;  %4638 = vtanh.f32 %v663_v28  ;;  %v1334_v61 = vmul.f32 %v5713_v46, %v5377_v51 }
 0x12f   :  { %7692 = vst [vmem:[#allocation63_spill] sm:$0xff] %v5728_v17  ;;  %v5734_v12 = vpop.eup %4616  ;;  %v555_v59 = vpop.f32.mrb[39].mxu0  ;;  %v667_v19 = vadd.f32 %v666_v35, %v5358_v29  ;;  %v1341_v63 = vmul.f32 %v5728_v17, %v5380_v52  ;;  %4640 = vtanh.f32 %v552_v2  ;;  %v1333_v35 = vmul.f32 %v5704_v11, %v5380_v52 }
 0x130   :  { %7693 = vst [vmem:[#allocation64_spill] sm:$0xff] %v5734_v12  ;;  %v5740_v0 = vpop.eup %4618  ;;  %v668_v16 = vpop.f32.mrb[39].mxu1  ;;  %v1340_v31 = vmul.f32 %v5734_v12, %v5394_v60  ;;  %v556_v43 = vadd.f32 %v555_v59, %v5358_v29  ;;  %4642 = vtanh.f32 %v665_v34  ;;  %v1403_v59 = vpack.c.bf16 %v1339_v48, %v1331_v54  ;;  %v5766_v34 = vld [vmem:[%s7379_s5 + $0x40] sm:$0xff]  }
 0x131   :  { %7694 = vst [vmem:[#allocation65_spill] sm:$0xff] %v5740_v0  ;;  %v5747_v5 = vpop.eup %4620  ;;  %v1342_v28 = vmul.f32 %v5740_v0, %v5377_v51  ;;  %v669_v23 = vadd.f32 %v668_v16, %v5358_v29  ;;  %4644 = vtanh.f32 %v554_v10  ;;  %v1405_v39 = vpack.c.bf16 %v1341_v63, %v1333_v35  ;;  %v559_v51 = vpop.f32.mrb[40].mxu0 }
 0x132   :  { %7695 = vst [vmem:[#allocation66_spill] sm:$0xff] %v5747_v5  ;;  %v5754_v50 = vpop.eup %4622  ;;  %v1404_v60 = vpack.c.bf16 %v1340_v31, %v1332_v4  ;;  %4646 = vtanh.f32 %v667_v19  ;;  %v5769_v29 = vrot.slane %v1174_v25, %v5353_v27  ;;  %v560_v54 = vadd.f32 %v559_v51, %v5387_v56  ;;  %v672_v4 = vpop.f32.mrb[40].mxu1 }
 0x133   :  { %7696 = vst [vmem:[#allocation67_spill] sm:$0xff] %v5754_v50  ;;  %v5759_v47 = vpop.eup %4624  ;;  %v1406_v2 = vpack.c.bf16 %v1342_v28, %v1334_v61  ;;  %4648 = vtanh.f32 %v556_v43  ;;  %v561_v10 = vpop.f32.mrb[41].mxu0  ;;  %v5775_v48 = vrot.slane %v1178_v7, %v5353_v27  ;;  %v1223_v19 = vmul.f32 %v5747_v5, %v5718_v13 }
 0x134   :  { %7697 = vst [vmem:[#allocation68_spill] sm:$0xff] %v5759_v47  ;;  %v5761_v17 = vpop.eup %4626  ;;  %1490 = vmatprep.subr.bf16.mxu0 %v1404_v60  ;;  %4650 = vtanh.f32 %v669_v23  ;;  %v673_v25 = vadd.f32 %v672_v4, %v5387_v56  ;;  %v562_v31 = vadd.f32 %v561_v10, %v5387_v56  ;;  %v674_v63 = vpop.f32.mrb[41].mxu1  ;;  %v1224_v61 = vmul.f32 %v5759_v47, %v5726_v22 }
 0x135   :  { %7698 = vst [vmem:[#allocation69_spill] sm:$0xff] %v5761_v17  ;;  %v5771_v52 = vpop.eup %4628  ;;  %1603 = vmatprep.subr.bf16.mxu1 %v1406_v2  ;;  %1491 = vmatpush1.bf16.msra.mxu0 %v1403_v59  ;;  %v563_v43 = vpop.f32.mrb[42].mxu0  ;;  %4652 = vtanh.f32 %v560_v54  ;;  %v675_v27 = vadd.f32 %v674_v63, %v5387_v56  ;;  %v1226_v10 = vmul.f32 %v5761_v17, %v5775_v48  ;;  %v7702_v63 = vmov 0  }
 0x136   :  { %7699 = vst [vmem:[#allocation70_spill] sm:$0xff] %v5771_v52  ;;  %v5779_v16 = vpop.eup %4630  ;;  %1604 = vmatpush1.bf16.msra.mxu1 %v1405_v39  ;;  %v564_v7 = vadd.f32 %v563_v43, %v5391_v58  ;;  %v676_v60 = vpop.f32.mrb[42].mxu1  ;;  %v1231_v39 = vmul.f32 %v5771_v52, %v5718_v13  ;;  %4654 = vtanh.f32 %v673_v25 }
 0x137   :  { %7700 = vst [vmem:[#allocation71_spill] sm:$0xff] %v5779_v16  ;;  %v5785_v28 = vpop.eup %4632  ;;  %v565_v35 = vpop.f32.mrb[43].mxu0  ;;  %v677_v2 = vadd.f32 %v676_v60, %v5391_v58  ;;  %v1233_v56 = vmul.f32 %v5779_v16, %v5769_v29  ;;  %4656 = vtanh.f32 %v562_v31  ;;  %v1225_v31 = vmul.f32 %v5754_v50, %v5769_v29 }
 0x138   :  { %v5791_v23 = vpop.eup %4634  ;;  %1509 = vmatmul.mubr.bf16.vlgmr.msra.gmra.mrb[64].mxu0 %v5766_v34  ;;  %v678_v59 = vpop.f32.mrb[43].mxu1  ;;  %v1232_v51 = vmul.f32 %v5785_v28, %v5726_v22  ;;  %v566_v4 = vadd.f32 %v565_v35, %v5391_v58  ;;  %4658 = vtanh.f32 %v675_v27  ;;  %v1351_v52 = vpack.c.bf16 %v1231_v39, %v1223_v19 }
 0x139   :  { %v5799_v54 = vpop.eup %4636  ;;  %1622 = vmatmul.mubr.bf16.vlgmr.msra.gmra.mrb[64].mxu1 %v5766_v34  ;;  %v1234_v25 = vmul.f32 %v5791_v23, %v5775_v48  ;;  %1518 = vmatprep.mubr.bf16.mxu0 %v7702_v63  ;;  %v679_v60 = vadd.f32 %v678_v59, %v5391_v58  ;;  %4660 = vtanh.f32 %v564_v7  ;;  %v1353_v47 = vpack.c.bf16 %v1233_v56, %v1225_v31  ;;  %v569_v11 = vpop.f32.mrb[44].mxu0  ;;  %v5821_v58 = vld [vmem:[%s7379_s5 + $0x48] sm:$0xff]  }
 0x13a   :  { %7701 = vst [vmem:[#allocation72_spill] sm:$0xff] %v5799_v54  ;;  %v5808_v43 = vpop.eup %4638  ;;  %v1352_v5 = vpack.c.bf16 %v1232_v51, %v1224_v61  ;;  %1631 = vmatprep.mubr.bf16.mxu1 %v7702_v63  ;;  %4662 = vtanh.f32 %v677_v2  ;;  %v570_v27 = vadd.f32 %v569_v11, %v5437_v38  ;;  %v682_v7 = vpop.f32.mrb[44].mxu1  ;;  %v1239_v39 = vmul.f32 %v5799_v54, %v5718_v13 }
 0x13b   :  { %7703 = vst [vmem:[#allocation73_spill] sm:$0xff] %v5808_v43  ;;  %v5814_v35 = vpop.eup %4640  ;;  %v1354_v16 = vpack.c.bf16 %v1234_v25, %v1226_v10  ;;  %4664 = vtanh.f32 %v566_v4  ;;  %v571_v19 = vpop.f32.mrb[45].mxu0  ;;  %v683_v2 = vadd.f32 %v682_v7, %v5437_v38 }
 0x13c   :  { %7704 = vst [vmem:[#allocation74_spill] sm:$0xff] %v5814_v35  ;;  %v5816_v17 = vpop.eup %4642  ;;  %1702 = vmatprep.subr.bf16.mxu0 %v1352_v5  ;;  %4666 = vtanh.f32 %v679_v60  ;;  %v572_v59 = vadd.f32 %v571_v19, %v5437_v38  ;;  %v684_v51 = vpop.f32.mrb[45].mxu1 }
 0x13d   :  { %7705 = vst [vmem:[#allocation75_spill] sm:$0xff] %v5816_v17  ;;  %v5823_v61 = vpop.eup %4644  ;;  %1815 = vmatprep.subr.bf16.mxu1 %v1354_v16  ;;  %1703 = vmatpush1.bf16.msra.mxu0 %v1351_v52  ;;  %v573_v56 = vpop.f32.mrb[46].mxu0  ;;  %v1240_v52 = vmul.f32 %v5814_v35, %v5726_v22  ;;  %4668 = vtanh.f32 %v570_v27  ;;  %v685_v11 = vadd.f32 %v684_v51, %v5437_v38 }
 0x13e   :  { %7706 = vst [vmem:[#allocation76_spill] sm:$0xff] %v5823_v61  ;;  %v5828_v5 = vpop.eup %4646  ;;  %1816 = vmatpush1.bf16.msra.mxu1 %v1353_v47  ;;  %v574_v4 = vadd.f32 %v573_v56, %v5441_v42  ;;  %v686_v10 = vpop.f32.mrb[46].mxu1  ;;  %v1247_v47 = vmul.f32 %v5823_v61, %v5718_v13  ;;  %4670 = vtanh.f32 %v683_v2  ;;  %v1242_v2 = vmul.f32 %v5816_v17, %v5775_v48 }
 0x13f   :  { %7707 = vst [vmem:[#allocation77_spill] sm:$0xff] %v5828_v5  ;;  %v5834_v16 = vpop.eup %4648  ;;  %v575_v25 = vpop.f32.mrb[47].mxu0  ;;  %v687_v31 = vadd.f32 %v686_v10, %v5441_v42  ;;  %v1249_v38 = vmul.f32 %v5828_v5, %v5769_v29  ;;  %4672 = vtanh.f32 %v572_v59  ;;  %v1241_v59 = vmul.f32 %v5808_v43, %v5769_v29 }
 0x140   :  { %7708 = vst [vmem:[#allocation78_spill] sm:$0xff] %v5834_v16  ;;  %v5840_v60 = vpop.eup %4650  ;;  %1519 = vmatmul.mubr.bf16.gmra.mrb[68].mxu0 %v5821_v58  ;;  %v688_v7 = vpop.f32.mrb[47].mxu1  ;;  %v1248_v27 = vmul.f32 %v5834_v16, %v5726_v22  ;;  %v576_v51 = vadd.f32 %v575_v25, %v5441_v42  ;;  %4674 = vtanh.f32 %v685_v11  ;;  %v1359_v17 = vpack.c.bf16 %v1247_v47, %v1239_v39 }
 0x141   :  { %7709 = vst [vmem:[#allocation79_spill] sm:$0xff] %v5840_v60  ;;  %v5848_v19 = vpop.eup %4652  ;;  %1632 = vmatmul.mubr.bf16.gmra.mrb[68].mxu1 %v5821_v58  ;;  %v1250_v56 = vmul.f32 %v5840_v60, %v5775_v48  ;;  %1528 = vmatprep.mubr.bf16.mxu0 %v7702_v63  ;;  %v689_v54 = vadd.f32 %v688_v7, %v5441_v42  ;;  %4676 = vtanh.f32 %v574_v4  ;;  %v579_v60 = vpop.f32.mrb[48].mxu0  ;;  %v5870_v42 = vld [vmem:[%s7379_s5 + $0x50] sm:$0xff]  }
 0x142   :  { %7710 = vst [vmem:[#allocation80_spill] sm:$0xff] %v5848_v19  ;;  %v5857_v10 = vpop.eup %4654  ;;  %v1360_v5 = vpack.c.bf16 %v1248_v27, %v1240_v52  ;;  %1641 = vmatprep.mubr.bf16.mxu1 %v7702_v63  ;;  %4678 = vtanh.f32 %v687_v31  ;;  %v1361_v50 = vpack.c.bf16 %v1249_v38, %v1241_v59  ;;  %v580_v11 = vadd.f32 %v579_v60, %v5481_v36  ;;  %v692_v4 = vpop.f32.mrb[48].mxu1 }
 0x143   :  { %7711 = vst [vmem:[#allocation81_spill] sm:$0xff] %v5857_v10  ;;  %v5863_v25 = vpop.eup %4656  ;;  %v1362_v61 = vpack.c.bf16 %v1250_v56, %v1242_v2  ;;  %4680 = vtanh.f32 %v576_v51  ;;  %v581_v39 = vpop.f32.mrb[49].mxu0  ;;  %v1255_v47 = vmul.f32 %v5848_v19, %v5718_v13  ;;  %v693_v31 = vadd.f32 %v692_v4, %v5481_v36 }
 0x144   :  { %7712 = vst [vmem:[#allocation82_spill] sm:$0xff] %v5863_v25  ;;  %v5865_v35 = vpop.eup %4658  ;;  %1704 = vmatprep.subr.bf16.mxu0 %v1360_v5  ;;  %4682 = vtanh.f32 %v689_v54  ;;  %v582_v7 = vadd.f32 %v581_v39, %v5481_v36  ;;  %v694_v27 = vpop.f32.mrb[49].mxu1 }
 0x145   :  { %7713 = vst [vmem:[#allocation83_spill] sm:$0xff] %v5865_v35  ;;  %v5872_v52 = vpop.eup %4660  ;;  %1817 = vmatprep.subr.bf16.mxu1 %v1362_v61  ;;  %1705 = vmatpush1.bf16.msra.mxu0 %v1359_v17  ;;  %v583_v38 = vpop.f32.mrb[50].mxu0  ;;  %v1256_v17 = vmul.f32 %v5863_v25, %v5726_v22  ;;  %4684 = vtanh.f32 %v580_v11  ;;  %v695_v60 = vadd.f32 %v694_v27, %v5481_v36 }
 0x146   :  { %7714 = vst [vmem:[#allocation84_spill] sm:$0xff] %v5872_v52  ;;  %v5877_v5 = vpop.eup %4662  ;;  %1818 = vmatpush1.bf16.msra.mxu1 %v1361_v50  ;;  %v584_v51 = vadd.f32 %v583_v38, %v5485_v45  ;;  %v696_v2 = vpop.f32.mrb[50].mxu1  ;;  %v1263_v50 = vmul.f32 %v5872_v52, %v5718_v13  ;;  %4686 = vtanh.f32 %v693_v31  ;;  %v1258_v31 = vmul.f32 %v5865_v35, %v5775_v48 }
 0x147   :  { %7715 = vst [vmem:[#allocation85_spill] sm:$0xff] %v5877_v5  ;;  %v5883_v61 = vpop.eup %4664  ;;  %v585_v56 = vpop.f32.mrb[51].mxu0  ;;  %v697_v59 = vadd.f32 %v696_v2, %v5485_v45  ;;  %v1265_v36 = vmul.f32 %v5877_v5, %v5769_v29  ;;  %4688 = vtanh.f32 %v582_v7  ;;  %v1257_v7 = vmul.f32 %v5857_v10, %v5769_v29 }
 0x148   :  { %7716 = vst [vmem:[#allocation86_spill] sm:$0xff] %v5883_v61  ;;  %v5889_v54 = vpop.eup %4666  ;;  %1529 = vmatmul.mubr.bf16.gmra.mrb[72].mxu0 %v5870_v42  ;;  %v698_v4 = vpop.f32.mrb[51].mxu1  ;;  %v1264_v11 = vmul.f32 %v5883_v61, %v5726_v22  ;;  %v586_v27 = vadd.f32 %v585_v56, %v5485_v45  ;;  %4690 = vtanh.f32 %v695_v60  ;;  %v1367_v35 = vpack.c.bf16 %v1263_v50, %v1255_v47 }
 0x149   :  { %7717 = vst [vmem:[#allocation87_spill] sm:$0xff] %v5889_v54  ;;  %v5897_v39 = vpop.eup %4668  ;;  %1642 = vmatmul.mubr.bf16.gmra.mrb[72].mxu1 %v5870_v42  ;;  %v1266_v38 = vmul.f32 %v5889_v54, %v5775_v48  ;;  %1538 = vmatprep.mubr.bf16.mxu0 %v7702_v63  ;;  %v699_v19 = vadd.f32 %v698_v4, %v5485_v45  ;;  %4692 = vtanh.f32 %v584_v51  ;;  %v589_v54 = vpop.f32.mrb[52].mxu0  ;;  %v5919_v45 = vld [vmem:[%s7379_s5 + $0x58] sm:$0xff]  }
 0x14a   :  { %7718 = vst [vmem:[#allocation88_spill] sm:$0xff] %v5897_v39  ;;  %v5906_v2 = vpop.eup %4670  ;;  %v1368_v5 = vpack.c.bf16 %v1264_v11, %v1256_v17  ;;  %1651 = vmatprep.mubr.bf16.mxu1 %v7702_v63  ;;  %4694 = vtanh.f32 %v697_v59  ;;  %v1369_v43 = vpack.c.bf16 %v1265_v36, %v1257_v7  ;;  %v590_v60 = vadd.f32 %v589_v54, %v5525_v18  ;;  %v702_v51 = vpop.f32.mrb[52].mxu1 }
 0x14b   :  { %7719 = vst [vmem:[#allocation89_spill] sm:$0xff] %v5906_v2  ;;  %v5912_v56 = vpop.eup %4672  ;;  %v1370_v52 = vpack.c.bf16 %v1266_v38, %v1258_v31  ;;  %4696 = vtanh.f32 %v586_v27  ;;  %v591_v47 = vpop.f32.mrb[53].mxu0  ;;  %v1271_v50 = vmul.f32 %v5897_v39, %v5718_v13  ;;  %v703_v59 = vadd.f32 %v702_v51, %v5525_v18 }
 0x14c   :  { %7720 = vst [vmem:[#allocation90_spill] sm:$0xff] %v5912_v56  ;;  %v5914_v25 = vpop.eup %4674  ;;  %1706 = vmatprep.subr.bf16.mxu0 %v1368_v5  ;;  %4698 = vtanh.f32 %v699_v19  ;;  %v592_v4 = vadd.f32 %v591_v47, %v5525_v18  ;;  %v704_v11 = vpop.f32.mrb[53].mxu1 }
 0x14d   :  { %7721 = vst [vmem:[#allocation91_spill] sm:$0xff] %v5914_v25  ;;  %v5921_v17 = vpop.eup %4676  ;;  %1819 = vmatprep.subr.bf16.mxu1 %v1370_v52  ;;  %1707 = vmatpush1.bf16.msra.mxu0 %v1367_v35  ;;  %v593_v36 = vpop.f32.mrb[54].mxu0  ;;  %v1272_v35 = vmul.f32 %v5912_v56, %v5726_v22  ;;  %4700 = vtanh.f32 %v590_v60  ;;  %v705_v54 = vadd.f32 %v704_v11, %v5525_v18 }
 0x14e   :  { %7722 = vst [vmem:[#allocation92_spill] sm:$0xff] %v5921_v17  ;;  %v5926_v5 = vpop.eup %4678  ;;  %1820 = vmatpush1.bf16.msra.mxu1 %v1369_v43  ;;  %v594_v27 = vadd.f32 %v593_v36, %v5529_v1  ;;  %v706_v31 = vpop.f32.mrb[54].mxu1  ;;  %v1279_v43 = vmul.f32 %v5921_v17, %v5718_v13  ;;  %4702 = vtanh.f32 %v703_v59  ;;  %v1274_v59 = vmul.f32 %v5914_v25, %v5775_v48 }
 0x14f   :  { %7723 = vst [vmem:[#allocation93_spill] sm:$0xff] %v5926_v5  ;;  %v5932_v52 = vpop.eup %4680  ;;  %v595_v38 = vpop.f32.mrb[55].mxu0  ;;  %v707_v7 = vadd.f32 %v706_v31, %v5529_v1  ;;  %v1281_v18 = vmul.f32 %v5926_v5, %v5769_v29  ;;  %4704 = vtanh.f32 %v592_v4  ;;  %v1273_v4 = vmul.f32 %v5906_v2, %v5769_v29 }
 0x150   :  { %7724 = vst [vmem:[#allocation94_spill] sm:$0xff] %v5932_v52  ;;  %v5938_v19 = vpop.eup %4682  ;;  %1539 = vmatmul.mubr.bf16.gmra.mrb[76].mxu0 %v5919_v45  ;;  %v708_v51 = vpop.f32.mrb[55].mxu1  ;;  %v1280_v60 = vmul.f32 %v5932_v52, %v5726_v22  ;;  %v596_v11 = vadd.f32 %v595_v38, %v5529_v1  ;;  %4706 = vtanh.f32 %v705_v54  ;;  %v1375_v25 = vpack.c.bf16 %v1279_v43, %v1271_v50 }
 0x151   :  { %7725 = vst [vmem:[#allocation95_spill] sm:$0xff] %v5938_v19  ;;  %v5946_v47 = vpop.eup %4684  ;;  %1652 = vmatmul.mubr.bf16.gmra.mrb[76].mxu1 %v5919_v45  ;;  %v1282_v36 = vmul.f32 %v5938_v19, %v5775_v48  ;;  %1548 = vmatprep.mubr.bf16.mxu0 %v7702_v63  ;;  %v709_v39 = vadd.f32 %v708_v51, %v5529_v1  ;;  %4708 = vtanh.f32 %v594_v27  ;;  %v599_v19 = vpop.f32.mrb[56].mxu0  ;;  %v5968_v1 = vld [vmem:[%s7379_s5 + $0x60] sm:$0xff]  }
 0x152   :  { %7726 = vst [vmem:[#allocation96_spill] sm:$0xff] %v5946_v47  ;;  %v5955_v31 = vpop.eup %4686  ;;  %v1376_v5 = vpack.c.bf16 %v1280_v60, %v1272_v35  ;;  %1661 = vmatprep.mubr.bf16.mxu1 %v7702_v63  ;;  %4710 = vtanh.f32 %v707_v7  ;;  %v1377_v10 = vpack.c.bf16 %v1281_v18, %v1273_v4  ;;  %v600_v54 = vadd.f32 %v599_v19, %v5569_v40  ;;  %v712_v27 = vpop.f32.mrb[56].mxu1 }
 0x153   :  { %7727 = vst [vmem:[#allocation97_spill] sm:$0xff] %v5955_v31  ;;  %v5961_v38 = vpop.eup %4688  ;;  %v1378_v17 = vpack.c.bf16 %v1282_v36, %v1274_v59  ;;  %4712 = vtanh.f32 %v596_v11  ;;  %v601_v50 = vpop.f32.mrb[57].mxu0  ;;  %v1287_v43 = vmul.f32 %v5946_v47, %v5718_v13  ;;  %v713_v7 = vadd.f32 %v712_v27, %v5569_v40 }
 0x154   :  { %7728 = vst [vmem:[#allocation98_spill] sm:$0xff] %v5961_v38  ;;  %v5963_v56 = vpop.eup %4690  ;;  %1708 = vmatprep.subr.bf16.mxu0 %v1376_v5  ;;  %4714 = vtanh.f32 %v709_v39  ;;  %v602_v51 = vadd.f32 %v601_v50, %v5569_v40  ;;  %v714_v60 = vpop.f32.mrb[57].mxu1 }
 0x155   :  { %7729 = vst [vmem:[#allocation99_spill] sm:$0xff] %v5963_v56  ;;  %v5970_v35 = vpop.eup %4692  ;;  %1821 = vmatprep.subr.bf16.mxu1 %v1378_v17  ;;  %1709 = vmatpush1.bf16.msra.mxu0 %v1375_v25  ;;  %v603_v18 = vpop.f32.mrb[58].mxu0  ;;  %v1288_v25 = vmul.f32 %v5961_v38, %v5726_v22  ;;  %4716 = vtanh.f32 %v600_v54  ;;  %v715_v19 = vadd.f32 %v714_v60, %v5569_v40 }
 0x156   :  { %7730 = vst [vmem:[#allocation100_spill] sm:$0xff] %v5970_v35  ;;  %v5975_v5 = vpop.eup %4694  ;;  %1822 = vmatpush1.bf16.msra.mxu1 %v1377_v10  ;;  %v604_v11 = vadd.f32 %v603_v18, %v5573_v9  ;;  %v716_v59 = vpop.f32.mrb[58].mxu1  ;;  %v1295_v10 = vmul.f32 %v5970_v35, %v5718_v13  ;;  %4718 = vtanh.f32 %v713_v7  ;;  %v1290_v7 = vmul.f32 %v5963_v56, %v5775_v48 }
 0x157   :  { %7731 = vst [vmem:[#allocation101_spill] sm:$0xff] %v5975_v5  ;;  %v5981_v17 = vpop.eup %4696  ;;  %v605_v36 = vpop.f32.mrb[59].mxu0  ;;  %v717_v4 = vadd.f32 %v716_v59, %v5573_v9  ;;  %v1297_v40 = vmul.f32 %v5975_v5, %v5769_v29  ;;  %4720 = vtanh.f32 %v602_v51  ;;  %v1289_v51 = vmul.f32 %v5955_v31, %v5769_v29 }
 0x158   :  { %7732 = vst [vmem:[#allocation102_spill] sm:$0xff] %v5981_v17  ;;  %v5987_v39 = vpop.eup %4698  ;;  %1549 = vmatmul.mubr.bf16.gmra.mrb[80].mxu0 %v5968_v1  ;;  %v718_v27 = vpop.f32.mrb[59].mxu1  ;;  %v1296_v54 = vmul.f32 %v5981_v17, %v5726_v22  ;;  %v606_v60 = vadd.f32 %v605_v36, %v5573_v9  ;;  %4722 = vtanh.f32 %v715_v19  ;;  %v1383_v56 = vpack.c.bf16 %v1295_v10, %v1287_v43 }
 0x159   :  { %7733 = vst [vmem:[#allocation103_spill] sm:$0xff] %v5987_v39  ;;  %v5995_v50 = vpop.eup %4700  ;;  %1662 = vmatmul.mubr.bf16.gmra.mrb[80].mxu1 %v5968_v1  ;;  %v1298_v18 = vmul.f32 %v5987_v39, %v5775_v48  ;;  %1558 = vmatprep.mubr.bf16.mxu0 %v7702_v63  ;;  %v719_v47 = vadd.f32 %v718_v27, %v5573_v9  ;;  %4724 = vtanh.f32 %v604_v11  ;;  %v609_v39 = vpop.f32.mrb[60].mxu0  ;;  %v6017_v9 = vld [vmem:[%s7379_s5 + $0x68] sm:$0xff]  }
 0x15a   :  { %7734 = vst [vmem:[#allocation104_spill] sm:$0xff] %v5995_v50  ;;  %v6004_v59 = vpop.eup %4702  ;;  %v1384_v5 = vpack.c.bf16 %v1296_v54, %v1288_v25  ;;  %1671 = vmatprep.mubr.bf16.mxu1 %v7702_v63  ;;  %4726 = vtanh.f32 %v717_v4  ;;  %v1385_v2 = vpack.c.bf16 %v1297_v40, %v1289_v51  ;;  %v610_v19 = vadd.f32 %v609_v39, %v5613_v30  ;;  %v722_v11 = vpop.f32.mrb[60].mxu1 }
 0x15b   :  { %7735 = vst [vmem:[#allocation105_spill] sm:$0xff] %v6004_v59  ;;  %v6010_v36 = vpop.eup %4704  ;;  %v1386_v35 = vpack.c.bf16 %v1298_v18, %v1290_v7  ;;  %4728 = vtanh.f32 %v606_v60  ;;  %v611_v43 = vpop.f32.mrb[61].mxu0  ;;  %v1303_v10 = vmul.f32 %v5995_v50, %v5718_v13  ;;  %v723_v4 = vadd.f32 %v722_v11, %v5613_v30 }
 0x15c   :  { %7736 = vst [vmem:[#allocation106_spill] sm:$0xff] %v6010_v36  ;;  %v6012_v38 = vpop.eup %4706  ;;  %1710 = vmatprep.subr.bf16.mxu0 %v1384_v5  ;;  %4730 = vtanh.f32 %v719_v47  ;;  %v612_v27 = vadd.f32 %v611_v43, %v5613_v30  ;;  %v724_v54 = vpop.f32.mrb[61].mxu1 }
 0x15d   :  { %7737 = vst [vmem:[#allocation107_spill] sm:$0xff] %v6012_v38  ;;  %v6019_v25 = vpop.eup %4708  ;;  %1823 = vmatprep.subr.bf16.mxu1 %v1386_v35  ;;  %1711 = vmatpush1.bf16.msra.mxu0 %v1383_v56  ;;  %v613_v40 = vpop.f32.mrb[62].mxu0  ;;  %v1304_v56 = vmul.f32 %v6010_v36, %v5726_v22  ;;  %4732 = vtanh.f32 %v610_v19  ;;  %v725_v39 = vadd.f32 %v724_v54, %v5613_v30 }
 0x15e   :  { %7738 = vst [vmem:[#allocation108_spill] sm:$0xff] %v6019_v25  ;;  %v6024_v5 = vpop.eup %4710  ;;  %1824 = vmatpush1.bf16.msra.mxu1 %v1385_v2  ;;  %v614_v60 = vadd.f32 %v613_v40, %v5617_v24  ;;  %v726_v7 = vpop.f32.mrb[62].mxu1  ;;  %v1311_v2 = vmul.f32 %v6019_v25, %v5718_v13  ;;  %4734 = vtanh.f32 %v723_v4  ;;  %v1306_v4 = vmul.f32 %v6012_v38, %v5775_v48 }
 0x15f   :  { %7739 = vst [vmem:[#allocation109_spill] sm:$0xff] %v6024_v5  ;;  %v6030_v35 = vpop.eup %4712  ;;  %v615_v18 = vpop.f32.mrb[63].mxu0  ;;  %v727_v51 = vadd.f32 %v726_v7, %v5617_v24  ;;  %v1313_v30 = vmul.f32 %v6024_v5, %v5769_v29  ;;  %4736 = vtanh.f32 %v612_v27  ;;  %v1305_v27 = vmul.f32 %v6004_v59, %v5769_v29 }
 0x160   :  { %7740 = vst [vmem:[#allocation110_spill] sm:$0xff] %v6030_v35  ;;  %v6036_v47 = vpop.eup %4714  ;;  %1559 = vmatmul.mubr.bf16.gmra.mrb[84].mxu0 %v6017_v9  ;;  %v728_v11 = vpop.f32.mrb[63].mxu1  ;;  %v1312_v19 = vmul.f32 %v6030_v35, %v5726_v22  ;;  %v616_v54 = vadd.f32 %v615_v18, %v5617_v24  ;;  %4738 = vtanh.f32 %v725_v39  ;;  %v1391_v38 = vpack.c.bf16 %v1311_v2, %v1303_v10  ;;  %v6085_v2 = vld [vmem:[%s7375_s1 + $0x8] sm:$0x77] }
 0x161   :  { %7741 = vst [vmem:[#allocation111_spill] sm:$0xff] %v6036_v47  ;;  %v6044_v43 = vpop.eup %4716  ;;  %1672 = vmatmul.mubr.bf16.gmra.mrb[84].mxu1 %v6017_v9  ;;  %v1314_v40 = vmul.f32 %v6036_v47, %v5775_v48  ;;  %1568 = vmatprep.mubr.bf16.mxu0 %v7702_v63  ;;  %v729_v50 = vadd.f32 %v728_v11, %v5617_v24  ;;  %4740 = vtanh.f32 %v614_v60  ;;  %v6066_v24 = vld [vmem:[%s7379_s5 + $0x70] sm:$0xff]   ;;  %v6074_v11 = vsub.s32 0, %v5344_v21 }
 0x162   :  { %7742 = vst [vmem:[#allocation112_spill] sm:$0xff] %v6044_v43  ;;  %v6053_v7 = vpop.eup %4718  ;;  %v1392_v5 = vpack.c.bf16 %v1312_v19, %v1304_v56  ;;  %1681 = vmatprep.mubr.bf16.mxu1 %v7702_v63  ;;  %4742 = vtanh.f32 %v727_v51  ;;  %v1393_v31 = vpack.c.bf16 %v1313_v30, %v1305_v27  ;;  %v6069_v56 = vsub.s32 4, %v5344_v21  ;;  %7749 = vst [vmem:[#allocation119_spill] sm:$0xff] %v6085_v2  ;;  %v6103_v30 = vld [vmem:[%s7375_s1] sm:$0x77] }
 0x163   :  { %7743 = vst [vmem:[#allocation113_spill] sm:$0xff] %v6053_v7  ;;  %v6059_v18 = vpop.eup %4720  ;;  %v1394_v25 = vpack.c.bf16 %v1314_v40, %v1306_v4  ;;  %4744 = vtanh.f32 %v616_v54  ;;  %v1321_v59 = vmul.f32 %v6053_v7, %v5769_v29 }
 0x164   :  { %7744 = vst [vmem:[#allocation114_spill] sm:$0xff] %v6059_v18  ;;  %v6061_v36 = vpop.eup %4722  ;;  %1712 = vmatprep.subr.bf16.mxu0 %v1392_v5  ;;  %4746 = vtanh.f32 %v729_v50  ;;  %v882_v51 = vrot.slane %v6085_v2, %v6069_v56  ;;  %v874_v54 = vrot.slane %v6103_v30, %v6069_v56 }
 0x165   :  { %7745 = vst [vmem:[#allocation115_spill] sm:$0xff] %v6061_v36  ;;  %v6071_v39 = vpop.eup %4724  ;;  %1825 = vmatprep.subr.bf16.mxu1 %v1394_v25  ;;  %1713 = vmatpush1.bf16.msra.mxu0 %v1391_v38  ;;  %v878_v38 = vrot.slane %v6085_v2, %v6074_v11  ;;  %v1322_v40 = vmul.f32 %v6061_v36, %v5775_v48 }
 0x166   :  { %7746 = vst [vmem:[#allocation116_spill] sm:$0xff] %v6071_v39  ;;  %v6076_v10 = vpop.eup %4726  ;;  %1826 = vmatpush1.bf16.msra.mxu1 %v1393_v31  ;;  %v1327_v60 = vmul.f32 %v6071_v39, %v5718_v13  ;;  %v1320_v31 = vmul.f32 %v6059_v18, %v5726_v22  ;;  %v6127_v47 = vrot.slane %v882_v51, %v6074_v11 }
 0x167   :  { %7747 = vst [vmem:[#allocation117_spill] sm:$0xff] %v6076_v10  ;;  %v6078_v5 = vpop.eup %4728  ;;  %v1329_v19 = vmul.f32 %v6076_v10, %v5769_v29  ;;  %v1319_v10 = vmul.f32 %v6044_v43, %v5718_v13  ;;  %v6130_v43 = vrot.slane %v878_v38, %v6074_v11 }
 0x168   :  { %7748 = vst [vmem:[#allocation118_spill] sm:$0xff] %v6078_v5  ;;  %v6091_v25 = vpop.eup %4730  ;;  %1569 = vmatmul.mubr.bf16.gmra.mrb[88].mxu0 %v6066_v24  ;;  %v1328_v50 = vmul.f32 %v6078_v5, %v5726_v22  ;;  %v870_v5 = vrot.slane %v6103_v30, %v6074_v11 }
 0x169   :  { %7750 = vst [vmem:[#allocation120_spill] sm:$0xff] %v6091_v25  ;;  %v6107_v4 = vpop.eup %4732  ;;  %1682 = vmatmul.mubr.bf16.gmra.mrb[88].mxu1 %v6066_v24  ;;  %v1330_v27 = vmul.f32 %v6091_v25, %v5775_v48  ;;  %1578 = vmatprep.mubr.bf16.mxu0 %v7702_v63  ;;  %v1399_v25 = vpack.c.bf16 %v1327_v60, %v1319_v10 }
 0x16a   :  { %v6117_v39 = vpop.eup %4734  ;;  %v1400_v18 = vpack.c.bf16 %v1328_v50, %v1320_v31  ;;  %1691 = vmatprep.mubr.bf16.mxu1 %v7702_v63  ;;  %v1401_v31 = vpack.c.bf16 %v1329_v19, %v1321_v59  ;;  %v6137_v50 = vld [vmem:[%s7379_s5 + $0x78] sm:$0xff]   ;;  %v6142_v10 = vrot.slane %v874_v54, %v6074_v11  ;;  %v6147_v51 = vrot.slane %v870_v5, %v6074_v11 }
 0x16b   :  { %v6124_v36 = vpop.eup %4736  ;;  %v1402_v2 = vpack.c.bf16 %v1330_v27, %v1322_v40  ;;  %v950_v27 = vmul.f32 %v5418_v20, %v6127_v47 }
 0x16c   :  { %v6132_v35 = vpop.eup %4738  ;;  %1714 = vmatprep.subr.bf16.mxu0 %v1400_v18  ;;  %v948_v38 = vmul.f32 %v5412_v14, %v6142_v10  ;;  %v1336_v5 = vmul.f32 %v6124_v36, %v5726_v22  ;;  %v940_v20 = vmul.f32 %v5385_v55, %v6142_v10  ;;  %v947_v14 = vmul.f32 %v5399_v62, %v6147_v51 }
 0x16d   :  { %7751 = vst [vmem:[#allocation121_spill] sm:$0xff] %v6132_v35  ;;  %v6139_v7 = vpop.eup %4740  ;;  %1827 = vmatprep.subr.bf16.mxu1 %v1402_v2  ;;  %1715 = vmatpush1.bf16.msra.mxu0 %v1399_v25  ;;  %v942_v2 = vmul.f32 %v5389_v57, %v6127_v47  ;;  %v941_v25 = vmul.f32 %v5382_v53, %v6130_v43 }
 0x16e   :  { %7752 = vst [vmem:[#allocation122_spill] sm:$0xff] %v6139_v7  ;;  %v6144_v60 = vpop.eup %4742  ;;  %1828 = vmatpush1.bf16.msra.mxu1 %v1401_v31  ;;  %v1343_v59 = vmul.f32 %v6139_v7, %v5718_v13  ;;  %v1338_v31 = vmul.f32 %v6132_v35, %v5775_v48  ;;  %v1335_v57 = vmul.f32 %v6107_v4, %v5718_v13 }
 0x16f   :  { %7753 = vst [vmem:[#allocation123_spill] sm:$0xff] %v6144_v60  ;;  %v6149_v18 = vpop.eup %4744  ;;  %v1345_v40 = vmul.f32 %v6144_v60, %v5769_v29  ;;  %v1337_v60 = vmul.f32 %v6117_v39, %v5769_v29  ;;  %v964_v13 = vmul.f32 %v5456_v3, %v6142_v10  ;;  %v1070_v29 = vpack.c.bf16 %v950_v27, %v942_v2  ;;  %v7756_v2 = vld [vmem:[#allocation16_spill] sm:$0xff] }
 0x170   :  { %7754 = vst [vmem:[#allocation124_spill] sm:$0xff] %v6149_v18  ;;  %v6159_v19 = vpop.eup %4746  ;;  %1579 = vmatmul.mubr.bf16.gmra.mrb[92].mxu0 %v6137_v50  ;;  %v1344_v54 = vmul.f32 %v6149_v18, %v5726_v22  ;;  %v1407_v35 = vpack.c.bf16 %v1343_v59, %v1335_v57  ;;  %v939_v55 = vmul.f32 %v5373_v49, %v6147_v51  ;;  %v7757_v27 = vld [vmem:[#allocation24_spill] sm:$0xff] }
 0x171   :  { %7755 = vst [vmem:[#allocation125_spill] sm:$0xff] %v6159_v19  ;;  %1692 = vmatmul.mubr.bf16.gmra.mrb[92].mxu1 %v6137_v50  ;;  %v1346_v53 = vmul.f32 %v6159_v19, %v5775_v48  ;;  %1734 = vmatprep.mubr.bf16.mxu0 %v7702_v63  ;;  %v949_v48 = vmul.f32 %v5406_v6, %v6130_v43 }
 0x172   :  { %v1408_v22 = vpack.c.bf16 %v1344_v54, %v1336_v5  ;;  %1847 = vmatprep.mubr.bf16.mxu1 %v7702_v63  ;;  %v1409_v5 = vpack.c.bf16 %v1345_v40, %v1337_v60  ;;  %v1068_v54 = vpack.c.bf16 %v948_v38, %v940_v20  ;;  %v956_v62 = vmul.f32 %v5435_v37, %v6142_v10 }
 0x173   :  { %v1410_v7 = vpack.c.bf16 %v1346_v53, %v1338_v31  ;;  %v958_v53 = vmul.f32 %v5439_v41, %v6127_v47  ;;  %v966_v57 = vmul.f32 %v5462_v15, %v6127_v47  ;;  %v1067_v59 = vpack.c.bf16 %v947_v14, %v939_v55  ;;  %v7758_v14 = vld [vmem:[#allocation21_spill] sm:$0xff] }
 0x174   :  { %1716 = vmatprep.subr.bf16.mxu0 %v1408_v22  ;;  %v963_v20 = vmul.f32 %v5443_v44, %v6147_v51  ;;  %v1069_v60 = vpack.c.bf16 %v949_v48, %v941_v25  ;;  %v1076_v38 = vpack.c.bf16 %v964_v13, %v956_v62  ;;  %v965_v40 = vmul.f32 %v7756_v2, %v6130_v43  ;;  %v7759_v25 = vld [vmem:[#allocation25_spill] sm:$0xff]  ;;  %v7760_v13 = vld [vmem:[#allocation20_spill] sm:$0xff] }
 0x175   :  { %1829 = vmatprep.subr.bf16.mxu1 %v1410_v7  ;;  %1717 = vmatpush1.bf16.msra.mxu0 %v1407_v35  ;;  %v955_v35 = vmul.f32 %v5425_v26, %v6147_v51  ;;  %v957_v7 = vmul.f32 %v5432_v33, %v6130_v43  ;;  %v980_v55 = vmul.f32 %v7757_v27, %v6142_v10 }
 0x176   :  { %1830 = vmatpush1.bf16.msra.mxu1 %v1409_v5  ;;  %1976 = vmatprep.subr.bf16.mxu0 %v1068_v54  ;;  %v974_v31 = vmul.f32 %v7758_v14, %v6127_v47  ;;  %v982_v62 = vmul.f32 %v7759_v25, %v6127_v47  ;;  %v1078_v22 = vpack.c.bf16 %v966_v57, %v958_v53  ;;  %v7761_v54 = vld [vmem:[#allocation22_spill] sm:$0xff]  ;;  %v7762_v14 = vld [vmem:[#allocation19_spill] sm:$0xff]  ;;  %v7764_v53 = vld [vmem:[#allocation32_spill] sm:$0xff] }
 0x177   :  { %2089 = vmatprep.subr.bf16.mxu1 %v1070_v29  ;;  %v1075_v48 = vpack.c.bf16 %v963_v20, %v955_v35  ;;  %v972_v5 = vmul.f32 %v7760_v13, %v6142_v10  ;;  %v979_v29 = vmul.f32 %v7761_v54, %v6147_v51  ;;  %v973_v27 = vmul.f32 %v7762_v14, %v6130_v43  ;;  %v7763_v25 = vld [vmem:[#allocation23_spill] sm:$0xff]  ;;  %v7767_v14 = vld [vmem:[#allocation29_spill] sm:$0xff] }
 0x178   :  { %1735 = vmatmul.mubr.bf16.vlgmr.msra.gmra.mrb[96].mxu0 %v5766_v34  ;;  %v996_v57 = vmul.f32 %v7764_v53, %v6142_v10  ;;  %v990_v13 = vmul.f32 %v7767_v14, %v6127_v47 }
 0x179   :  { %1848 = vmatmul.mubr.bf16.vlgmr.msra.gmra.mrb[96].mxu1 %v5766_v34  ;;  %1977 = vmatpush1.bf16.msra.mxu0 %v1067_v59  ;;  %v981_v34 = vmul.f32 %v7763_v25, %v6130_v43  ;;  %v1077_v59 = vpack.c.bf16 %v965_v40, %v957_v7  ;;  %v1084_v20 = vpack.c.bf16 %v980_v55, %v972_v5  ;;  %v7768_v25 = vld [vmem:[#allocation33_spill] sm:$0xff]  ;;  %v7769_v7 = vld [vmem:[#allocation30_spill] sm:$0xff] }
 0x17a   :  { %2090 = vmatpush1.bf16.msra.mxu1 %v1069_v60  ;;  %1978 = vmatprep.subr.bf16.mxu0 %v1076_v38  ;;  %v1086_v60 = vpack.c.bf16 %v982_v62, %v974_v31  ;;  %v7765_v38 = vld [vmem:[#allocation18_spill] sm:$0xff]  ;;  %v998_v2 = vmul.f32 %v7768_v25, %v6127_v47  ;;  %v995_v40 = vmul.f32 %v7769_v7, %v6147_v51 }
 0x17b   :  { %2091 = vmatprep.subr.bf16.mxu1 %v1078_v22  ;;  %1744 = vmatprep.mubr.bf16.mxu0 %v7702_v63  ;;  %v971_v35 = vmul.f32 %v7765_v38, %v6147_v51  ;;  %v7766_v22 = vld [vmem:[#allocation28_spill] sm:$0xff]  ;;  %v1085_v31 = vpack.c.bf16 %v981_v34, %v973_v27  ;;  %v7772_v38 = vld [vmem:[#allocation31_spill] sm:$0xff]  ;;  %v7774_v27 = vld [vmem:[#allocation41_spill] sm:$0xff] }
 0x17c   :  { %1857 = vmatprep.mubr.bf16.mxu1 %v7702_v63  ;;  %v988_v54 = vmul.f32 %v7766_v22, %v6142_v10  ;;  %v7771_v22 = vld [vmem:[#allocation27_spill] sm:$0xff]  ;;  %v997_v25 = vmul.f32 %v7772_v38, %v6130_v43 }
 0x17d   :  { %1979 = vmatpush1.bf16.msra.mxu0 %v1075_v48  ;;  %v1083_v55 = vpack.c.bf16 %v979_v29, %v971_v35  ;;  %v7770_v48 = vld [vmem:[#allocation26_spill] sm:$0xff]  ;;  %v989_v14 = vmul.f32 %v7771_v22, %v6130_v43  ;;  %v1094_v29 = vpack.c.bf16 %v998_v2, %v990_v13  ;;  %v7776_v35 = vld [vmem:[#allocation37_spill] sm:$0xff]  ;;  %v7778_v2 = vld [vmem:[#allocation39_spill] sm:$0xff] }
 0x17e   :  { %2092 = vmatpush1.bf16.msra.mxu1 %v1077_v59  ;;  %1980 = vmatprep.subr.bf16.mxu0 %v1084_v20  ;;  %v1092_v62 = vpack.c.bf16 %v996_v57, %v988_v54  ;;  %v987_v5 = vmul.f32 %v7770_v48, %v6147_v51  ;;  %v7773_v59 = vld [vmem:[#allocation40_spill] sm:$0xff]  ;;  %v1014_v54 = vmul.f32 %v7774_v27, %v6127_v47 }
 0x17f   :  { %2093 = vmatprep.subr.bf16.mxu1 %v1086_v60  ;;  %v1012_v20 = vmul.f32 %v7773_v59, %v6142_v10  ;;  %v7775_v57 = vld [vmem:[#allocation36_spill] sm:$0xff]  ;;  %v1006_v48 = vmul.f32 %v7776_v35, %v6127_v47  ;;  %v7777_v59 = vld [vmem:[#allocation38_spill] sm:$0xff]  ;;  %v1013_v13 = vmul.f32 %v7778_v2, %v6130_v43  ;;  %v7781_v35 = vld [vmem:[#allocation35_spill] sm:$0xff] }
 0x180   :  { %1745 = vmatmul.mubr.bf16.gmra.mrb[100].mxu0 %v5821_v58  ;;  %v1091_v34 = vpack.c.bf16 %v995_v40, %v987_v5  ;;  %v1004_v60 = vmul.f32 %v7775_v57, %v6142_v10  ;;  %v7779_v40 = vld [vmem:[#allocation48_spill] sm:$0xff]  ;;  %v7780_v5 = vld [vmem:[#allocation34_spill] sm:$0xff]  ;;  %v1005_v57 = vmul.f32 %v7781_v35, %v6130_v43 }
 0x181   :  { %1858 = vmatmul.mubr.bf16.gmra.mrb[100].mxu1 %v5821_v58  ;;  %1981 = vmatpush1.bf16.msra.mxu0 %v1083_v55  ;;  %v1011_v58 = vmul.f32 %v7777_v59, %v6147_v51  ;;  %v1093_v55 = vpack.c.bf16 %v997_v25, %v989_v14  ;;  %v7782_v59 = vld [vmem:[#allocation49_spill] sm:$0xff]  ;;  %v7783_v14 = vld [vmem:[#allocation44_spill] sm:$0xff] }
 0x182   :  { %2094 = vmatpush1.bf16.msra.mxu1 %v1085_v31  ;;  %1982 = vmatprep.subr.bf16.mxu0 %v1092_v62  ;;  %v1100_v27 = vpack.c.bf16 %v1012_v20, %v1004_v60  ;;  %v1028_v31 = vmul.f32 %v7779_v40, %v6142_v10  ;;  %v1102_v62 = vpack.c.bf16 %v1014_v54, %v1006_v48  ;;  %v7784_v20 = vld [vmem:[#allocation46_spill] sm:$0xff]  ;;  %v7785_v54 = vld [vmem:[#allocation45_spill] sm:$0xff] }
 0x183   :  { %2095 = vmatprep.subr.bf16.mxu1 %v1094_v29  ;;  %1754 = vmatprep.mubr.bf16.mxu0 %v7702_v63  ;;  %v1003_v29 = vmul.f32 %v7780_v5, %v6147_v51  ;;  %v1030_v38 = vmul.f32 %v7782_v59, %v6127_v47  ;;  %v1020_v25 = vmul.f32 %v7783_v14, %v6142_v10  ;;  %v7786_v40 = vld [vmem:[#allocation42_spill] sm:$0xff]  ;;  %v7788_v14 = vld [vmem:[#allocation56_spill] sm:$0xff] }
 0x184   :  { %1867 = vmatprep.mubr.bf16.mxu1 %v7702_v63  ;;  %v1027_v60 = vmul.f32 %v7784_v20, %v6147_v51  ;;  %v1101_v48 = vpack.c.bf16 %v1013_v13, %v1005_v57  ;;  %v1022_v5 = vmul.f32 %v7785_v54, %v6127_v47  ;;  %v1019_v59 = vmul.f32 %v7786_v40, %v6147_v51  ;;  %v7789_v57 = vld [vmem:[#allocation43_spill] sm:$0xff] }
 0x185   :  { %1983 = vmatpush1.bf16.msra.mxu0 %v1091_v34  ;;  %v1099_v34 = vpack.c.bf16 %v1011_v58, %v1003_v29  ;;  %v1108_v35 = vpack.c.bf16 %v1028_v31, %v1020_v25  ;;  %v1044_v2 = vmul.f32 %v7788_v14, %v6142_v10  ;;  %v1021_v13 = vmul.f32 %v7789_v57, %v6130_v43  ;;  %v7791_v25 = vld [vmem:[#allocation52_spill] sm:$0xff]  ;;  %v6288_v14 = vld [vmem:[%s7375_s1 + $0x10] sm:$0x77] }
 0x186   :  { %2096 = vmatpush1.bf16.msra.mxu1 %v1093_v55  ;;  %1984 = vmatprep.subr.bf16.mxu0 %v1100_v27  ;;  %v7787_v27 = vld [vmem:[#allocation47_spill] sm:$0xff]  ;;  %v1110_v58 = vpack.c.bf16 %v1030_v38, %v1022_v5  ;;  %v1107_v31 = vpack.c.bf16 %v1027_v60, %v1019_v59  ;;  %v1036_v40 = vmul.f32 %v7791_v25, %v6142_v10  ;;  %v7792_v38 = vld [vmem:[#allocation53_spill] sm:$0xff]  ;;  %v7795_v57 = vld [vmem:[#allocation50_spill] sm:$0xff] }
 0x187   :  { %2097 = vmatprep.subr.bf16.mxu1 %v1102_v62  ;;  %v1029_v55 = vmul.f32 %v7787_v27, %v6130_v43  ;;  %v7790_v62 = vld [vmem:[#allocation57_spill] sm:$0xff]  ;;  %v1038_v5 = vmul.f32 %v7792_v38, %v6127_v47  ;;  %v6300_v60 = vld [vmem:[%s7375_s1 + $0x18] sm:$0x77]  ;;  %v1035_v27 = vmul.f32 %v7795_v57, %v6147_v51  ;;  %v1062_v54 = vmul.f32 %v5740_v0, %v6127_v47 }
 0x188   :  { %1755 = vmatmul.mubr.bf16.gmra.mrb[104].mxu0 %v5870_v42  ;;  %v1046_v29 = vmul.f32 %v7790_v62, %v6127_v47  ;;  %v1116_v25 = vpack.c.bf16 %v1044_v2, %v1036_v40  ;;  %v1060_v62 = vmul.f32 %v5734_v12, %v6142_v10  ;;  %v1052_v2 = vmul.f32 %v5709_v32, %v6142_v10  ;;  %v7797_v10 = vld [vmem:[#allocation63_spill] sm:$0xff] }
 0x189   :  { %1868 = vmatmul.mubr.bf16.gmra.mrb[104].mxu1 %v5870_v42  ;;  %1985 = vmatpush1.bf16.msra.mxu0 %v1099_v34  ;;  %v890_v42 = vrot.slane %v6288_v14, %v6069_v56  ;;  %v898_v34 = vrot.slane %v6300_v60, %v6069_v56  ;;  %v1037_v56 = vmul.f32 %v5655_v8, %v6130_v43 }
 0x18a   :  { %2098 = vmatpush1.bf16.msra.mxu1 %v1101_v48  ;;  %1986 = vmatprep.subr.bf16.mxu0 %v1108_v35  ;;  %v7793_v35 = vld [vmem:[#allocation54_spill] sm:$0xff]  ;;  %v1109_v48 = vpack.c.bf16 %v1029_v55, %v1021_v13  ;;  %v1054_v13 = vmul.f32 %v5713_v46, %v6127_v47  ;;  %v1061_v32 = vmul.f32 %v7797_v10, %v6130_v43 }
 0x18b   :  { %2099 = vmatprep.subr.bf16.mxu1 %v1110_v58  ;;  %1764 = vmatprep.mubr.bf16.mxu0 %v7702_v63  ;;  %v1043_v59 = vmul.f32 %v7793_v35, %v6147_v51  ;;  %v7794_v58 = vld [vmem:[#allocation55_spill] sm:$0xff]  ;;  %v1118_v35 = vpack.c.bf16 %v1046_v29, %v1038_v5  ;;  %v6318_v40 = vrot.slane %v890_v42, %v6074_v11  ;;  %v7796_v29 = vld [vmem:[#allocation62_spill] sm:$0xff] }
 0x18c   :  { %1877 = vmatprep.mubr.bf16.mxu1 %v7702_v63  ;;  %v1045_v38 = vmul.f32 %v7794_v58, %v6130_v43  ;;  %v6325_v5 = vrot.slane %v898_v34, %v6074_v11  ;;  %v1126_v47 = vpack.c.bf16 %v1062_v54, %v1054_v13  ;;  %v7800_v34 = vld [vmem:[#allocation68_spill] sm:$0xff] }
 0x18d   :  { %1987 = vmatpush1.bf16.msra.mxu0 %v1107_v31  ;;  %v1115_v55 = vpack.c.bf16 %v1043_v59, %v1035_v27  ;;  %v1059_v31 = vmul.f32 %v7796_v29, %v6147_v51  ;;  %v952_v42 = vmul.f32 %v5785_v28, %v6318_v40  ;;  %v7798_v27 = vld [vmem:[#allocation58_spill] sm:$0xff] }
 0x18e   :  { %2100 = vmatpush1.bf16.msra.mxu1 %v1109_v48  ;;  %1988 = vmatprep.subr.bf16.mxu0 %v1116_v25  ;;  %v1117_v25 = vpack.c.bf16 %v1045_v38, %v1037_v56  ;;  %v1124_v48 = vpack.c.bf16 %v1060_v62, %v1052_v2  ;;  %v954_v59 = vmul.f32 %v5791_v23, %v6325_v5  ;;  %v7799_v62 = vld [vmem:[#allocation59_spill] sm:$0xff] }
 0x18f   :  { %2101 = vmatprep.subr.bf16.mxu1 %v1118_v35  ;;  %v1051_v35 = vmul.f32 %v7798_v27, %v6147_v51  ;;  %v1053_v38 = vmul.f32 %v7799_v62, %v6130_v43  ;;  %v944_v56 = vmul.f32 %v7800_v34, %v6318_v40  ;;  %v7841_v34 = vld [vmem:[#allocation118_spill] sm:$0xff] }
 0x190   :  { %1765 = vmatmul.mubr.bf16.gmra.mrb[108].mxu0 %v5919_v45 }
 0x191   :  { %1878 = vmatmul.mubr.bf16.gmra.mrb[108].mxu1 %v5919_v45  ;;  %1989 = vmatpush1.bf16.msra.mxu0 %v1115_v55  ;;  %v1123_v2 = vpack.c.bf16 %v1059_v31, %v1051_v35  ;;  %v7801_v45 = vld [vmem:[#allocation69_spill] sm:$0xff]  ;;  %v1125_v54 = vpack.c.bf16 %v1061_v32, %v1053_v38  ;;  %v1072_v51 = vpack.c.bf16 %v952_v42, %v944_v56  ;;  %v7806_v38 = vld [vmem:[#allocation67_spill] sm:$0xff] }
 0x192   :  { %2102 = vmatpush1.bf16.msra.mxu1 %v1117_v25  ;;  %1990 = vmatprep.subr.bf16.mxu0 %v1124_v48  ;;  %v946_v55 = vmul.f32 %v7801_v45, %v6325_v5  ;;  %v886_v32 = vrot.slane %v6288_v14, %v6074_v11  ;;  %v6376_v25 = vld [vmem:[%s7379_s5] sm:$0xff]   ;;  %v968_v42 = vmul.f32 %v5834_v16, %v6318_v40 }
 0x193   :  { %2103 = vmatprep.subr.bf16.mxu1 %v1126_v47  ;;  %1774 = vmatprep.mubr.bf16.mxu0 %v7702_v63  ;;  %v7804_v47 = vld [vmem:[#allocation66_spill] sm:$0xff] }
 0x194   :  { %1887 = vmatprep.mubr.bf16.mxu1 %v7702_v63  ;;  %v1074_v13 = vpack.c.bf16 %v954_v59, %v946_v55 }
 0x195   :  { %1991 = vmatpush1.bf16.msra.mxu0 %v1123_v2  ;;  %v7807_v2 = vld [vmem:[#allocation74_spill] sm:$0xff] }
 0x196   :  { %2104 = vmatpush1.bf16.msra.mxu1 %v1125_v54  ;;  %2202 = vmatprep.subr.bf16.mxu0 %v1072_v51  ;;  %v960_v55 = vmul.f32 %v7807_v2, %v6318_v40  ;;  %v7808_v51 = vld [vmem:[#allocation75_spill] sm:$0xff] }
 0x197   :  { %2315 = vmatprep.subr.bf16.mxu1 %v1074_v13  ;;  %v962_v13 = vmul.f32 %v7808_v51, %v6325_v5  ;;  %v7812_v2 = vld [vmem:[#allocation87_spill] sm:$0xff] }
 0x198   :  { %1775 = vmatmul.mubr.bf16.gmra.mrb[112].mxu0 %v5968_v1 }
 0x199   :  { %1888 = vmatmul.mubr.bf16.gmra.mrb[112].mxu1 %v5968_v1  ;;  %1784 = vmatprep.mubr.bf16.mxu0 %v7702_v63  ;;  %v894_v1 = vrot.slane %v6300_v60, %v6074_v11 }
 0x19a   :  { %1897 = vmatprep.mubr.bf16.mxu1 %v7702_v63 }
 0x19b   :  { %v6369_v43 = vrot.slane %v894_v1, %v6074_v11 }
 0x19d   :  { %v945_v56 = vmul.f32 %v7806_v38, %v6369_v43  ;;  %v984_v38 = vmul.f32 %v5883_v61, %v6318_v40 }
 0x1a0   :  { %1785 = vmatmul.mubr.bf16.gmra.mrb[116].mxu0 %v6017_v9 }
 0x1a1   :  { %1898 = vmatmul.mubr.bf16.gmra.mrb[116].mxu1 %v6017_v9  ;;  %1794 = vmatprep.mubr.bf16.mxu0 %v7702_v63  ;;  %v6365_v9 = vrot.slane %v886_v32, %v6074_v11  ;;  %v7805_v11 = vld [vmem:[#allocation79_spill] sm:$0xff]  ;;  %v7809_v32 = vld [vmem:[#allocation76_spill] sm:$0xff] }
 0x1a2   :  { %1907 = vmatprep.mubr.bf16.mxu1 %v7702_v63  ;;  %v970_v59 = vmul.f32 %v7805_v11, %v6325_v5 }
 0x1a3   :  { %v943_v35 = vmul.f32 %v7804_v47, %v6365_v9  ;;  %v967_v1 = vmul.f32 %v7809_v32, %v6365_v9  ;;  %v1080_v47 = vpack.c.bf16 %v968_v42, %v960_v55  ;;  %v986_v32 = vmul.f32 %v7812_v2, %v6325_v5 }
 0x1a8   :  { %1795 = vmatmul.mubr.bf16.gmra.mrb[120].mxu0 %v6066_v24 }
 0x1a9   :  { %1908 = vmatmul.mubr.bf16.gmra.mrb[120].mxu1 %v6066_v24  ;;  %1804 = vmatprep.mubr.bf16.mxu0 %v7702_v63  ;;  %v7802_v24 = vld [vmem:[#allocation70_spill] sm:$0xff] }
 0x1aa   :  { %1917 = vmatprep.mubr.bf16.mxu1 %v7702_v63  ;;  %v951_v31 = vmul.f32 %v7802_v24, %v6365_v9 }
 0x1ac   :  { %v1071_v54 = vpack.c.bf16 %v951_v31, %v943_v35  ;;  %v1082_v31 = vpack.c.bf16 %v970_v59, %v962_v13  ;;  %v7811_v35 = vld [vmem:[#allocation72_spill] sm:$0xff] }
 0x1ad   :  { %v959_v51 = vmul.f32 %v7811_v35, %v6365_v9  ;;  %v7816_v59 = vld [vmem:[#allocation84_spill] sm:$0xff] }
 0x1ae   :  { %v983_v13 = vmul.f32 %v7816_v59, %v6365_v9 }
 0x1af   :  { %v1079_v61 = vpack.c.bf16 %v967_v1, %v959_v51  ;;  %v1000_v1 = vmul.f32 %v5932_v52, %v6318_v40  ;;  %v7822_v52 = vld [vmem:[#allocation91_spill] sm:$0xff] }
 0x1b0   :  { %1805 = vmatmul.mubr.bf16.gmra.mrb[124].mxu0 %v6137_v50 }
 0x1b1   :  { %1918 = vmatmul.mubr.bf16.gmra.mrb[124].mxu1 %v6137_v50  ;;  %2008 = vmatprep.mubr.bf16.mxu0 %v7702_v63  ;;  %v7803_v50 = vld [vmem:[#allocation71_spill] sm:$0xff] }
 0x1b2   :  { %2121 = vmatprep.mubr.bf16.mxu1 %v7702_v63  ;;  %v953_v48 = vmul.f32 %v7803_v50, %v6369_v43  ;;  %v7810_v50 = vld [vmem:[#allocation77_spill] sm:$0xff] }
 0x1b3   :  { %v969_v11 = vmul.f32 %v7810_v50, %v6369_v43  ;;  %v7815_v50 = vld [vmem:[#allocation83_spill] sm:$0xff] }
 0x1b4   :  { %v1073_v16 = vpack.c.bf16 %v953_v48, %v945_v56  ;;  %v7813_v48 = vld [vmem:[#allocation73_spill] sm:$0xff]  ;;  %v7814_v56 = vld [vmem:[#allocation82_spill] sm:$0xff] }
 0x1b5   :  { %v961_v42 = vmul.f32 %v7813_v48, %v6369_v43  ;;  %v976_v55 = vmul.f32 %v7814_v56, %v6318_v40  ;;  %v7821_v56 = vld [vmem:[#allocation90_spill] sm:$0xff] }
 0x1b6   :  { %v992_v48 = vmul.f32 %v7821_v56, %v6318_v40 }
 0x1b7   :  { %v1081_v35 = vpack.c.bf16 %v969_v11, %v961_v42  ;;  %v1088_v2 = vpack.c.bf16 %v984_v38, %v976_v55  ;;  %v7819_v11 = vld [vmem:[#allocation95_spill] sm:$0xff]  ;;  %v7820_v42 = vld [vmem:[#allocation81_spill] sm:$0xff] }
 0x1b8   :  { %2009 = vmatmul.mubr.bf16.vlgmr.msra.gmra.mrb[64].mxu0 %v6376_v25  ;;  %v1002_v38 = vmul.f32 %v7819_v11, %v6325_v5  ;;  %v977_v55 = vmul.f32 %v7820_v42, %v6369_v43  ;;  %v1096_v11 = vpack.c.bf16 %v1000_v1, %v992_v48  ;;  %v1016_v42 = vmul.f32 %v5981_v17, %v6318_v40  ;;  %v7827_v48 = vld [vmem:[#allocation89_spill] sm:$0xff]  ;;  %v7828_v1 = vld [vmem:[#allocation98_spill] sm:$0xff] }
 0x1b9   :  { %2122 = vmatmul.mubr.bf16.vlgmr.msra.gmra.mrb[64].mxu1 %v6376_v25  ;;  %2203 = vmatpush1.bf16.msra.mxu0 %v1071_v54  ;;  %v978_v54 = vmul.f32 %v7815_v50, %v6325_v5  ;;  %v7818_v50 = vld [vmem:[#allocation80_spill] sm:$0xff]  ;;  %v6450_v17 = vsub.s32 6, %v5344_v21 }
 0x1ba   :  { %2316 = vmatpush1.bf16.msra.mxu1 %v1073_v16  ;;  %2204 = vmatprep.subr.bf16.mxu0 %v1080_v47  ;;  %v6417_v16 = vld [vmem:[%s7379_s5 + $0x8] sm:$0xff]   ;;  %v975_v59 = vmul.f32 %v7818_v50, %v6365_v9 }
 0x1bb   :  { %2317 = vmatprep.subr.bf16.mxu1 %v1082_v31  ;;  %2018 = vmatprep.mubr.bf16.mxu0 %v7702_v63  ;;  %v7817_v47 = vld [vmem:[#allocation85_spill] sm:$0xff]  ;;  %v1090_v31 = vpack.c.bf16 %v986_v32, %v978_v54  ;;  %v7823_v32 = vld [vmem:[#allocation92_spill] sm:$0xff] }
 0x1bc   :  { %2131 = vmatprep.mubr.bf16.mxu1 %v7702_v63  ;;  %v985_v51 = vmul.f32 %v7817_v47, %v6369_v43  ;;  %v1087_v47 = vpack.c.bf16 %v983_v13, %v975_v59  ;;  %v999_v54 = vmul.f32 %v7823_v32, %v6365_v9  ;;  %v7825_v13 = vld [vmem:[#allocation88_spill] sm:$0xff] }
 0x1bd   :  { %2205 = vmatpush1.bf16.msra.mxu0 %v1079_v61  ;;  %v994_v61 = vmul.f32 %v7822_v52, %v6325_v5  ;;  %v7826_v52 = vld [vmem:[#allocation103_spill] sm:$0xff] }
 0x1be   :  { %2318 = vmatpush1.bf16.msra.mxu1 %v1081_v35  ;;  %2206 = vmatprep.subr.bf16.mxu0 %v1088_v2  ;;  %v1089_v50 = vpack.c.bf16 %v985_v51, %v977_v55  ;;  %v7824_v2 = vld [vmem:[#allocation93_spill] sm:$0xff]  ;;  %v1018_v32 = vmul.f32 %v7826_v52, %v6325_v5  ;;  %v993_v51 = vmul.f32 %v7827_v48, %v6369_v43  ;;  %v7830_v52 = vld [vmem:[#allocation100_spill] sm:$0xff] }
 0x1bf   :  { %2319 = vmatprep.subr.bf16.mxu1 %v1090_v31  ;;  %v1001_v35 = vmul.f32 %v7824_v2, %v6369_v43  ;;  %v1098_v59 = vpack.c.bf16 %v1002_v38, %v994_v61  ;;  %v991_v31 = vmul.f32 %v7825_v13, %v6365_v9  ;;  %v1008_v55 = vmul.f32 %v7828_v1, %v6318_v40  ;;  %v7829_v38 = vld [vmem:[#allocation99_spill] sm:$0xff]  ;;  %v7833_v2 = vld [vmem:[#allocation96_spill] sm:$0xff] }
 0x1c0   :  { %2019 = vmatmul.mubr.bf16.gmra.mrb[68].mxu0 %v6417_v16  ;;  %v1010_v61 = vmul.f32 %v7829_v38, %v6325_v5  ;;  %v6461_v1 = vld [vmem:[%s7379_s5 + $0x10] sm:$0xff]  }
 0x1c1   :  { %2132 = vmatmul.mubr.bf16.gmra.mrb[68].mxu1 %v6417_v16  ;;  %2207 = vmatpush1.bf16.msra.mxu0 %v1087_v47  ;;  %v1095_v47 = vpack.c.bf16 %v999_v54, %v991_v31  ;;  %v1104_v13 = vpack.c.bf16 %v1016_v42, %v1008_v55  ;;  %v7832_v31 = vld [vmem:[#allocation110_spill] sm:$0xff]  ;;  %v7834_v42 = vld [vmem:[#allocation111_spill] sm:$0xff]  ;;  %v7835_v55 = vld [vmem:[#allocation97_spill] sm:$0xff] }
 0x1c2   :  { %2320 = vmatpush1.bf16.msra.mxu1 %v1089_v50  ;;  %2208 = vmatprep.subr.bf16.mxu0 %v1096_v11  ;;  %v1015_v50 = vmul.f32 %v7830_v52, %v6365_v9  ;;  %v1097_v11 = vpack.c.bf16 %v1001_v35, %v993_v51  ;;  %v1032_v38 = vmul.f32 %v7832_v31, %v6318_v40  ;;  %v6472_v51 = vsub.s32 2, %v5344_v21 }
 0x1c3   :  { %2321 = vmatprep.subr.bf16.mxu1 %v1098_v59  ;;  %2028 = vmatprep.mubr.bf16.mxu0 %v7702_v63  ;;  %v7831_v59 = vld [vmem:[#allocation101_spill] sm:$0xff]  ;;  %v1106_v48 = vpack.c.bf16 %v1018_v32, %v1010_v61  ;;  %v1007_v52 = vmul.f32 %v7833_v2, %v6365_v9  ;;  %v1034_v35 = vmul.f32 %v7834_v42, %v6325_v5  ;;  %v7837_v61 = vld [vmem:[#allocation107_spill] sm:$0xff]  ;;  %v7838_v42 = vld [vmem:[#allocation108_spill] sm:$0xff] }
 0x1c4   :  { %2141 = vmatprep.mubr.bf16.mxu1 %v7702_v63  ;;  %v1017_v54 = vmul.f32 %v7831_v59, %v6369_v43  ;;  %v1009_v56 = vmul.f32 %v7835_v55, %v6369_v43  ;;  %v7836_v59 = vld [vmem:[#allocation106_spill] sm:$0xff]  ;;  %v2435_v32 = vrot.slane %v6103_v30, %v6450_v17  ;;  %v1026_v2 = vmul.f32 %v7837_v61, %v6325_v5  ;;  %v7843_v61 = vld [vmem:[#allocation120_spill] sm:$0xff] }
 0x1c5   :  { %2209 = vmatpush1.bf16.msra.mxu0 %v1095_v47  ;;  %v1024_v24 = vmul.f32 %v7836_v59, %v6318_v40  ;;  %v1103_v47 = vpack.c.bf16 %v1015_v50, %v1007_v52  ;;  %v1031_v21 = vmul.f32 %v7838_v42, %v6365_v9  ;;  %v7840_v59 = vld [vmem:[#allocation109_spill] sm:$0xff]  ;;  %v7842_v50 = vld [vmem:[#allocation104_spill] sm:$0xff]  ;;  %v1050_v62 = vmul.f32 %v7843_v61, %v6325_v5 }
 0x1c6   :  { %2322 = vmatpush1.bf16.msra.mxu1 %v1097_v11  ;;  %2210 = vmatprep.subr.bf16.mxu0 %v1104_v13  ;;  %v7839_v11 = vld [vmem:[#allocation119_spill] sm:$0xff]  ;;  %v1105_v55 = vpack.c.bf16 %v1017_v54, %v1009_v56  ;;  %v1033_v45 = vmul.f32 %v7840_v59, %v6369_v43  ;;  %v1114_v52 = vpack.c.bf16 %v1034_v35, %v1026_v2  ;;  %v7847_v61 = vld [vmem:[#allocation116_spill] sm:$0xff] }
 0x1c7   :  { %2323 = vmatprep.subr.bf16.mxu1 %v1106_v48  ;;  %v2443_v13 = vrot.slane %v7839_v11, %v6450_v17  ;;  %v1112_v31 = vpack.c.bf16 %v1032_v38, %v1024_v24  ;;  %v1048_v48 = vmul.f32 %v7841_v34, %v6318_v40  ;;  %v1023_v42 = vmul.f32 %v7842_v50, %v6365_v9  ;;  %v7844_v24 = vld [vmem:[#allocation105_spill] sm:$0xff]  ;;  %v7845_v38 = vld [vmem:[#allocation114_spill] sm:$0xff]  ;;  %v7846_v2 = vld [vmem:[#allocation115_spill] sm:$0xff] }
 0x1c8   :  { %2029 = vmatmul.mubr.bf16.gmra.mrb[72].mxu0 %v6461_v1  ;;  %v1025_v56 = vmul.f32 %v7844_v24, %v6369_v43  ;;  %v1040_v54 = vmul.f32 %v7845_v38, %v6318_v40  ;;  %v6501_v34 = vrot.slane %v2435_v32, %v6472_v51  ;;  %v1042_v35 = vmul.f32 %v7846_v2, %v6325_v5  ;;  %v6512_v38 = vld [vmem:[%s7379_s5 + $0x18] sm:$0xff]   ;;  %v7848_v32 = vld [vmem:[#allocation117_spill] sm:$0xff] }
 0x1c9   :  { %2142 = vmatmul.mubr.bf16.gmra.mrb[72].mxu1 %v6461_v1  ;;  %2211 = vmatpush1.bf16.msra.mxu0 %v1103_v47  ;;  %v1111_v47 = vpack.c.bf16 %v1031_v21, %v1023_v42  ;;  %v1049_v42 = vmul.f32 %v7848_v32, %v6369_v43  ;;  %v1064_v21 = vmul.f32 %v6149_v18, %v6318_v40  ;;  %v7849_v2 = vld [vmem:[#allocation112_spill] sm:$0xff] }
 0x1ca   :  { %2324 = vmatpush1.bf16.msra.mxu1 %v1105_v55  ;;  %2212 = vmatprep.subr.bf16.mxu0 %v1112_v31  ;;  %v1047_v55 = vmul.f32 %v7847_v61, %v6365_v9  ;;  %v1113_v31 = vpack.c.bf16 %v1033_v45, %v1025_v56  ;;  %v1120_v50 = vpack.c.bf16 %v1048_v48, %v1040_v54  ;;  %v7850_v56 = vld [vmem:[#allocation113_spill] sm:$0xff] }
 0x1cb   :  { %2325 = vmatprep.subr.bf16.mxu1 %v1114_v52  ;;  %2038 = vmatprep.mubr.bf16.mxu0 %v7702_v63  ;;  %v1122_v52 = vpack.c.bf16 %v1050_v62, %v1042_v35  ;;  %v1039_v61 = vmul.f32 %v7849_v2, %v6365_v9  ;;  %v1066_v45 = vmul.f32 %v6159_v19, %v6325_v5  ;;  %v7851_v62 = vld [vmem:[#allocation121_spill] sm:$0xff]  ;;  %v7852_v2 = vld [vmem:[#allocation122_spill] sm:$0xff] }
 0x1cc   :  { %2151 = vmatprep.mubr.bf16.mxu1 %v7702_v63  ;;  %v6523_v48 = vrot.slane %v2443_v13, %v6472_v51  ;;  %v1041_v54 = vmul.f32 %v7850_v56, %v6369_v43  ;;  %v1056_v32 = vmul.f32 %v6124_v36, %v6318_v40  ;;  %v1058_v35 = vmul.f32 %v7851_v62, %v6325_v5  ;;  %v7853_v19 = vld [vmem:[#allocation10_spill] sm:$0xff]  ;;  %v7854_v40 = vld [vmem:[#allocation123_spill] sm:$0xff] }
 0x1cd   :  { %2213 = vmatpush1.bf16.msra.mxu0 %v1111_v47  ;;  %v1119_v47 = vpack.c.bf16 %v1047_v55, %v1039_v61  ;;  %v1063_v18 = vmul.f32 %v7852_v2, %v6365_v9  ;;  %v2509_v13 = vmul.f32 %v7853_v19, %v6501_v34  ;;  %v1055_v56 = vmul.f32 %v6107_v4, %v6365_v9  ;;  %v7855_v61 = vld [vmem:[#allocation7_spill] sm:$0xff]  ;;  %v7857_v9 = vld [vmem:[#allocation6_spill] sm:$0xff] }
 0x1ce   :  { %2326 = vmatpush1.bf16.msra.mxu1 %v1113_v31  ;;  %2214 = vmatprep.subr.bf16.mxu0 %v1120_v50  ;;  %v1121_v50 = vpack.c.bf16 %v1049_v42, %v1041_v54  ;;  %v1128_v31 = vpack.c.bf16 %v1064_v21, %v1056_v32  ;;  %v1130_v5 = vpack.c.bf16 %v1066_v45, %v1058_v35  ;;  %v7856_v2 = vld [vmem:[#allocation11_spill] sm:$0xff] }
 0x1cf   :  { %2327 = vmatprep.subr.bf16.mxu1 %v1122_v52  ;;  %v1065_v52 = vmul.f32 %v7854_v40, %v6369_v43  ;;  %v2503_v55 = vmul.f32 %v7855_v61, %v6523_v48  ;;  %v2511_v19 = vmul.f32 %v7856_v2, %v6523_v48  ;;  %v1057_v32 = vmul.f32 %v6117_v39, %v6369_v43  ;;  %v6581_v43 = vld [vmem:[%s7379_s5 + $0x38] sm:$0xff]  }
 0x1d0   :  { %2039 = vmatmul.mubr.bf16.gmra.mrb[76].mxu0 %v6512_v38  ;;  %v2501_v42 = vmul.f32 %v7857_v9, %v6501_v34  ;;  %v1127_v21 = vpack.c.bf16 %v1063_v18, %v1055_v56  ;;  %v6563_v18 = vld [vmem:[%s7379_s5 + $0x28] sm:$0xff]   ;;  %v2439_v56 = vrot.slane %v7839_v11, %v6472_v51 }
 0x1d1   :  { %2152 = vmatmul.mubr.bf16.gmra.mrb[76].mxu1 %v6512_v38  ;;  %2215 = vmatpush1.bf16.msra.mxu0 %v1119_v47  ;;  %v1129_v54 = vpack.c.bf16 %v1065_v52, %v1057_v32  ;;  %v6554_v47 = vld [vmem:[%s7379_s5 + $0x20] sm:$0xff]   ;;  %v2631_v35 = vpack.c.bf16 %v2511_v19, %v2503_v55  ;;  %v6572_v19 = vld [vmem:[%s7379_s5 + $0x30] sm:$0xff]  }
 0x1d2   :  { %2328 = vmatpush1.bf16.msra.mxu1 %v1121_v50  ;;  %2216 = vmatprep.subr.bf16.mxu0 %v1128_v31  ;;  %v2629_v45 = vpack.c.bf16 %v2509_v13, %v2501_v42  ;;  %v2431_v13 = vrot.slane %v6103_v30, %v6472_v51  ;;  %v6589_v50 = vrot.slane %v2439_v56, %v6472_v51  ;;  %v7858_v52 = vld [vmem:[#allocation8_spill] sm:$0xff] }
 0x1d3   :  { %2329 = vmatprep.subr.bf16.mxu1 %v1130_v5  ;;  %2048 = vmatprep.mubr.bf16.mxu0 %v7702_v63  ;;  %v2525_v30 = vmul.f32 %v5456_v3, %v6501_v34  ;;  %v7859_v5 = vld [vmem:[#allocation5_spill] sm:$0xff] }
 0x1d4   :  { %2161 = vmatprep.mubr.bf16.mxu1 %v7702_v63  ;;  %v6594_v31 = vrot.slane %v2431_v13, %v6472_v51  ;;  %v2502_v55 = vmul.f32 %v7859_v5, %v6589_v50  ;;  %v2510_v32 = vmul.f32 %v5406_v6, %v6589_v50  ;;  %v2518_v5 = vmul.f32 %v5432_v33, %v6589_v50  ;;  %v7861_v6 = vld [vmem:[#allocation24_spill] sm:$0xff] }
 0x1d5   :  { %2217 = vmatpush1.bf16.msra.mxu0 %v1127_v21  ;;  %v2517_v21 = vmul.f32 %v5435_v37, %v6501_v34  ;;  %v7860_v37 = vld [vmem:[#allocation16_spill] sm:$0xff] }
 0x1d6   :  { %2330 = vmatpush1.bf16.msra.mxu1 %v1129_v54  ;;  %2757 = vmatprep.subr.bf16.mxu0 %v2629_v45  ;;  %v2508_v11 = vmul.f32 %v7858_v52, %v6594_v31  ;;  %v2500_v42 = vmul.f32 %v5373_v49, %v6594_v31  ;;  %v2519_v54 = vmul.f32 %v5439_v41, %v6523_v48 }
 0x1d7   :  { %2870 = vmatprep.subr.bf16.mxu1 %v2631_v35  ;;  %v2527_v45 = vmul.f32 %v5462_v15, %v6523_v48  ;;  %v2524_v35 = vmul.f32 %v5443_v44, %v6594_v31  ;;  %v2637_v13 = vpack.c.bf16 %v2525_v30, %v2517_v21  ;;  %v2516_v61 = vmul.f32 %v5425_v26, %v6594_v31  ;;  %v7862_v30 = vld [vmem:[#allocation21_spill] sm:$0xff] }
 0x1d8   :  { %2049 = vmatmul.mubr.bf16.gmra.mrb[80].mxu0 %v6554_v47  ;;  %v2628_v56 = vpack.c.bf16 %v2508_v11, %v2500_v42  ;;  %v2630_v2 = vpack.c.bf16 %v2510_v32, %v2502_v55  ;;  %v2526_v41 = vmul.f32 %v7860_v37, %v6589_v50  ;;  %v2541_v15 = vmul.f32 %v7861_v6, %v6501_v34  ;;  %v7863_v21 = vld [vmem:[#allocation25_spill] sm:$0xff]  ;;  %v7864_v32 = vld [vmem:[#allocation20_spill] sm:$0xff]  ;;  %v7865_v6 = vld [vmem:[#allocation22_spill] sm:$0xff] }
 0x1d9   :  { %2162 = vmatmul.mubr.bf16.gmra.mrb[80].mxu1 %v6554_v47  ;;  %2058 = vmatprep.mubr.bf16.mxu0 %v7702_v63  ;;  %v2639_v11 = vpack.c.bf16 %v2527_v45, %v2519_v54  ;;  %v2535_v42 = vmul.f32 %v7862_v30, %v6523_v48  ;;  %v2543_v26 = vmul.f32 %v7863_v21, %v6523_v48  ;;  %v7866_v54 = vld [vmem:[#allocation19_spill] sm:$0xff] }
 0x1da   :  { %2171 = vmatprep.mubr.bf16.mxu1 %v7702_v63  ;;  %v2636_v55 = vpack.c.bf16 %v2524_v35, %v2516_v61  ;;  %v2533_v33 = vmul.f32 %v7864_v32, %v6501_v34  ;;  %v2534_v45 = vmul.f32 %v7866_v54, %v6589_v50  ;;  %v2638_v37 = vpack.c.bf16 %v2526_v41, %v2518_v5  ;;  %v7868_v35 = vld [vmem:[#allocation18_spill] sm:$0xff]  ;;  %v7870_v54 = vld [vmem:[#allocation33_spill] sm:$0xff] }
 0x1db   :  { %v2647_v61 = vpack.c.bf16 %v2543_v26, %v2535_v42  ;;  %v2556_v26 = vmul.f32 %v7769_v7, %v6594_v31 }
 0x1dc   :  { %v2645_v21 = vpack.c.bf16 %v2541_v15, %v2533_v33  ;;  %v7871_v33 = vld [vmem:[#allocation28_spill] sm:$0xff] }
 0x1dd   :  { %v2549_v41 = vmul.f32 %v7871_v33, %v6501_v34 }
 0x1e0   :  { %2059 = vmatmul.mubr.bf16.gmra.mrb[84].mxu0 %v6563_v18 }
 0x1e1   :  { %2172 = vmatmul.mubr.bf16.gmra.mrb[84].mxu1 %v6563_v18  ;;  %2068 = vmatprep.mubr.bf16.mxu0 %v7702_v63 }
 0x1e2   :  { %2181 = vmatprep.mubr.bf16.mxu1 %v7702_v63 }
 0x1e8   :  { %2069 = vmatmul.mubr.bf16.gmra.mrb[88].mxu0 %v6572_v19 }
 0x1e9   :  { %2182 = vmatmul.mubr.bf16.gmra.mrb[88].mxu1 %v6572_v19  ;;  %2078 = vmatprep.mubr.bf16.mxu0 %v7702_v63 }
 0x1ea   :  { %2191 = vmatprep.mubr.bf16.mxu1 %v7702_v63 }
 0x1f0   :  { %2079 = vmatmul.mubr.bf16.gmra.mrb[92].mxu0 %v6581_v43 }
 0x1f1   :  { %2192 = vmatmul.mubr.bf16.gmra.mrb[92].mxu1 %v6581_v43  ;;  %2234 = vmatprep.mubr.bf16.mxu0 %v7702_v63 }
 0x1f2   :  { %2347 = vmatprep.mubr.bf16.mxu1 %v7702_v63 }
 0x1f8   :  { %2235 = vmatmul.mubr.bf16.vlgmr.msra.gmra.mrb[96].mxu0 %v6376_v25 }
 0x1f9   :  { %2348 = vmatmul.mubr.bf16.vlgmr.msra.gmra.mrb[96].mxu1 %v6376_v25  ;;  %2758 = vmatpush1.bf16.msra.mxu0 %v2628_v56  ;;  %v2540_v25 = vmul.f32 %v7865_v6, %v6594_v31  ;;  %v7867_v56 = vld [vmem:[#allocation23_spill] sm:$0xff]  ;;  %v2559_v6 = vmul.f32 %v7870_v54, %v6523_v48 }
 0x1fa   :  { %2871 = vmatpush1.bf16.msra.mxu1 %v2630_v2  ;;  %2759 = vmatprep.subr.bf16.mxu0 %v2637_v13  ;;  %v2542_v30 = vmul.f32 %v7867_v56, %v6589_v50  ;;  %v2557_v2 = vmul.f32 %v7764_v53, %v6501_v34  ;;  %v2532_v13 = vmul.f32 %v7868_v35, %v6594_v31 }
 0x1fb   :  { %2872 = vmatprep.subr.bf16.mxu1 %v2639_v11  ;;  %2244 = vmatprep.mubr.bf16.mxu0 %v7702_v63  ;;  %v7869_v11 = vld [vmem:[#allocation29_spill] sm:$0xff] }
 0x1fc   :  { %2357 = vmatprep.mubr.bf16.mxu1 %v7702_v63  ;;  %v2551_v32 = vmul.f32 %v7869_v11, %v6523_v48  ;;  %v2644_v15 = vpack.c.bf16 %v2540_v25, %v2532_v13  ;;  %v2646_v5 = vpack.c.bf16 %v2542_v30, %v2534_v45  ;;  %v2653_v42 = vpack.c.bf16 %v2557_v2, %v2549_v41  ;;  %v7872_v11 = vld [vmem:[#allocation31_spill] sm:$0xff]  ;;  %v7874_v30 = vld [vmem:[#allocation26_spill] sm:$0xff]  ;;  %v7876_v2 = vld [vmem:[#allocation36_spill] sm:$0xff] }
 0x1fd   :  { %2760 = vmatpush1.bf16.msra.mxu0 %v2636_v55  ;;  %v2550_v55 = vmul.f32 %v7771_v22, %v6589_v50  ;;  %v2558_v54 = vmul.f32 %v7872_v11, %v6589_v50  ;;  %v2548_v45 = vmul.f32 %v7874_v30, %v6594_v31  ;;  %v2565_v41 = vmul.f32 %v7876_v2, %v6501_v34  ;;  %v7877_v11 = vld [vmem:[#allocation37_spill] sm:$0xff] }
 0x1fe   :  { %2873 = vmatpush1.bf16.msra.mxu1 %v2638_v37  ;;  %2761 = vmatprep.subr.bf16.mxu0 %v2645_v21  ;;  %v7873_v37 = vld [vmem:[#allocation40_spill] sm:$0xff]  ;;  %v2655_v25 = vpack.c.bf16 %v2559_v6, %v2551_v32  ;;  %v7878_v6 = vld [vmem:[#allocation38_spill] sm:$0xff] }
 0x1ff   :  { %2874 = vmatprep.subr.bf16.mxu1 %v2647_v61  ;;  %v2573_v21 = vmul.f32 %v7873_v37, %v6501_v34  ;;  %v7875_v61 = vld [vmem:[#allocation41_spill] sm:$0xff]  ;;  %v2652_v22 = vpack.c.bf16 %v2556_v26, %v2548_v45  ;;  %v2567_v37 = vmul.f32 %v7877_v11, %v6523_v48  ;;  %v2654_v32 = vpack.c.bf16 %v2558_v54, %v2550_v55  ;;  %v7883_v54 = vld [vmem:[#allocation35_spill] sm:$0xff] }
 0x200   :  { %2245 = vmatmul.mubr.bf16.gmra.mrb[100].mxu0 %v6417_v16  ;;  %v2575_v13 = vmul.f32 %v7875_v61, %v6523_v48  ;;  %v7880_v61 = vld [vmem:[#allocation48_spill] sm:$0xff]  ;;  %v7882_v11 = vld [vmem:[#allocation49_spill] sm:$0xff]  ;;  %v2566_v55 = vmul.f32 %v7883_v54, %v6589_v50 }
 0x201   :  { %2358 = vmatmul.mubr.bf16.gmra.mrb[100].mxu1 %v6417_v16  ;;  %2762 = vmatpush1.bf16.msra.mxu0 %v2644_v15  ;;  %v2572_v16 = vmul.f32 %v7878_v6, %v6594_v31  ;;  %v2661_v15 = vpack.c.bf16 %v2573_v21, %v2565_v41  ;;  %v2589_v2 = vmul.f32 %v7880_v61, %v6501_v34  ;;  %v7884_v21 = vld [vmem:[#allocation44_spill] sm:$0xff]  ;;  %v7886_v61 = vld [vmem:[#allocation42_spill] sm:$0xff] }
 0x202   :  { %2875 = vmatpush1.bf16.msra.mxu1 %v2646_v5  ;;  %2763 = vmatprep.subr.bf16.mxu0 %v2653_v42  ;;  %v7879_v5 = vld [vmem:[#allocation39_spill] sm:$0xff]  ;;  %v2663_v26 = vpack.c.bf16 %v2575_v13, %v2567_v37  ;;  %v2591_v33 = vmul.f32 %v7882_v11, %v6523_v48  ;;  %v2581_v41 = vmul.f32 %v7884_v21, %v6501_v34  ;;  %v7885_v37 = vld [vmem:[#allocation45_spill] sm:$0xff]  ;;  %v7888_v21 = vld [vmem:[#allocation56_spill] sm:$0xff] }
 0x203   :  { %2876 = vmatprep.subr.bf16.mxu1 %v2655_v25  ;;  %2254 = vmatprep.mubr.bf16.mxu0 %v7702_v63  ;;  %v2574_v42 = vmul.f32 %v7879_v5, %v6589_v50  ;;  %v7881_v25 = vld [vmem:[#allocation34_spill] sm:$0xff]  ;;  %v2588_v5 = vmul.f32 %v7784_v20, %v6594_v31  ;;  %v2583_v13 = vmul.f32 %v7885_v37, %v6523_v48  ;;  %v7887_v11 = vld [vmem:[#allocation47_spill] sm:$0xff]  ;;  %v7890_v37 = vld [vmem:[#allocation57_spill] sm:$0xff] }
 0x204   :  { %2367 = vmatprep.mubr.bf16.mxu1 %v7702_v63  ;;  %v2564_v45 = vmul.f32 %v7881_v25, %v6594_v31  ;;  %v2580_v25 = vmul.f32 %v7886_v61, %v6594_v31  ;;  %v2590_v54 = vmul.f32 %v7887_v11, %v6589_v50  ;;  %v2605_v6 = vmul.f32 %v7888_v21, %v6501_v34 }
 0x205   :  { %2764 = vmatpush1.bf16.msra.mxu0 %v2652_v22  ;;  %v2607_v61 = vmul.f32 %v7890_v37, %v6523_v48  ;;  %v2596_v37 = vmul.f32 %v7795_v57, %v6594_v31  ;;  %v7919_v57 = vld [vmem:[#allocation80_spill] sm:$0xff] }
 0x206   :  { %2877 = vmatpush1.bf16.msra.mxu1 %v2654_v32  ;;  %2765 = vmatprep.subr.bf16.mxu0 %v2661_v15  ;;  %v2660_v22 = vpack.c.bf16 %v2572_v16, %v2564_v45  ;;  %v2662_v32 = vpack.c.bf16 %v2574_v42, %v2566_v55  ;;  %v2669_v15 = vpack.c.bf16 %v2589_v2, %v2581_v41  ;;  %v7891_v2 = vld [vmem:[#allocation52_spill] sm:$0xff] }
 0x207   :  { %2878 = vmatprep.subr.bf16.mxu1 %v2663_v26  ;;  %v2671_v16 = vpack.c.bf16 %v2591_v33, %v2583_v13  ;;  %v7889_v26 = vld [vmem:[#allocation43_spill] sm:$0xff]  ;;  %v2668_v42 = vpack.c.bf16 %v2588_v5, %v2580_v25  ;;  %v2597_v55 = vmul.f32 %v7891_v2, %v6501_v34  ;;  %v2451_v41 = vrot.slane %v6288_v14, %v6450_v17  ;;  %v7893_v33 = vld [vmem:[#allocation54_spill] sm:$0xff] }
 0x208   :  { %2255 = vmatmul.mubr.bf16.gmra.mrb[104].mxu0 %v6461_v1  ;;  %v2582_v45 = vmul.f32 %v7889_v26, %v6589_v50  ;;  %v2604_v13 = vmul.f32 %v7893_v33, %v6594_v31  ;;  %v2606_v25 = vmul.f32 %v7794_v58, %v6589_v50  ;;  %v2623_v2 = vmul.f32 %v5740_v0, %v6523_v48 }
 0x209   :  { %2368 = vmatmul.mubr.bf16.gmra.mrb[104].mxu1 %v6461_v1  ;;  %2766 = vmatpush1.bf16.msra.mxu0 %v2660_v22  ;;  %v7892_v1 = vld [vmem:[#allocation53_spill] sm:$0xff]  ;;  %v2677_v5 = vpack.c.bf16 %v2605_v6, %v2597_v55  ;;  %v7894_v6 = vld [vmem:[#allocation60_spill] sm:$0xff]  ;;  %v2620_v55 = vmul.f32 %v7796_v29, %v6594_v31  ;;  %v7914_v29 = vld [vmem:[#allocation83_spill] sm:$0xff] }
 0x20a   :  { %2879 = vmatpush1.bf16.msra.mxu1 %v2662_v32  ;;  %2767 = vmatprep.subr.bf16.mxu0 %v2669_v15  ;;  %v2599_v22 = vmul.f32 %v7892_v1, %v6523_v48  ;;  %v2459_v32 = vrot.slane %v6300_v60, %v6450_v17  ;;  %v2670_v15 = vpack.c.bf16 %v2590_v54, %v2582_v45 }
 0x20b   :  { %2880 = vmatprep.subr.bf16.mxu1 %v2671_v16  ;;  %2264 = vmatprep.mubr.bf16.mxu0 %v7702_v63  ;;  %v2621_v16 = vmul.f32 %v5734_v12, %v6501_v34  ;;  %v2598_v17 = vmul.f32 %v5655_v8, %v6589_v50  ;;  %v2613_v54 = vmul.f32 %v7894_v6, %v6501_v34 }
 0x20c   :  { %2377 = vmatprep.mubr.bf16.mxu1 %v7702_v63  ;;  %v2679_v1 = vpack.c.bf16 %v2607_v61, %v2599_v22  ;;  %v6724_v45 = vrot.slane %v2451_v41, %v6472_v51  ;;  %v2615_v61 = vmul.f32 %v5713_v46, %v6523_v48  ;;  %v6731_v22 = vrot.slane %v2459_v32, %v6472_v51  ;;  %v7908_v46 = vld [vmem:[#allocation77_spill] sm:$0xff] }
 0x20d   :  { %2768 = vmatpush1.bf16.msra.mxu0 %v2668_v42  ;;  %v2676_v42 = vpack.c.bf16 %v2604_v13, %v2596_v37  ;;  %v2622_v34 = vmul.f32 %v7797_v10, %v6589_v50  ;;  %v2612_v37 = vmul.f32 %v7798_v27, %v6594_v31  ;;  %v7895_v13 = vld [vmem:[#allocation59_spill] sm:$0xff] }
 0x20e   :  { %2881 = vmatpush1.bf16.msra.mxu1 %v2670_v15  ;;  %2769 = vmatprep.subr.bf16.mxu0 %v2677_v5  ;;  %v2678_v15 = vpack.c.bf16 %v2606_v25, %v2598_v17  ;;  %v2685_v5 = vpack.c.bf16 %v2621_v16, %v2613_v54  ;;  %v2513_v41 = vmul.f32 %v5785_v28, %v6724_v45  ;;  %v7896_v25 = vld [vmem:[#allocation68_spill] sm:$0xff]  ;;  %v7911_v27 = vld [vmem:[#allocation87_spill] sm:$0xff] }
 0x20f   :  { %2882 = vmatprep.subr.bf16.mxu1 %v2679_v1  ;;  %v2687_v48 = vpack.c.bf16 %v2623_v2, %v2615_v61  ;;  %v2515_v1 = vmul.f32 %v5791_v23, %v6731_v22  ;;  %v2614_v32 = vmul.f32 %v7895_v13, %v6589_v50  ;;  %v2505_v16 = vmul.f32 %v7896_v25, %v6724_v45  ;;  %v7898_v61 = vld [vmem:[#allocation70_spill] sm:$0xff] }
 0x210   :  { %2265 = vmatmul.mubr.bf16.gmra.mrb[108].mxu0 %v6512_v38  ;;  %v2684_v17 = vpack.c.bf16 %v2620_v55, %v2612_v37  ;;  %v2455_v50 = vrot.slane %v6300_v60, %v6472_v51  ;;  %v6782_v60 = vld [vmem:[%s7379_s5 + $0x80] sm:$0xff]   ;;  %v7904_v37 = vld [vmem:[#allocation67_spill] sm:$0xff]  ;;  %v7909_v13 = vld [vmem:[#allocation86_spill] sm:$0xff]  ;;  %v2547_v8 = vmul.f32 %v7911_v27, %v6731_v22 }
 0x211   :  { %2378 = vmatmul.mubr.bf16.gmra.mrb[108].mxu1 %v6512_v38  ;;  %2770 = vmatpush1.bf16.msra.mxu0 %v2676_v42  ;;  %v7897_v38 = vld [vmem:[#allocation69_spill] sm:$0xff]  ;;  %v2686_v2 = vpack.c.bf16 %v2622_v34, %v2614_v32  ;;  %v2633_v31 = vpack.c.bf16 %v2513_v41, %v2505_v16  ;;  %7899 = vst [vmem:[#allocation32_spill] sm:$0xff] %v6782_v60  ;;  %v7902_v34 = vld [vmem:[#allocation66_spill] sm:$0xff] }
 0x212   :  { %2883 = vmatpush1.bf16.msra.mxu1 %v2678_v15  ;;  %2771 = vmatprep.subr.bf16.mxu0 %v2685_v5  ;;  %v2507_v54 = vmul.f32 %v7897_v38, %v6731_v22  ;;  %v7901_v15 = vld [vmem:[#allocation78_spill] sm:$0xff]  ;;  %v2545_v10 = vmul.f32 %v7909_v13, %v6724_v45 }
 0x213   :  { %2884 = vmatprep.subr.bf16.mxu1 %v2687_v48  ;;  %2274 = vmatprep.mubr.bf16.mxu0 %v7702_v63  ;;  %v2529_v5 = vmul.f32 %v7901_v15, %v6724_v45  ;;  %v7905_v32 = vld [vmem:[#allocation74_spill] sm:$0xff] }
 0x214   :  { %2387 = vmatprep.mubr.bf16.mxu1 %v7702_v63  ;;  %v2635_v42 = vpack.c.bf16 %v2515_v1, %v2507_v54  ;;  %v2521_v16 = vmul.f32 %v7905_v32, %v6724_v45  ;;  %v7906_v54 = vld [vmem:[#allocation75_spill] sm:$0xff] }
 0x215   :  { %2772 = vmatpush1.bf16.msra.mxu0 %v2684_v17 }
 0x216   :  { %2885 = vmatpush1.bf16.msra.mxu1 %v2686_v2  ;;  %2983 = vmatprep.subr.bf16.mxu0 %v2633_v31  ;;  %v2523_v2 = vmul.f32 %v7906_v54, %v6731_v22  ;;  %v7907_v31 = vld [vmem:[#allocation76_spill] sm:$0xff]  ;;  %v7922_v54 = vld [vmem:[#allocation90_spill] sm:$0xff] }
 0x217   :  { %3096 = vmatprep.subr.bf16.mxu1 %v2635_v42 }
 0x218   :  { %2275 = vmatmul.mubr.bf16.gmra.mrb[112].mxu0 %v6554_v47 }
 0x219   :  { %2388 = vmatmul.mubr.bf16.gmra.mrb[112].mxu1 %v6554_v47  ;;  %2284 = vmatprep.mubr.bf16.mxu0 %v7702_v63  ;;  %v2447_v47 = vrot.slane %v6288_v14, %v6472_v51 }
 0x21a   :  { %2397 = vmatprep.mubr.bf16.mxu1 %v7702_v63 }
 0x220   :  { %2285 = vmatmul.mubr.bf16.gmra.mrb[116].mxu0 %v6563_v18 }
 0x221   :  { %2398 = vmatmul.mubr.bf16.gmra.mrb[116].mxu1 %v6563_v18  ;;  %2294 = vmatprep.mubr.bf16.mxu0 %v7702_v63  ;;  %v6771_v18 = vrot.slane %v2447_v47, %v6472_v51 }
 0x222   :  { %2407 = vmatprep.mubr.bf16.mxu1 %v7702_v63 }
 0x223   :  { %v2512_v14 = vmul.f32 %v7898_v61, %v6771_v18  ;;  %v2504_v41 = vmul.f32 %v7902_v34, %v6771_v18  ;;  %v2528_v42 = vmul.f32 %v7907_v31, %v6771_v18  ;;  %v2536_v26 = vmul.f32 %v7919_v57, %v6771_v18 }
 0x225   :  { %v2632_v17 = vpack.c.bf16 %v2512_v14, %v2504_v41  ;;  %v7910_v41 = vld [vmem:[#allocation72_spill] sm:$0xff] }
 0x226   :  { %v2520_v6 = vmul.f32 %v7910_v41, %v6771_v18 }
 0x228   :  { %2295 = vmatmul.mubr.bf16.gmra.mrb[120].mxu0 %v6572_v19  ;;  %v2640_v12 = vpack.c.bf16 %v2528_v42, %v2520_v6  ;;  %v7918_v42 = vld [vmem:[#allocation94_spill] sm:$0xff] }
 0x229   :  { %2408 = vmatmul.mubr.bf16.gmra.mrb[120].mxu1 %v6572_v19  ;;  %2304 = vmatprep.mubr.bf16.mxu0 %v7702_v63  ;;  %v6775_v19 = vrot.slane %v2455_v50, %v6472_v51  ;;  %v7903_v51 = vld [vmem:[#allocation79_spill] sm:$0xff]  ;;  %v2641_v50 = vpack.c.bf16 %v2529_v5, %v2521_v16 }
 0x22a   :  { %2417 = vmatprep.mubr.bf16.mxu1 %v7702_v63  ;;  %v2531_v48 = vmul.f32 %v7903_v51, %v6731_v22 }
 0x22b   :  { %v2506_v1 = vmul.f32 %v7904_v37, %v6775_v19  ;;  %v2530_v0 = vmul.f32 %v7908_v46, %v6775_v19 }
 0x22c   :  { %v2643_v14 = vpack.c.bf16 %v2531_v48, %v2523_v2  ;;  %v7915_v48 = vld [vmem:[#allocation84_spill] sm:$0xff] }
 0x22d   :  { %v2544_v2 = vmul.f32 %v7915_v48, %v6771_v18 }
 0x230   :  { %2305 = vmatmul.mubr.bf16.gmra.mrb[124].mxu0 %v6581_v43 }
 0x231   :  { %2418 = vmatmul.mubr.bf16.gmra.mrb[124].mxu1 %v6581_v43  ;;  %2789 = vmatprep.mubr.bf16.mxu0 %v7702_v63  ;;  %v7900_v43 = vld [vmem:[#allocation71_spill] sm:$0xff] }
 0x232   :  { %2902 = vmatprep.mubr.bf16.mxu1 %v7702_v63  ;;  %v2514_v55 = vmul.f32 %v7900_v43, %v6775_v19 }
 0x234   :  { %v2634_v47 = vpack.c.bf16 %v2514_v55, %v2506_v1  ;;  %v7912_v55 = vld [vmem:[#allocation73_spill] sm:$0xff]  ;;  %v7913_v1 = vld [vmem:[#allocation82_spill] sm:$0xff] }
 0x235   :  { %v2522_v5 = vmul.f32 %v7912_v55, %v6775_v19  ;;  %v2537_v16 = vmul.f32 %v7913_v1, %v6724_v45 }
 0x237   :  { %v2642_v58 = vpack.c.bf16 %v2530_v0, %v2522_v5  ;;  %v2649_v27 = vpack.c.bf16 %v2545_v10, %v2537_v16  ;;  %v7920_v0 = vld [vmem:[#allocation95_spill] sm:$0xff]  ;;  %v7921_v5 = vld [vmem:[#allocation81_spill] sm:$0xff] }
 0x238   :  { %2790 = vmatmul.mubr.bf16.vlgmr.msra.gmra.mrb[64].mxu0 %v6782_v60  ;;  %v2563_v10 = vmul.f32 %v7920_v0, %v6731_v22  ;;  %v2538_v16 = vmul.f32 %v7921_v5, %v6775_v19  ;;  %v7926_v5 = vld [vmem:[#allocation102_spill] sm:$0xff] }
 0x239   :  { %2903 = vmatmul.mubr.bf16.vlgmr.msra.gmra.mrb[64].mxu1 %v6782_v60  ;;  %2984 = vmatpush1.bf16.msra.mxu0 %v2632_v17  ;;  %v2539_v17 = vmul.f32 %v7914_v29, %v6731_v22  ;;  %v2553_v60 = vmul.f32 %v7922_v54, %v6724_v45  ;;  %v2577_v33 = vmul.f32 %v7926_v5, %v6724_v45 }
 0x23a   :  { %3097 = vmatpush1.bf16.msra.mxu1 %v2634_v47  ;;  %2985 = vmatprep.subr.bf16.mxu0 %v2641_v50  ;;  %v6823_v47 = vld [vmem:[%s7379_s5 + $0x88] sm:$0xff]  }
 0x23b   :  { %3098 = vmatprep.subr.bf16.mxu1 %v2643_v14  ;;  %2799 = vmatprep.mubr.bf16.mxu0 %v7702_v63  ;;  %7916 = vst [vmem:[#allocation30_spill] sm:$0xff] %v6823_v47  ;;  %v7917_v50 = vld [vmem:[#allocation85_spill] sm:$0xff]  ;;  %v2561_v14 = vmul.f32 %v7918_v42, %v6724_v45  ;;  %v2651_v29 = vpack.c.bf16 %v2547_v8, %v2539_v17  ;;  %v7923_v42 = vld [vmem:[#allocation91_spill] sm:$0xff]  ;;  %v7924_v8 = vld [vmem:[#allocation92_spill] sm:$0xff] }
 0x23c   :  { %2912 = vmatprep.mubr.bf16.mxu1 %v7702_v63  ;;  %v2546_v6 = vmul.f32 %v7917_v50, %v6775_v19  ;;  %v2648_v50 = vpack.c.bf16 %v2544_v2, %v2536_v26  ;;  %v2560_v17 = vmul.f32 %v7924_v8, %v6771_v18  ;;  %v7927_v26 = vld [vmem:[#allocation88_spill] sm:$0xff] }
 0x23d   :  { %2986 = vmatpush1.bf16.msra.mxu0 %v2640_v12  ;;  %v2555_v12 = vmul.f32 %v7923_v42, %v6731_v22  ;;  %v2657_v0 = vpack.c.bf16 %v2561_v14, %v2553_v60  ;;  %v2552_v2 = vmul.f32 %v7927_v26, %v6771_v18  ;;  %v7928_v42 = vld [vmem:[#allocation103_spill] sm:$0xff]  ;;  %v7929_v60 = vld [vmem:[#allocation89_spill] sm:$0xff]  ;;  %v7930_v14 = vld [vmem:[#allocation98_spill] sm:$0xff] }
 0x23e   :  { %3099 = vmatpush1.bf16.msra.mxu1 %v2642_v58  ;;  %2987 = vmatprep.subr.bf16.mxu0 %v2649_v27  ;;  %v2650_v21 = vpack.c.bf16 %v2546_v6, %v2538_v16  ;;  %v7925_v58 = vld [vmem:[#allocation93_spill] sm:$0xff]  ;;  %v2579_v54 = vmul.f32 %v7928_v42, %v6731_v22  ;;  %v2554_v6 = vmul.f32 %v7929_v60, %v6775_v19 }
 0x23f   :  { %3100 = vmatprep.subr.bf16.mxu1 %v2651_v29  ;;  %v2562_v27 = vmul.f32 %v7925_v58, %v6775_v19  ;;  %v2659_v29 = vpack.c.bf16 %v2563_v10, %v2555_v12  ;;  %v2569_v16 = vmul.f32 %v7930_v14, %v6724_v45  ;;  %v2656_v5 = vpack.c.bf16 %v2560_v17, %v2552_v2  ;;  %v7932_v10 = vld [vmem:[#allocation100_spill] sm:$0xff] }
 0x240   :  { %2800 = vmatmul.mubr.bf16.gmra.mrb[68].mxu0 %v6823_v47  ;;  %v2576_v12 = vmul.f32 %v7932_v10, %v6771_v18  ;;  %v7936_v14 = vld [vmem:[#allocation96_spill] sm:$0xff]  ;;  %v7939_v10 = vld [vmem:[#allocation106_spill] sm:$0xff] }
 0x241   :  { %2913 = vmatmul.mubr.bf16.gmra.mrb[68].mxu1 %v6823_v47  ;;  %2988 = vmatpush1.bf16.msra.mxu0 %v2648_v50  ;;  %v7931_v47 = vld [vmem:[#allocation99_spill] sm:$0xff]  ;;  %v2658_v58 = vpack.c.bf16 %v2562_v27, %v2554_v6  ;;  %v2665_v42 = vpack.c.bf16 %v2577_v33, %v2569_v16  ;;  %v2568_v60 = vmul.f32 %v7936_v14, %v6771_v18  ;;  %v7938_v6 = vld [vmem:[#allocation97_spill] sm:$0xff] }
 0x242   :  { %3101 = vmatpush1.bf16.msra.mxu1 %v2650_v21  ;;  %2989 = vmatprep.subr.bf16.mxu0 %v2657_v0  ;;  %v2571_v50 = vmul.f32 %v7931_v47, %v6731_v22  ;;  %v6864_v21 = vld [vmem:[%s7379_s5 + $0x90] sm:$0xff]   ;;  %v7934_v0 = vld [vmem:[#allocation101_spill] sm:$0xff]  ;;  %v2570_v16 = vmul.f32 %v7938_v6, %v6775_v19  ;;  %v2585_v11 = vmul.f32 %v7939_v10, %v6724_v45 }
 0x243   :  { %3102 = vmatprep.subr.bf16.mxu1 %v2659_v29  ;;  %2809 = vmatprep.mubr.bf16.mxu0 %v7702_v63  ;;  %7933 = vst [vmem:[#allocation46_spill] sm:$0xff] %v6864_v21  ;;  %v2578_v17 = vmul.f32 %v7934_v0, %v6775_v19  ;;  %v7935_v29 = vld [vmem:[#allocation110_spill] sm:$0xff]  ;;  %v7937_v33 = vld [vmem:[#allocation111_spill] sm:$0xff]  ;;  %v2664_v0 = vpack.c.bf16 %v2576_v12, %v2568_v60  ;;  %v7943_v60 = vld [vmem:[#allocation104_spill] sm:$0xff] }
 0x244   :  { %2922 = vmatprep.mubr.bf16.mxu1 %v7702_v63  ;;  %v2593_v2 = vmul.f32 %v7935_v29, %v6724_v45  ;;  %v2667_v47 = vpack.c.bf16 %v2579_v54, %v2571_v50  ;;  %v2595_v27 = vmul.f32 %v7937_v33, %v6731_v22  ;;  %v7940_v29 = vld [vmem:[#allocation107_spill] sm:$0xff]  ;;  %v7941_v54 = vld [vmem:[#allocation108_spill] sm:$0xff]  ;;  %v2584_v12 = vmul.f32 %v7943_v60, %v6771_v18 }
 0x245   :  { %2990 = vmatpush1.bf16.msra.mxu0 %v2656_v5  ;;  %v2587_v5 = vmul.f32 %v7940_v29, %v6731_v22  ;;  %v2592_v50 = vmul.f32 %v7941_v54, %v6771_v18  ;;  %v2666_v14 = vpack.c.bf16 %v2578_v17, %v2570_v16  ;;  %v7944_v29 = vld [vmem:[#allocation120_spill] sm:$0xff]  ;;  %v7945_v17 = vld [vmem:[#allocation114_spill] sm:$0xff] }
 0x246   :  { %3103 = vmatpush1.bf16.msra.mxu1 %v2658_v58  ;;  %2991 = vmatprep.subr.bf16.mxu0 %v2665_v42  ;;  %v2673_v33 = vpack.c.bf16 %v2593_v2, %v2585_v11  ;;  %v2594_v42 = vmul.f32 %v7840_v59, %v6775_v19  ;;  %v7942_v58 = vld [vmem:[#allocation118_spill] sm:$0xff]  ;;  %v2611_v10 = vmul.f32 %v7944_v29, %v6731_v22 }
 0x247   :  { %3104 = vmatprep.subr.bf16.mxu1 %v2667_v47  ;;  %v2609_v6 = vmul.f32 %v7942_v58, %v6724_v45  ;;  %v2675_v47 = vpack.c.bf16 %v2595_v27, %v2587_v5  ;;  %v2586_v11 = vmul.f32 %v7844_v24, %v6775_v19  ;;  %v2601_v2 = vmul.f32 %v7945_v17, %v6724_v45  ;;  %v7947_v27 = vld [vmem:[#allocation116_spill] sm:$0xff] }
 0x248   :  { %2810 = vmatmul.mubr.bf16.gmra.mrb[72].mxu0 %v6864_v21  ;;  %v2672_v16 = vpack.c.bf16 %v2592_v50, %v2584_v12  ;;  %v2608_v5 = vmul.f32 %v7947_v27, %v6771_v18  ;;  %v7950_v17 = vld [vmem:[#allocation112_spill] sm:$0xff]  ;;  %v2617_v59 = vmul.f32 %v6124_v36, %v6724_v45 }
 0x249   :  { %2923 = vmatmul.mubr.bf16.gmra.mrb[72].mxu1 %v6864_v21  ;;  %2992 = vmatpush1.bf16.msra.mxu0 %v2664_v0  ;;  %v7946_v21 = vld [vmem:[#allocation115_spill] sm:$0xff]  ;;  %v2674_v58 = vpack.c.bf16 %v2594_v42, %v2586_v11  ;;  %v2681_v29 = vpack.c.bf16 %v2609_v6, %v2601_v2  ;;  %v2600_v24 = vmul.f32 %v7950_v17, %v6771_v18  ;;  %v7951_v6 = vld [vmem:[#allocation125_spill] sm:$0xff] }
 0x24a   :  { %3105 = vmatpush1.bf16.msra.mxu1 %v2666_v14  ;;  %2993 = vmatprep.subr.bf16.mxu0 %v2673_v33  ;;  %v2603_v0 = vmul.f32 %v7946_v21, %v6731_v22  ;;  %v6905_v14 = vld [vmem:[%s7379_s5 + $0x98] sm:$0xff]   ;;  %v7948_v33 = vld [vmem:[#allocation117_spill] sm:$0xff]  ;;  %v2627_v42 = vmul.f32 %v7951_v6, %v6731_v22 }
 0x24b   :  { %3106 = vmatprep.subr.bf16.mxu1 %v2675_v47  ;;  %2819 = vmatprep.mubr.bf16.mxu0 %v7702_v63  ;;  %v2610_v50 = vmul.f32 %v7948_v33, %v6775_v19  ;;  %v7949_v47 = vld [vmem:[#allocation124_spill] sm:$0xff]  ;;  %v7952_v11 = vld [vmem:[#allocation113_spill] sm:$0xff]  ;;  %v2680_v33 = vpack.c.bf16 %v2608_v5, %v2600_v24  ;;  %v2616_v24 = vmul.f32 %v6107_v4, %v6771_v18  ;;  %v7954_v5 = vld [vmem:[#allocation10_spill] sm:$0xff] }
 0x24c   :  { %2932 = vmatprep.mubr.bf16.mxu1 %v7702_v63  ;;  %v2625_v12 = vmul.f32 %v7949_v47, %v6724_v45  ;;  %v2683_v21 = vpack.c.bf16 %v2611_v10, %v2603_v0  ;;  %v2602_v2 = vmul.f32 %v7952_v11, %v6775_v19  ;;  %v7953_v10 = vld [vmem:[#allocation122_spill] sm:$0xff]  ;;  %v2618_v45 = vmul.f32 %v6117_v39, %v6775_v19 }
 0x24d   :  { %2994 = vmatpush1.bf16.msra.mxu0 %v2672_v16  ;;  %v2619_v16 = vmul.f32 %v7851_v62, %v6731_v22  ;;  %v2624_v0 = vmul.f32 %v7953_v10, %v6771_v18  ;;  %v7632_v18 = vmov 0.0  }
 0x24e   :  { %3107 = vmatpush1.bf16.msra.mxu1 %v2674_v58  ;;  %2995 = vmatprep.subr.bf16.mxu0 %v2681_v29  ;;  %v2682_v47 = vpack.c.bf16 %v2610_v50, %v2602_v2  ;;  %v2689_v6 = vpack.c.bf16 %v2625_v12, %v2617_v59  ;;  %v2626_v29 = vmul.f32 %v7854_v40, %v6775_v19  ;;  %v6947_v19 = vld [vmem:[%s7379_s5 + $0xa8] sm:$0xff]  }
 0x24f   :  { %3108 = vmatprep.subr.bf16.mxu1 %v2683_v21  ;;  %v2691_v58 = vpack.c.bf16 %v2627_v42, %v2619_v16  ;;  %v2688_v22 = vpack.c.bf16 %v2624_v0, %v2616_v24  ;;  %v6936_v21 = vld [vmem:[%s7379_s5 + $0xa0] sm:$0xff]   ;;  %v3689_v50 = vadd.f32 %v7857_v9, %v5373_v49  ;;  %v7957_v2 = vld [vmem:[#allocation14_spill] sm:$0xff]  ;;  %v7962_v24 = vld [vmem:[#allocation11_spill] sm:$0xff] }
 0x250   :  { %2820 = vmatmul.mubr.bf16.gmra.mrb[76].mxu0 %v6905_v14  ;;  %v2690_v59 = vpack.c.bf16 %v2626_v29, %v2618_v45  ;;  %v7955_v12 = vld [vmem:[#allocation9_spill] sm:$0xff]  ;;  %v7956_v42 = vld [vmem:[#allocation12_spill] sm:$0xff] }
 0x251   :  { %2933 = vmatmul.mubr.bf16.gmra.mrb[76].mxu1 %v6905_v14  ;;  %2996 = vmatpush1.bf16.msra.mxu0 %v2680_v33  ;;  %v3690_v33 = vadd.f32 %v7954_v5, %v7858_v52  ;;  %v3691_v16 = vadd.f32 %v7957_v2, %v7956_v42  ;;  %v6965_v52 = vld [vmem:[%s7379_s5 + $0xb0] sm:$0xff]   ;;  %v7958_v49 = vld [vmem:[#allocation5_spill] sm:$0xff]  ;;  %v7959_v0 = vld [vmem:[#allocation16_spill] sm:$0xff] }
 0x252   :  { %3109 = vmatpush1.bf16.msra.mxu1 %v2682_v47  ;;  %2997 = vmatprep.subr.bf16.mxu0 %v2689_v6  ;;  %v3692_v47 = vadd.f32 %v5456_v3, %v5443_v44  ;;  %v3721_v9 = vadd.f32 %v7958_v49, %v3689_v50  ;;  %v7960_v3 = vld [vmem:[#allocation22_spill] sm:$0xff]  ;;  %v7961_v29 = vld [vmem:[#allocation24_spill] sm:$0xff] }
 0x253   :  { %3110 = vmatprep.subr.bf16.mxu1 %v2691_v58  ;;  %2829 = vmatprep.mubr.bf16.mxu0 %v7702_v63  ;;  %v3722_v6 = vadd.f32 %v7955_v12, %v3690_v33  ;;  %v3694_v58 = vadd.f32 %v7961_v29, %v7960_v3  ;;  %v7964_v5 = vld [vmem:[#allocation20_spill] sm:$0xff]  ;;  %v7965_v12 = vld [vmem:[#allocation7_spill] sm:$0xff]  ;;  %v7970_v3 = vld [vmem:[#allocation25_spill] sm:$0xff] }
 0x254   :  { %2942 = vmatprep.mubr.bf16.mxu1 %v7702_v63  ;;  %v3724_v44 = vadd.f32 %v7959_v0, %v3692_v47  ;;  %v3693_v33 = vadd.f32 %v7964_v5, %v7868_v35  ;;  %v3753_v42 = vadd.f32 %v7965_v12, %v3721_v9  ;;  %v7971_v29 = vld [vmem:[#allocation31_spill] sm:$0xff] }
 0x255   :  { %2998 = vmatpush1.bf16.msra.mxu0 %v2688_v22  ;;  %v3754_v45 = vadd.f32 %v7962_v24, %v3722_v6  ;;  %v7963_v22 = vld [vmem:[#allocation13_spill] sm:$0xff]  ;;  %v3726_v47 = vadd.f32 %v7867_v56, %v3694_v58  ;;  %v3696_v6 = vadd.f32 %v7764_v53, %v7769_v7  ;;  %v6994_v56 = vld [vmem:[%s7379_s5 + $0xb8] sm:$0xff]   ;;  %v7972_v24 = vld [vmem:[#allocation38_spill] sm:$0xff] }
 0x256   :  { %3111 = vmatpush1.bf16.msra.mxu1 %v2690_v59  ;;  %4157 = vmatprep.subr.bf16.mxu0 %v7632_v18  ;;  %v3723_v59 = vadd.f32 %v7963_v22, %v3691_v16  ;;  %v3785_v35 = vadd.f32 %v7902_v34, %v3753_v42  ;;  %v7967_v16 = vld [vmem:[#allocation15_spill] sm:$0xff] }
 0x257   :  { %4177 = vmatprep.subr.bf16.mxu1 %v7632_v18  ;;  %v3786_v2 = vadd.f32 %v7898_v61, %v3754_v45  ;;  %v7966_v18 = vld [vmem:[#allocation17_spill] sm:$0xff]  ;;  %v7968_v61 = vld [vmem:[#allocation19_spill] sm:$0xff]  ;;  %v3758_v34 = vadd.f32 %v7970_v3, %v3726_v47  ;;  %v3728_v58 = vadd.f32 %v7971_v29, %v3696_v6  ;;  %v7983_v3 = vld [vmem:[#allocation42_spill] sm:$0xff] }
 0x258   :  { %2830 = vmatmul.mubr.bf16.gmra.mrb[80].mxu0 %v6936_v21  ;;  %v3756_v50 = vadd.f32 %v7966_v18, %v3724_v44  ;;  %v3755_v49 = vadd.f32 %v7967_v16, %v3723_v59  ;;  %v3725_v0 = vadd.f32 %v7968_v61, %v3693_v33  ;;  %v7969_v18 = vld [vmem:[#allocation28_spill] sm:$0xff]  ;;  %v3817_v22 = vadd.f32 %v7896_v25, %v3785_v35  ;;  %v7974_v59 = vld [vmem:[#allocation21_spill] sm:$0xff]  ;;  %v7975_v12 = vld [vmem:[#allocation27_spill] sm:$0xff] }
 0x259   :  { %2943 = vmatmul.mubr.bf16.gmra.mrb[80].mxu1 %v6936_v21  ;;  %2839 = vmatprep.mubr.bf16.mxu0 %v7702_v63  ;;  %v3695_v44 = vadd.f32 %v7969_v18, %v7874_v30  ;;  %v3818_v53 = vadd.f32 %v5785_v28, %v3786_v2  ;;  %v3790_v33 = vadd.f32 %v7915_v48, %v3758_v34  ;;  %v7976_v28 = vld [vmem:[#allocation34_spill] sm:$0xff]  ;;  %v7977_v2 = vld [vmem:[#allocation36_spill] sm:$0xff]  ;;  %v7979_v48 = vld [vmem:[#allocation39_spill] sm:$0xff] }
 0x25a   :  { %2952 = vmatprep.mubr.bf16.mxu1 %v7702_v63  ;;  %v3788_v9 = vadd.f32 %v7907_v31, %v3756_v50  ;;  %v3787_v7 = vadd.f32 %v7910_v41, %v3755_v49  ;;  %v7973_v31 = vld [vmem:[#allocation40_spill] sm:$0xff]  ;;  %v3757_v5 = vadd.f32 %v7974_v59, %v3725_v0  ;;  %v3697_v41 = vadd.f32 %v7977_v2, %v7976_v28  ;;  %v7981_v61 = vld [vmem:[#allocation29_spill] sm:$0xff]  ;;  %v7990_v59 = vld [vmem:[#allocation94_spill] sm:$0xff] }
 0x25b   :  { %v3698_v45 = vadd.f32 %v7973_v31, %v7972_v24  ;;  %v3727_v42 = vadd.f32 %v7975_v12, %v3695_v44  ;;  %v3850_v50 = vadd.f32 %v7900_v43, %v3818_v53  ;;  %v3849_v16 = vadd.f32 %v7904_v37, %v3817_v22  ;;  %v7980_v43 = vld [vmem:[#allocation48_spill] sm:$0xff]  ;;  %v7994_v2 = vld [vmem:[#allocation75_spill] sm:$0xff] }
 0x25c   :  { %v3820_v30 = vadd.f32 %v7901_v15, %v3788_v9  ;;  %v3819_v47 = vadd.f32 %v7905_v32, %v3787_v7  ;;  %v3789_v25 = vadd.f32 %v7919_v57, %v3757_v5  ;;  %v7978_v15 = vld [vmem:[#allocation33_spill] sm:$0xff]  ;;  %v3700_v9 = vadd.f32 %v7980_v43, %v7784_v20  ;;  %v7982_v57 = vld [vmem:[#allocation35_spill] sm:$0xff]  ;;  %v7984_v34 = vld [vmem:[#allocation44_spill] sm:$0xff] }
 0x25d   :  { %v3760_v6 = vadd.f32 %v7978_v15, %v3728_v58  ;;  %v3730_v35 = vadd.f32 %v7979_v48, %v3698_v45  ;;  %v3822_v32 = vadd.f32 %v7909_v13, %v3790_v33  ;;  %v3759_v0 = vadd.f32 %v7981_v61, %v3727_v42  ;;  %v7985_v20 = vld [vmem:[#allocation41_spill] sm:$0xff]  ;;  %v7987_v45 = vld [vmem:[#allocation54_spill] sm:$0xff]  ;;  %v7988_v22 = vld [vmem:[#allocation56_spill] sm:$0xff] }
 0x25e   :  { %v3852_v49 = vadd.f32 %v7908_v46, %v3820_v30  ;;  %v3729_v44 = vadd.f32 %v7982_v57, %v3697_v41  ;;  %v3882_v53 = vadd.f32 %v5791_v23, %v3850_v50  ;;  %v3851_v7 = vadd.f32 %v7912_v55, %v3819_v47  ;;  %v7989_v30 = vld [vmem:[#allocation85_spill] sm:$0xff]  ;;  %v7995_v41 = vld [vmem:[#allocation43_spill] sm:$0xff]  ;;  %v7996_v50 = vld [vmem:[#allocation50_spill] sm:$0xff] }
 0x25f   :  { %v3792_v18 = vadd.f32 %v7924_v8, %v3760_v6  ;;  %v3699_v37 = vadd.f32 %v7984_v34, %v7983_v3  ;;  %v3821_v46 = vadd.f32 %v7913_v1, %v3789_v25  ;;  %v3791_v29 = vadd.f32 %v7927_v26, %v3759_v0  ;;  %v7986_v8 = vld [vmem:[#allocation47_spill] sm:$0xff]  ;;  %v7991_v33 = vld [vmem:[#allocation37_spill] sm:$0xff]  ;;  %v7992_v1 = vld [vmem:[#allocation100_spill] sm:$0xff] }
 0x260   :  { %2840 = vmatmul.mubr.bf16.gmra.mrb[84].mxu0 %v6947_v19  ;;  %v3762_v58 = vadd.f32 %v7985_v20, %v3730_v35  ;;  %v3881_v13 = vadd.f32 %v7897_v38, %v3849_v16  ;;  %v3884_v24 = vadd.f32 %v7903_v51, %v3852_v49  ;;  %v3732_v31 = vadd.f32 %v7986_v8, %v3700_v9  ;;  %v7993_v26 = vld [vmem:[#allocation32_spill] sm:$0xff]  ;;  %v7998_v15 = vld [vmem:[#allocation81_spill] sm:$0xff]  ;;  %v7999_v48 = vld [vmem:[#allocation90_spill] sm:$0xff] }
 0x261   :  { %2953 = vmatmul.mubr.bf16.gmra.mrb[84].mxu1 %v6947_v19  ;;  %2849 = vmatprep.mubr.bf16.mxu0 %v7702_v63  ;;  %v3702_v23 = vadd.f32 %v7988_v22, %v7987_v45  ;;  %v3854_v55 = vadd.f32 %v7989_v30, %v3822_v32  ;;  %v3824_v5 = vadd.f32 %v7990_v59, %v3792_v18  ;;  %v7997_v47 = vld [vmem:[#allocation52_spill] sm:$0xff]  ;;  %v8001_v43 = vld [vmem:[#allocation49_spill] sm:$0xff]  ;;  %v8002_v32 = vld [vmem:[#allocation55_spill] sm:$0xff] }
 0x262   :  { %2962 = vmatprep.mubr.bf16.mxu1 %v7702_v63  ;;  %v3761_v12 = vadd.f32 %v7991_v33, %v3729_v44  ;;  %v3794_v42 = vadd.f32 %v7992_v1, %v3762_v58  ;;  %v3914_v28 = vpack.c.bf16 %v3882_v53, %v3881_v13  ;;  %v3883_v38 = vadd.f32 %v7994_v2, %v3851_v7  ;;  %v8000_v16 = vld [vmem:[#allocation96_spill] sm:$0xff]  ;;  %v8003_v0 = vld [vmem:[#allocation62_spill] sm:$0xff]  ;;  %v8006_v7 = vld [vmem:[#allocation87_spill] sm:$0xff] }
 0x263   :  { %v3731_v51 = vadd.f32 %v7995_v41, %v3699_v37  ;;  %v3701_v25 = vadd.f32 %v7997_v47, %v7996_v50  ;;  %v3853_v6 = vadd.f32 %v7998_v15, %v3821_v46  ;;  %v3823_v35 = vadd.f32 %v7999_v48, %v3791_v29  ;;  %v8004_v18 = vld [vmem:[#allocation64_spill] sm:$0xff]  ;;  %v8007_v34 = vld [vmem:[#allocation93_spill] sm:$0xff]  ;;  %v8008_v46 = vld [vmem:[#allocation102_spill] sm:$0xff] }
 0x264   :  { %v3793_v49 = vadd.f32 %v8000_v16, %v3761_v12  ;;  %v3764_v9 = vadd.f32 %v8001_v43, %v3732_v31  ;;  %v3734_v61 = vadd.f32 %v8002_v32, %v3702_v23  ;;  %v3704_v57 = vadd.f32 %v8004_v18, %v8003_v0  ;;  %v8009_v20 = vld [vmem:[#allocation45_spill] sm:$0xff]  ;;  %v8010_v8 = vld [vmem:[#allocation51_spill] sm:$0xff]  ;;  %v8011_v45 = vld [vmem:[#allocation58_spill] sm:$0xff] }
 0x265   :  { %v8005_v44 = vmov 0.0   ;;  %v3915_v53 = vpack.c.bf16 %v3884_v24, %v3883_v38  ;;  %v3886_v3 = vadd.f32 %v8006_v7, %v3854_v55  ;;  %v3856_v37 = vadd.f32 %v8007_v34, %v3824_v5  ;;  %v8012_v22 = vld [vmem:[#allocation60_spill] sm:$0xff]  ;;  %v8013_v30 = vld [vmem:[#allocation83_spill] sm:$0xff]  ;;  %v8014_v33 = vld [vmem:[#allocation89_spill] sm:$0xff] }
 0x266   :  { %v3826_v29 = vadd.f32 %v8008_v46, %v3794_v42  ;;  %v3763_v58 = vadd.f32 %v8009_v20, %v3731_v51  ;;  %v3796_v13 = vadd.f32 %v7941_v54, %v3764_v9  ;;  %v3733_v31 = vadd.f32 %v8010_v8, %v3701_v25  ;;  %v8015_v24 = vld [vmem:[#allocation98_spill] sm:$0xff]  ;;  %v8016_v5 = vld [vmem:[#allocation57_spill] sm:$0xff]  ;;  %v8018_v2 = vld [vmem:[#allocation95_spill] sm:$0xff] }
 0x267   :  { %v3703_v23 = vadd.f32 %v8012_v22, %v8011_v45  ;;  %v3885_v59 = vadd.f32 %v8013_v30, %v3853_v6  ;;  %v3855_v12 = vadd.f32 %v8014_v33, %v3823_v35  ;;  %v3825_v1 = vadd.f32 %v8015_v24, %v3793_v49  ;;  %v8019_v41 = vld [vmem:[#allocation101_spill] sm:$0xff]  ;;  %v8020_v50 = vld [vmem:[#allocation30_spill] sm:$0xff]  ;;  %v8024_v16 = vld [vmem:[#allocation91_spill] sm:$0xff] }
 0x268   :  { %2850 = vmatmul.mubr.bf16.gmra.mrb[88].mxu0 %v6965_v52  ;;  %v3795_v55 = vadd.f32 %v7943_v60, %v3763_v58  ;;  %v3766_v42 = vadd.f32 %v8016_v5, %v3734_v61  ;;  %v3888_v38 = vadd.f32 %v8018_v2, %v3856_v37  ;;  %v3858_v51 = vadd.f32 %v8019_v41, %v3826_v29  ;;  %v8021_v47 = vld [vmem:[#allocation110_spill] sm:$0xff]  ;;  %v8022_v15 = vld [vmem:[#allocation53_spill] sm:$0xff]  ;;  %v8023_v60 = vld [vmem:[#allocation59_spill] sm:$0xff] }
 0x269   :  { %2963 = vmatmul.mubr.bf16.gmra.mrb[88].mxu1 %v6965_v52  ;;  %2859 = vmatprep.mubr.bf16.mxu0 %v7702_v63  ;;  %v3916_v54 = vpack.c.bf16 %v3886_v3, %v3885_v59  ;;  %v3828_v25 = vadd.f32 %v8021_v47, %v3796_v13  ;;  %v3765_v6 = vadd.f32 %v8022_v15, %v3733_v31  ;;  %v8025_v43 = vld [vmem:[#allocation97_spill] sm:$0xff]  ;;  %v8026_v32 = vld [vmem:[#allocation106_spill] sm:$0xff]  ;;  %v8032_v13 = vld [vmem:[#allocation99_spill] sm:$0xff] }
 0x26a   :  { %2972 = vmatprep.mubr.bf16.mxu1 %v7702_v63  ;;  %v3798_v48 = vadd.f32 %v7947_v27, %v3766_v42  ;;  %v3735_v35 = vadd.f32 %v8023_v60, %v3703_v23  ;;  %v3887_v49 = vadd.f32 %v8024_v16, %v3855_v12  ;;  %v3857_v9 = vadd.f32 %v8025_v43, %v3825_v1  ;;  %v8027_v18 = vld [vmem:[#allocation65_spill] sm:$0xff]  ;;  %v8030_v37 = vld [vmem:[#allocation118_spill] sm:$0xff]  ;;  %v8036_v33 = vld [vmem:[#allocation111_spill] sm:$0xff] }
 0x26b   :  { %v3827_v61 = vadd.f32 %v8026_v32, %v3795_v55  ;;  %v3797_v0 = vadd.f32 %v7950_v17, %v3765_v6  ;;  %v8029_v3 = vld [vmem:[#allocation109_spill] sm:$0xff]  ;;  %v8034_v45 = vld [vmem:[#allocation114_spill] sm:$0xff]  ;;  %v8038_v55 = vld [vmem:[#allocation124_spill] sm:$0xff] }
 0x26c   :  { %v3917_v27 = vpack.c.bf16 %v3888_v38, %v3887_v49  ;;  %v3860_v34 = vadd.f32 %v8029_v3, %v3828_v25  ;;  %v3830_v46 = vadd.f32 %v8030_v37, %v3798_v48  ;;  %v8031_v29 = vld [vmem:[#allocation61_spill] sm:$0xff]  ;;  %v3889_v8 = vadd.f32 %v8032_v13, %v3857_v9  ;;  %v8035_v30 = vld [vmem:[#allocation46_spill] sm:$0xff]  ;;  %v8039_v5 = vld [vmem:[#allocation107_spill] sm:$0xff] }
 0x26d   :  { %v3767_v20 = vadd.f32 %v8031_v29, %v3735_v35  ;;  %v8033_v31 = vld [vmem:[#allocation105_spill] sm:$0xff]  ;;  %v3829_v22 = vadd.f32 %v8034_v45, %v3797_v0  ;;  %v8041_v41 = vld [vmem:[#allocation115_spill] sm:$0xff] }
 0x26e   :  { %v3859_v17 = vadd.f32 %v8033_v31, %v3827_v61  ;;  %v3892_v12 = vadd.f32 %v8036_v33, %v3860_v34  ;;  %v8037_v24 = vld [vmem:[#allocation117_spill] sm:$0xff] }
 0x26f   :  { %v3799_v23 = vadd.f32 %v6107_v4, %v3767_v20  ;;  %v3862_v1 = vadd.f32 %v8037_v24, %v3830_v46  ;;  %v3861_v4 = vadd.f32 %v7952_v11, %v3829_v22  ;;  %v8042_v11 = vld [vmem:[#allocation125_spill] sm:$0xff] }
 0x270   :  { %2860 = vmatmul.mubr.bf16.gmra.mrb[92].mxu0 %v6994_v56  ;;  %v3891_v42 = vadd.f32 %v8039_v5, %v3859_v17 }
 0x271   :  { %2973 = vmatmul.mubr.bf16.gmra.mrb[92].mxu1 %v6994_v56  ;;  %3015 = vmatprep.mubr.bf16.mxu0 %v7702_v63 }
 0x272   :  { %3128 = vmatprep.mubr.bf16.mxu1 %v7702_v63 }
 0x278   :  { %3016 = vmatmul.mubr.bf16.vlgmr.msra.gmra.mrb[96].mxu0 %v7993_v26 }
 0x279   :  { %3129 = vmatmul.mubr.bf16.vlgmr.msra.gmra.mrb[96].mxu1 %v7993_v26  ;;  %3025 = vmatprep.mubr.bf16.mxu0 %v7702_v63  ;;  %v8017_v26 = vld [vmem:[#allocation63_spill] sm:$0xff] }
 0x27a   :  { %4178 = vmatpush3.bf16.msra.mxu1 %v3914_v28  ;;  %3138 = vmatprep.mubr.bf16.mxu1 %v7702_v63  ;;  %v3736_v28 = vadd.f32 %v8017_v26, %v3704_v57  ;;  %v3831_v26 = vadd.f32 %v6124_v36, %v3799_v23 }
 0x27b   :  { %4179 = vmatprep.subr.bf16.mxu1 %v8005_v44 }
 0x27c   :  { %v3768_v57 = vadd.f32 %v8027_v18, %v3736_v28  ;;  %v3919_v28 = vpack.c.bf16 %v3892_v12, %v3891_v42 }
 0x27e   :  { %4180 = vmatpush3.bf16.msra.mxu1 %v3915_v53  ;;  %v8028_v53 = vld [vmem:[#allocation103_spill] sm:$0xff]  ;;  %v3800_v58 = vadd.f32 %v7953_v10, %v3768_v57 }
 0x27f   :  { %4181 = vmatprep.subr.bf16.mxu1 %v8005_v44  ;;  %v3890_v7 = vadd.f32 %v8028_v53, %v3858_v51  ;;  %v3893_v51 = vadd.f32 %v8041_v41, %v3861_v4 }
 0x280   :  { %3026 = vmatmul.mubr.bf16.gmra.mrb[100].mxu0 %v8020_v50  ;;  %v3832_v10 = vadd.f32 %v8038_v55, %v3800_v58 }
 0x281   :  { %3139 = vmatmul.mubr.bf16.gmra.mrb[100].mxu1 %v8020_v50  ;;  %3035 = vmatprep.mubr.bf16.mxu0 %v7702_v63  ;;  %v3918_v59 = vpack.c.bf16 %v3890_v7, %v3889_v8  ;;  %v3863_v50 = vadd.f32 %v6117_v39, %v3831_v26  ;;  %v7136_v39 = vpop.permute.xlu0 %3355 }
 0x282   :  { %4182 = vmatpush3.bf16.msra.mxu1 %v3916_v54  ;;  %3148 = vmatprep.mubr.bf16.mxu1 %v7702_v63  ;;  %v8040_v54 = vld [vmem:[#allocation120_spill] sm:$0xff]  ;;  %v3864_v38 = vadd.f32 %v7854_v40, %v3832_v10 }
 0x283   :  { %4183 = vmatprep.subr.bf16.mxu1 %v8005_v44  ;;  %v3894_v2 = vadd.f32 %v8040_v54, %v3862_v1  ;;  %v3895_v36 = vadd.f32 %v7851_v62, %v3863_v50  ;;  %v7138_v62 = vpop.permute.xlu1 %3360 }
 0x284   :  { %v3896_v25 = vadd.f32 %v8042_v11, %v3864_v38 }
 0x285   :  { %v3920_v47 = vpack.c.bf16 %v3894_v2, %v3893_v51  ;;  %v7147_v32 = vpop.permute.xlu0 %3365 }
 0x286   :  { %4184 = vmatpush3.bf16.msra.mxu1 %v3917_v27  ;;  %v3921_v40 = vpack.c.bf16 %v3896_v25, %v3895_v36 }
 0x287   :  { %4185 = vmatprep.subr.bf16.mxu1 %v8005_v44  ;;  %v7149_v61 = vpop.permute.xlu1 %3370 }
 0x288   :  { %3036 = vmatmul.mubr.bf16.gmra.mrb[104].mxu0 %v8035_v30 }
 0x289   :  { %3149 = vmatmul.mubr.bf16.gmra.mrb[104].mxu1 %v8035_v30  ;;  %3045 = vmatprep.mubr.bf16.mxu0 %v7702_v63  ;;  %v7159_v22 = vpop.permute.xlu0 %3375 }
 0x28a   :  { %4186 = vmatpush3.bf16.msra.mxu1 %v3918_v59  ;;  %3158 = vmatprep.mubr.bf16.mxu1 %v7702_v63 }
 0x28b   :  { %4187 = vmatprep.subr.bf16.mxu1 %v8005_v44  ;;  %v7161_v30 = vpop.permute.xlu1 %3380 }
 0x28e   :  { %4188 = vmatpush3.bf16.msra.mxu1 %v3919_v28 }
 0x28f   :  { %4189 = vmatprep.subr.bf16.mxu1 %v8005_v44 }
 0x290   :  { %3046 = vmatmul.mubr.bf16.gmra.mrb[108].mxu0 %v6905_v14 }
 0x291   :  { %3159 = vmatmul.mubr.bf16.gmra.mrb[108].mxu1 %v6905_v14  ;;  %3055 = vmatprep.mubr.bf16.mxu0 %v7702_v63 }
 0x292   :  { %4190 = vmatpush3.bf16.msra.mxu1 %v3920_v47  ;;  %3168 = vmatprep.mubr.bf16.mxu1 %v7702_v63 }
 0x293   :  { %4191 = vmatprep.subr.bf16.mxu1 %v8005_v44 }
 0x296   :  { %4192 = vmatpush3.bf16.msra.mxu1 %v3921_v40 }
 0x298   :  { %3056 = vmatmul.mubr.bf16.gmra.mrb[112].mxu0 %v6936_v21 }
 0x299   :  { %3169 = vmatmul.mubr.bf16.gmra.mrb[112].mxu1 %v6936_v21  ;;  %3065 = vmatprep.mubr.bf16.mxu0 %v7702_v63 }
 0x29a   :  { %3178 = vmatprep.mubr.bf16.mxu1 %v7702_v63 }
 0x2a0   :  { %3066 = vmatmul.mubr.bf16.gmra.mrb[116].mxu0 %v6947_v19 }
 0x2a1   :  { %3179 = vmatmul.mubr.bf16.gmra.mrb[116].mxu1 %v6947_v19  ;;  %3075 = vmatprep.mubr.bf16.mxu0 %v7702_v63 }
 0x2a2   :  { %3188 = vmatprep.mubr.bf16.mxu1 %v7702_v63 }
 0x2a8   :  { %3076 = vmatmul.mubr.bf16.gmra.mrb[120].mxu0 %v6965_v52 }
 0x2a9   :  { %3189 = vmatmul.mubr.bf16.gmra.mrb[120].mxu1 %v6965_v52  ;;  %3085 = vmatprep.mubr.bf16.mxu0 %v7702_v63 }
 0x2aa   :  { %3198 = vmatprep.mubr.bf16.mxu1 %v7702_v63 }
 0x2b0   :  { %3086 = vmatmul.mubr.bf16.gmra.mrb[124].mxu0 %v6994_v56 }
 0x2b1   :  { %3199 = vmatmul.mubr.bf16.gmra.mrb[124].mxu1 %v6994_v56  ;;  %4173 = vmatprep.mubr.msk.bf16.mxu0 %vm5039_vm3, %v8005_v44 }
 0x2b2   :  { %4193 = vmatprep.mubr.msk.bf16.mxu1 %vm5039_vm3, %v8005_v44 }
 0x30b   :  { %v2791_v14 = vpop.f32.mrb[64].mxu0 }
 0x30c   :  { %v3433_v21 = vadd.f32 %v7136_v39, %v2791_v14  ;;  %v2904_v19 = vpop.f32.mrb[64].mxu1  ;;  %v2793_v15 = vpop.f32.mrb[65].mxu0 }
 0x30d   :  { %v3435_v6 = vadd.f32 %v7136_v39, %v2904_v19  ;;  %v3434_v52 = vadd.f32 %v7136_v39, %v2793_v15  ;;  %v2906_v48 = vpop.f32.mrb[65].mxu1  ;;  %v2795_v60 = vpop.f32.mrb[66].mxu0 }
 0x30e   :  { %4748 = vtanh.f32 %v3433_v21  ;;  %v3441_v63 = vadd.f32 %v7138_v62, %v2795_v60  ;;  %v2908_v35 = vpop.f32.mrb[66].mxu1  ;;  %v2797_v56 = vpop.f32.mrb[67].mxu0  ;;  %v3436_v16 = vadd.f32 %v7136_v39, %v2906_v48  ;;  %v3913_v48 = vld [vmem:[%s7381_s7] sm:$0x1] }
 0x30f   :  { %v2910_v49 = vpop.f32.mrb[67].mxu1  ;;  %4750 = vtanh.f32 %v3434_v52  ;;  %v3442_v43 = vadd.f32 %v7138_v62, %v2797_v56  ;;  %v3443_v9 = vadd.f32 %v7138_v62, %v2908_v35  ;;  %v7175_v52 = vpop.permute.xlu0 %3385  ;;  %4194 = vmatmul.mubr.bf16.vlgmr.msra.gmra.mrb[128].mxu1 %v3913_v48 }
 0x310   :  { %4752 = vtanh.f32 %v3435_v6  ;;  %v3444_v0 = vadd.f32 %v7138_v62, %v2910_v49 }
 0x311   :  { %4754 = vtanh.f32 %v3441_v63  ;;  %v7180_v63 = vpop.permute.xlu1 %3390 }
 0x312   :  { %4756 = vtanh.f32 %v3436_v16 }
 0x313   :  { %v2801_v18 = vpop.f32.mrb[68].mxu0  ;;  %4758 = vtanh.f32 %v3442_v43 }
 0x314   :  { %v3449_v57 = vadd.f32 %v7147_v32, %v2801_v18  ;;  %v2914_v27 = vpop.f32.mrb[68].mxu1  ;;  %v2803_v53 = vpop.f32.mrb[69].mxu0  ;;  %4760 = vtanh.f32 %v3443_v9 }
 0x315   :  { %v3451_v7 = vadd.f32 %v7147_v32, %v2914_v27  ;;  %v3450_v3 = vadd.f32 %v7147_v32, %v2803_v53  ;;  %v2916_v34 = vpop.f32.mrb[69].mxu1  ;;  %v2805_v37 = vpop.f32.mrb[70].mxu0 }
 0x316   :  { %4762 = vtanh.f32 %v3449_v57  ;;  %v3457_v46 = vadd.f32 %v7149_v61, %v2805_v37  ;;  %v2918_v29 = vpop.f32.mrb[70].mxu1  ;;  %v2807_v20 = vpop.f32.mrb[71].mxu0  ;;  %v3452_v58 = vadd.f32 %v7147_v32, %v2916_v34 }
 0x317   :  { %4764 = vtanh.f32 %v3444_v0  ;;  %v2920_v13 = vpop.f32.mrb[71].mxu1  ;;  %v3458_v31 = vadd.f32 %v7149_v61, %v2807_v20  ;;  %v3459_v17 = vadd.f32 %v7149_v61, %v2918_v29 }
 0x318   :  { %v4749_v8 = vpop.eup %4748  ;;  %4766 = vtanh.f32 %v3450_v3  ;;  %v3460_v33 = vadd.f32 %v7149_v61, %v2920_v13 }
 0x319   :  { %4768 = vtanh.f32 %v3451_v7  ;;  %v4751_v45 = vpop.eup %4750 }
 0x31a   :  { %4770 = vtanh.f32 %v3457_v46  ;;  %v4753_v23 = vpop.eup %4752  ;;  %v3705_v59 = vadd.f32 %v4751_v45, %v4749_v8 }
 0x31b   :  { %4772 = vtanh.f32 %v3452_v58  ;;  %v2811_v12 = vpop.f32.mrb[72].mxu0  ;;  %v4755_v24 = vpop.eup %4754 }
 0x31c   :  { %4774 = vtanh.f32 %v3458_v31  ;;  %v3465_v1 = vadd.f32 %v7159_v22, %v2811_v12  ;;  %v2924_v55 = vpop.f32.mrb[72].mxu1  ;;  %v2813_v10 = vpop.f32.mrb[73].mxu0  ;;  %v3737_v42 = vadd.f32 %v4753_v23, %v3705_v59 }
 0x31d   :  { %v4757_v5 = vpop.eup %4756  ;;  %4776 = vtanh.f32 %v3459_v17  ;;  %v3467_v4 = vadd.f32 %v7159_v22, %v2924_v55  ;;  %v3466_v26 = vadd.f32 %v7159_v22, %v2813_v10  ;;  %v2926_v28 = vpop.f32.mrb[73].mxu1 }
 0x31e   :  { %v2815_v54 = vpop.f32.mrb[74].mxu0  ;;  %v4759_v2 = vpop.eup %4758  ;;  %4778 = vtanh.f32 %v3465_v1  ;;  %v7168_v47 = vadd.f32 %v4757_v5, %v3737_v42  ;;  %v3468_v25 = vadd.f32 %v7159_v22, %v2926_v28 }
 0x31f   :  { %v3473_v38 = vadd.f32 %v7161_v30, %v2815_v54  ;;  %v2928_v41 = vpop.f32.mrb[74].mxu1  ;;  %v2817_v51 = vpop.f32.mrb[75].mxu0  ;;  %v3706_v11 = vadd.f32 %v4759_v2, %v4755_v24  ;;  %4780 = vtanh.f32 %v3460_v33 }
 0x320   :  { %v4761_v50 = vpop.eup %4760  ;;  %v2930_v36 = vpop.f32.mrb[75].mxu1  ;;  %4782 = vtanh.f32 %v3466_v26  ;;  %v3474_v14 = vadd.f32 %v7161_v30, %v2817_v51  ;;  %v3475_v15 = vadd.f32 %v7161_v30, %v2928_v41 }
 0x321   :  { %v4763_v40 = vpop.eup %4762  ;;  %v3738_v19 = vadd.f32 %v4761_v50, %v3706_v11  ;;  %4784 = vtanh.f32 %v3467_v4  ;;  %v3476_v16 = vadd.f32 %v7161_v30, %v2930_v36  ;;  %v7194_v1 = vpop.permute.xlu0 %3395 }
 0x322   :  { %v4765_v21 = vpop.eup %4764  ;;  %4786 = vtanh.f32 %v3473_v38  ;;  %v7196_v10 = vpop.permute.xlu1 %3400 }
 0x323   :  { %v4767_v6 = vpop.eup %4766  ;;  %v7182_v35 = vadd.f32 %v4765_v21, %v3738_v19  ;;  %4788 = vtanh.f32 %v3468_v25  ;;  %v2821_v49 = vpop.f32.mrb[76].mxu0 }
 0x324   :  { %v4769_v60 = vpop.eup %4768  ;;  %v3707_v56 = vadd.f32 %v4767_v6, %v4763_v40  ;;  %4790 = vtanh.f32 %v3474_v14  ;;  %v3481_v9 = vadd.f32 %v7175_v52, %v2821_v49  ;;  %v2934_v0 = vpop.f32.mrb[76].mxu1 }
 0x325   :  { %v4771_v43 = vpop.eup %4770  ;;  %v2823_v18 = vpop.f32.mrb[77].mxu0  ;;  %4792 = vtanh.f32 %v3475_v15  ;;  %v3483_v53 = vadd.f32 %v7175_v52, %v2934_v0 }
 0x326   :  { %v4773_v57 = vpop.eup %4772  ;;  %v3739_v27 = vadd.f32 %v4769_v60, %v3707_v56  ;;  %v3482_v7 = vadd.f32 %v7175_v52, %v2823_v18  ;;  %v2936_v3 = vpop.f32.mrb[77].mxu1  ;;  %4794 = vtanh.f32 %v3481_v9 }
 0x327   :  { %v2825_v34 = vpop.f32.mrb[78].mxu0  ;;  %v4775_v37 = vpop.eup %4774  ;;  %4796 = vtanh.f32 %v3476_v16  ;;  %v3484_v31 = vadd.f32 %v7175_v52, %v2936_v3 }
 0x328   :  { %v3489_v46 = vadd.f32 %v7180_v63, %v2825_v34  ;;  %v2938_v29 = vpop.f32.mrb[78].mxu1  ;;  %v2827_v20 = vpop.f32.mrb[79].mxu0  ;;  %v7189_v13 = vadd.f32 %v4773_v57, %v3739_v27  ;;  %v3708_v8 = vadd.f32 %v4775_v37, %v4771_v43  ;;  %4798 = vtanh.f32 %v3482_v7 }
 0x329   :  { %v4777_v58 = vpop.eup %4776  ;;  %v2940_v17 = vpop.f32.mrb[79].mxu1  ;;  %v3490_v23 = vadd.f32 %v7180_v63, %v2827_v20  ;;  %4800 = vtanh.f32 %v3483_v53  ;;  %v3491_v12 = vadd.f32 %v7180_v63, %v2938_v29 }
 0x32a   :  { %v4779_v45 = vpop.eup %4778  ;;  %v3740_v33 = vadd.f32 %v4777_v58, %v3708_v8  ;;  %4802 = vtanh.f32 %v3489_v46  ;;  %v3492_v4 = vadd.f32 %v7180_v63, %v2940_v17  ;;  %v7210_v57 = vpop.permute.xlu0 %3405 }
 0x32b   :  { %v4781_v59 = vpop.eup %4780  ;;  %4804 = vtanh.f32 %v3484_v31  ;;  %v2831_v26 = vpop.f32.mrb[80].mxu0 }
 0x32c   :  { %v4783_v24 = vpop.eup %4782  ;;  %v7198_v5 = vadd.f32 %v4781_v59, %v3740_v33  ;;  %4806 = vtanh.f32 %v3490_v23  ;;  %v3497_v54 = vadd.f32 %v7194_v1, %v2831_v26  ;;  %v2944_v2 = vpop.f32.mrb[80].mxu1 }
 0x32d   :  { %v4785_v55 = vpop.eup %4784  ;;  %v3709_v42 = vadd.f32 %v4783_v24, %v4779_v45  ;;  %v2833_v38 = vpop.f32.mrb[81].mxu0  ;;  %4808 = vtanh.f32 %v3491_v12  ;;  %v3499_v50 = vadd.f32 %v7194_v1, %v2944_v2 }
 0x32e   :  { %v4787_v28 = vpop.eup %4786  ;;  %v3498_v11 = vadd.f32 %v7194_v1, %v2833_v38  ;;  %v2946_v25 = vpop.f32.mrb[81].mxu1  ;;  %4810 = vtanh.f32 %v3497_v54 }
 0x32f   :  { %v4789_v41 = vpop.eup %4788  ;;  %v3741_v51 = vadd.f32 %v4785_v55, %v3709_v42  ;;  %v2835_v36 = vpop.f32.mrb[82].mxu0  ;;  %4812 = vtanh.f32 %v3492_v4  ;;  %v3500_v60 = vadd.f32 %v7194_v1, %v2946_v25 }
 0x330   :  { %v4791_v40 = vpop.eup %4790  ;;  %v3505_v14 = vadd.f32 %v7196_v10, %v2835_v36  ;;  %v2948_v21 = vpop.f32.mrb[82].mxu1  ;;  %4814 = vtanh.f32 %v3498_v11 }
 0x331   :  { %v2837_v19 = vpop.f32.mrb[83].mxu0  ;;  %v4793_v15 = vpop.eup %4792  ;;  %v7205_v6 = vadd.f32 %v4789_v41, %v3741_v51  ;;  %v3710_v48 = vadd.f32 %v4791_v40, %v4787_v28  ;;  %4816 = vtanh.f32 %v3499_v50  ;;  %v3507_v0 = vadd.f32 %v7196_v10, %v2948_v21 }
 0x332   :  { %v2950_v56 = vpop.f32.mrb[83].mxu1  ;;  %v4795_v16 = vpop.eup %4794  ;;  %v3506_v49 = vadd.f32 %v7196_v10, %v2837_v19  ;;  %4818 = vtanh.f32 %v3505_v14 }
 0x333   :  { %v4797_v43 = vpop.eup %4796  ;;  %v3742_v9 = vadd.f32 %v4793_v15, %v3710_v48  ;;  %v7212_v53 = vpop.permute.xlu1 %3410  ;;  %4820 = vtanh.f32 %v3500_v60  ;;  %v3508_v34 = vadd.f32 %v7196_v10, %v2950_v56 }
 0x334   :  { %v4799_v18 = vpop.eup %4798  ;;  %v2841_v37 = vpop.f32.mrb[84].mxu0  ;;  %4822 = vtanh.f32 %v3506_v49 }
 0x335   :  { %v4801_v27 = vpop.eup %4800  ;;  %v7214_v7 = vadd.f32 %v4797_v43, %v3742_v9  ;;  %v3711_v3 = vadd.f32 %v4799_v18, %v4795_v16  ;;  %v3513_v29 = vadd.f32 %v7210_v57, %v2841_v37  ;;  %v2954_v20 = vpop.f32.mrb[84].mxu1  ;;  %4824 = vtanh.f32 %v3507_v0 }
 0x336   :  { %v4803_v46 = vpop.eup %4802  ;;  %v2843_v58 = vpop.f32.mrb[85].mxu0  ;;  %v3515_v17 = vadd.f32 %v7210_v57, %v2954_v20 }
 0x337   :  { %v4805_v8 = vpop.eup %4804  ;;  %v3743_v31 = vadd.f32 %v4801_v27, %v3711_v3  ;;  %v3514_v45 = vadd.f32 %v7210_v57, %v2843_v58  ;;  %v2956_v23 = vpop.f32.mrb[85].mxu1  ;;  %4826 = vtanh.f32 %v3513_v29 }
 0x338   :  { %v2845_v59 = vpop.f32.mrb[86].mxu0  ;;  %v4807_v33 = vpop.eup %4806  ;;  %4828 = vtanh.f32 %v3508_v34  ;;  %v3516_v28 = vadd.f32 %v7210_v57, %v2956_v23 }
 0x339   :  { %v3521_v12 = vadd.f32 %v7212_v53, %v2845_v59  ;;  %v2958_v24 = vpop.f32.mrb[86].mxu1  ;;  %v2847_v55 = vpop.f32.mrb[87].mxu0  ;;  %v7221_v4 = vadd.f32 %v4805_v8, %v3743_v31  ;;  %v3712_v26 = vadd.f32 %v4807_v33, %v4803_v46  ;;  %4830 = vtanh.f32 %v3514_v45 }
 0x33a   :  { %v4809_v42 = vpop.eup %4808  ;;  %v2960_v54 = vpop.f32.mrb[87].mxu1  ;;  %v3522_v38 = vadd.f32 %v7212_v53, %v2847_v55  ;;  %4832 = vtanh.f32 %v3515_v17  ;;  %v3523_v50 = vadd.f32 %v7212_v53, %v2958_v24 }
 0x33b   :  { %v4811_v2 = vpop.eup %4810  ;;  %v3744_v51 = vadd.f32 %v4809_v42, %v3712_v26  ;;  %v7226_v25 = vpop.permute.xlu0 %3415  ;;  %4834 = vtanh.f32 %v3521_v12  ;;  %v3524_v19 = vadd.f32 %v7212_v53, %v2960_v54 }
 0x33c   :  { %v4813_v41 = vpop.eup %4812  ;;  %v7228_v40 = vpop.permute.xlu1 %3420  ;;  %4836 = vtanh.f32 %v3516_v28 }
 0x33d   :  { %v4815_v11 = vpop.eup %4814  ;;  %v7230_v14 = vadd.f32 %v4813_v41, %v3744_v51  ;;  %v2851_v15 = vpop.f32.mrb[88].mxu0  ;;  %4838 = vtanh.f32 %v3522_v38 }
 0x33e   :  { %v4817_v36 = vpop.eup %4816  ;;  %v3713_v21 = vadd.f32 %v4815_v11, %v4811_v2  ;;  %v3529_v60 = vadd.f32 %v7226_v25, %v2851_v15  ;;  %v2964_v56 = vpop.f32.mrb[88].mxu1  ;;  %4840 = vtanh.f32 %v3523_v50 }
 0x33f   :  { %v4819_v48 = vpop.eup %4818  ;;  %v2853_v16 = vpop.f32.mrb[89].mxu0  ;;  %v3531_v9 = vadd.f32 %v7226_v25, %v2964_v56 }
 0x340   :  { %v4821_v49 = vpop.eup %4820  ;;  %v3745_v43 = vadd.f32 %v4817_v36, %v3713_v21  ;;  %v3530_v0 = vadd.f32 %v7226_v25, %v2853_v16  ;;  %v2966_v18 = vpop.f32.mrb[89].mxu1  ;;  %4842 = vtanh.f32 %v3529_v60 }
 0x341   :  { %v2855_v27 = vpop.f32.mrb[90].mxu0  ;;  %v4823_v3 = vpop.eup %4822  ;;  %4844 = vtanh.f32 %v3524_v19  ;;  %v3532_v8 = vadd.f32 %v7226_v25, %v2966_v18 }
 0x342   :  { %v3537_v34 = vadd.f32 %v7228_v40, %v2855_v27  ;;  %v2968_v37 = vpop.f32.mrb[90].mxu1  ;;  %v2857_v46 = vpop.f32.mrb[91].mxu0  ;;  %v7237_v20 = vadd.f32 %v4821_v49, %v3745_v43  ;;  %v3714_v58 = vadd.f32 %v4823_v3, %v4819_v48  ;;  %4846 = vtanh.f32 %v3530_v0 }
 0x343   :  { %v4825_v29 = vpop.eup %4824  ;;  %v2970_v31 = vpop.f32.mrb[91].mxu1  ;;  %v3538_v45 = vadd.f32 %v7228_v40, %v2857_v46  ;;  %4848 = vtanh.f32 %v3531_v9  ;;  %v3539_v33 = vadd.f32 %v7228_v40, %v2968_v37 }
 0x344   :  { %v4827_v17 = vpop.eup %4826  ;;  %v3746_v59 = vadd.f32 %v4825_v29, %v3714_v58  ;;  %v7242_v24 = vpop.permute.xlu0 %3425  ;;  %4850 = vtanh.f32 %v3537_v34  ;;  %v3540_v54 = vadd.f32 %v7228_v40, %v2970_v31 }
 0x345   :  { %v4829_v23 = vpop.eup %4828  ;;  %v7244_v42 = vpop.permute.xlu1 %3430  ;;  %4852 = vtanh.f32 %v3532_v8 }
 0x346   :  { %v4831_v12 = vpop.eup %4830  ;;  %v7246_v26 = vadd.f32 %v4829_v23, %v3746_v59  ;;  %v2861_v2 = vpop.f32.mrb[92].mxu0  ;;  %4854 = vtanh.f32 %v3538_v45 }
 0x347   :  { %v4833_v55 = vpop.eup %4832  ;;  %v3715_v28 = vadd.f32 %v4831_v12, %v4827_v17  ;;  %v3545_v41 = vadd.f32 %v7242_v24, %v2861_v2  ;;  %v2974_v51 = vpop.f32.mrb[92].mxu1  ;;  %4856 = vtanh.f32 %v3539_v33 }
 0x348   :  { %v4835_v38 = vpop.eup %4834  ;;  %v2863_v50 = vpop.f32.mrb[93].mxu0  ;;  %v3547_v21 = vadd.f32 %v7242_v24, %v2974_v51 }
 0x349   :  { %v4837_v11 = vpop.eup %4836  ;;  %v3747_v36 = vadd.f32 %v4833_v55, %v3715_v28  ;;  %v3546_v19 = vadd.f32 %v7242_v24, %v2863_v50  ;;  %v2976_v15 = vpop.f32.mrb[93].mxu1  ;;  %4858 = vtanh.f32 %v3545_v41 }
 0x34a   :  { %v2865_v48 = vpop.f32.mrb[94].mxu0  ;;  %v4839_v60 = vpop.eup %4838  ;;  %4860 = vtanh.f32 %v3540_v54  ;;  %v3548_v18 = vadd.f32 %v7242_v24, %v2976_v15 }
 0x34b   :  { %v3553_v56 = vadd.f32 %v7244_v42, %v2865_v48  ;;  %v2978_v16 = vpop.f32.mrb[94].mxu1  ;;  %v2867_v49 = vpop.f32.mrb[95].mxu0  ;;  %v7253_v9 = vadd.f32 %v4837_v11, %v3747_v36  ;;  %v3716_v0 = vadd.f32 %v4839_v60, %v4835_v38  ;;  %4862 = vtanh.f32 %v3546_v19 }
 0x34c   :  { %v4841_v43 = vpop.eup %4840  ;;  %v2980_v27 = vpop.f32.mrb[95].mxu1  ;;  %v3554_v34 = vadd.f32 %v7244_v42, %v2867_v49  ;;  %4864 = vtanh.f32 %v3547_v21  ;;  %v3555_v29 = vadd.f32 %v7244_v42, %v2978_v16 }
 0x34d   :  { %v4843_v3 = vpop.eup %4842  ;;  %v3748_v46 = vadd.f32 %v4841_v43, %v3716_v0  ;;  %4866 = vtanh.f32 %v3553_v56  ;;  %v3556_v45 = vadd.f32 %v7244_v42, %v2980_v27  ;;  %v3017_v23 = vpop.f32.mrb[96].mxu0 }
 0x34e   :  { %v4845_v37 = vpop.eup %4844  ;;  %4868 = vtanh.f32 %v3548_v18  ;;  %v3437_v33 = vadd.f32 %v7136_v39, %v3017_v23  ;;  %v3130_v12 = vpop.f32.mrb[96].mxu1 }
 0x34f   :  { %v4847_v58 = vpop.eup %4846  ;;  %v7258_v31 = vadd.f32 %v4845_v37, %v3748_v46  ;;  %4870 = vtanh.f32 %v3554_v34  ;;  %v3019_v55 = vpop.f32.mrb[97].mxu0  ;;  %v3439_v2 = vadd.f32 %v7136_v39, %v3130_v12 }
 0x350   :  { %v4849_v8 = vpop.eup %4848  ;;  %v3717_v17 = vadd.f32 %v4847_v58, %v4843_v3  ;;  %4872 = vtanh.f32 %v3555_v29  ;;  %v3438_v38 = vadd.f32 %v7136_v39, %v3019_v55  ;;  %v3132_v41 = vpop.f32.mrb[97].mxu1 }
 0x351   :  { %v4851_v59 = vpop.eup %4850  ;;  %v3021_v51 = vpop.f32.mrb[98].mxu0  ;;  %4874 = vtanh.f32 %v3437_v33  ;;  %v3440_v60 = vadd.f32 %v7136_v39, %v3132_v41 }
 0x352   :  { %v4853_v28 = vpop.eup %4852  ;;  %v3749_v54 = vadd.f32 %v4849_v8, %v3717_v17  ;;  %v3445_v11 = vadd.f32 %v7138_v62, %v3021_v51  ;;  %v3134_v36 = vpop.f32.mrb[98].mxu1  ;;  %4876 = vtanh.f32 %v3556_v45 }
 0x353   :  { %v4855_v50 = vpop.eup %4854  ;;  %v3023_v21 = vpop.f32.mrb[99].mxu0  ;;  %4878 = vtanh.f32 %v3438_v38  ;;  %v3447_v18 = vadd.f32 %v7138_v62, %v3134_v36 }
 0x354   :  { %v4857_v19 = vpop.eup %4856  ;;  %v7265_v15 = vadd.f32 %v4853_v28, %v3749_v54  ;;  %v3718_v48 = vadd.f32 %v4855_v50, %v4851_v59  ;;  %v3136_v56 = vpop.f32.mrb[99].mxu1  ;;  %v3446_v49 = vadd.f32 %v7138_v62, %v3023_v21  ;;  %4880 = vtanh.f32 %v3439_v2 }
 0x355   :  { %v4859_v16 = vpop.eup %4858  ;;  %4882 = vtanh.f32 %v3445_v11  ;;  %v3448_v46 = vadd.f32 %v7138_v62, %v3136_v56  ;;  %v3027_v39 = vpop.f32.mrb[100].mxu0 }
 0x356   :  { %v4861_v43 = vpop.eup %4860  ;;  %v3750_v0 = vadd.f32 %v4857_v19, %v3718_v48  ;;  %4884 = vtanh.f32 %v3440_v60  ;;  %v3453_v58 = vadd.f32 %v7147_v32, %v3027_v39  ;;  %v3140_v8 = vpop.f32.mrb[100].mxu1 }
 0x357   :  { %v4863_v27 = vpop.eup %4862  ;;  %4886 = vtanh.f32 %v3446_v49  ;;  %v3029_v17 = vpop.f32.mrb[101].mxu0  ;;  %v3455_v59 = vadd.f32 %v7147_v32, %v3140_v8 }
 0x358   :  { %v4865_v3 = vpop.eup %4864  ;;  %v7270_v34 = vadd.f32 %v4861_v43, %v3750_v0  ;;  %v3719_v37 = vadd.f32 %v4863_v27, %v4859_v16  ;;  %4888 = vtanh.f32 %v3447_v18  ;;  %v3454_v33 = vadd.f32 %v7147_v32, %v3029_v17  ;;  %v3142_v12 = vpop.f32.mrb[101].mxu1 }
 0x359   :  { %v4867_v29 = vpop.eup %4866  ;;  %v3031_v55 = vpop.f32.mrb[102].mxu0  ;;  %4890 = vtanh.f32 %v3453_v58  ;;  %v3456_v50 = vadd.f32 %v7147_v32, %v3142_v12 }
 0x35a   :  { %v4869_v45 = vpop.eup %4868  ;;  %v3751_v23 = vadd.f32 %v4865_v3, %v3719_v37  ;;  %v3461_v62 = vadd.f32 %v7149_v61, %v3031_v55  ;;  %v3144_v54 = vpop.f32.mrb[102].mxu1  ;;  %4892 = vtanh.f32 %v3448_v46 }
 0x35b   :  { %v4871_v28 = vpop.eup %4870  ;;  %v3033_v2 = vpop.f32.mrb[103].mxu0  ;;  %4894 = vtanh.f32 %v3454_v33  ;;  %v3463_v56 = vadd.f32 %v7149_v61, %v3144_v54 }
 0x35c   :  { %v4873_v38 = vpop.eup %4872  ;;  %v7277_v41 = vadd.f32 %v4869_v45, %v3751_v23  ;;  %v3720_v51 = vadd.f32 %v4871_v28, %v4867_v29  ;;  %v3146_v11 = vpop.f32.mrb[103].mxu1  ;;  %v3462_v21 = vadd.f32 %v7149_v61, %v3033_v2  ;;  %4896 = vtanh.f32 %v3455_v59 }
 0x35d   :  { %v4875_v36 = vpop.eup %4874  ;;  %4898 = vtanh.f32 %v3461_v62  ;;  %v3464_v32 = vadd.f32 %v7149_v61, %v3146_v11  ;;  %v3037_v18 = vpop.f32.mrb[104].mxu0 }
 0x35e   :  { %v4877_v19 = vpop.eup %4876  ;;  %v3752_v48 = vadd.f32 %v4873_v38, %v3720_v51  ;;  %v3801_v60 = vadd.f32 %v4875_v36, %v7168_v47  ;;  %4900 = vtanh.f32 %v3456_v50  ;;  %v3469_v3 = vadd.f32 %v7159_v22, %v3037_v18  ;;  %v3150_v37 = vpop.f32.mrb[104].mxu1 }
 0x35f   :  { %v4879_v16 = vpop.eup %4878  ;;  %4902 = vtanh.f32 %v3462_v21  ;;  %v3039_v46 = vpop.f32.mrb[105].mxu0  ;;  %v3471_v29 = vadd.f32 %v7159_v22, %v3150_v37 }
 0x360   :  { %v4881_v49 = vpop.eup %4880  ;;  %v7283_v43 = vadd.f32 %v4877_v19, %v3752_v48  ;;  %v3833_v0 = vadd.f32 %v4879_v16, %v3801_v60  ;;  %4904 = vtanh.f32 %v3463_v56  ;;  %v3470_v58 = vadd.f32 %v7159_v22, %v3039_v46  ;;  %v3152_v8 = vpop.f32.mrb[105].mxu1 }
 0x361   :  { %v4883_v27 = vpop.eup %4882  ;;  %v3041_v17 = vpop.f32.mrb[106].mxu0  ;;  %4906 = vtanh.f32 %v3469_v3  ;;  %v3472_v28 = vadd.f32 %v7159_v22, %v3152_v8 }
 0x362   :  { %v4885_v47 = vpop.eup %4884  ;;  %v3802_v39 = vadd.f32 %v4883_v27, %v7182_v35  ;;  %v3477_v61 = vadd.f32 %v7161_v30, %v3041_v17  ;;  %v3154_v23 = vpop.f32.mrb[106].mxu1  ;;  %v3865_v33 = vadd.f32 %v4881_v49, %v3833_v0  ;;  %4908 = vtanh.f32 %v3464_v32 }
 0x363   :  { %v4887_v45 = vpop.eup %4886  ;;  %v3043_v59 = vpop.f32.mrb[107].mxu0  ;;  %4910 = vtanh.f32 %v3470_v58  ;;  %v3479_v50 = vadd.f32 %v7161_v30, %v3154_v23 }
 0x364   :  { %v4889_v12 = vpop.eup %4888  ;;  %v3834_v55 = vadd.f32 %v4887_v45, %v3802_v39  ;;  %v3156_v35 = vpop.f32.mrb[107].mxu1  ;;  %v3478_v54 = vadd.f32 %v7161_v30, %v3043_v59  ;;  %v3897_v2 = vadd.f32 %v4885_v47, %v3865_v33  ;;  %4912 = vtanh.f32 %v3471_v29 }
 0x365   :  { %v4891_v62 = vpop.eup %4890  ;;  %4914 = vtanh.f32 %v3477_v61  ;;  %v3480_v22 = vadd.f32 %v7161_v30, %v3156_v35  ;;  %v3047_v48 = vpop.f32.mrb[108].mxu0 }
 0x366   :  { %v4893_v38 = vpop.eup %4892  ;;  %v3803_v51 = vadd.f32 %v4891_v62, %v7189_v13  ;;  %v3866_v11 = vadd.f32 %v4889_v12, %v3834_v55  ;;  %4916 = vtanh.f32 %v3472_v28  ;;  %v3485_v16 = vadd.f32 %v7175_v52, %v3047_v48  ;;  %v3160_v49 = vpop.f32.mrb[108].mxu1 }
 0x367   :  { %v4895_v36 = vpop.eup %4894  ;;  %4918 = vtanh.f32 %v3478_v54  ;;  %v3049_v0 = vpop.f32.mrb[109].mxu0  ;;  %v3487_v18 = vadd.f32 %v7175_v52, %v3160_v49 }
 0x368   :  { %v4897_v21 = vpop.eup %4896  ;;  %v3835_v19 = vadd.f32 %v4895_v36, %v3803_v51  ;;  %v3898_v60 = vadd.f32 %v4893_v38, %v3866_v11  ;;  %4920 = vtanh.f32 %v3479_v50  ;;  %v3486_v27 = vadd.f32 %v7175_v52, %v3049_v0  ;;  %v3162_v3 = vpop.f32.mrb[109].mxu1 }
 0x369   :  { %v4899_v56 = vpop.eup %4898  ;;  %v3051_v37 = vpop.f32.mrb[110].mxu0  ;;  %4922 = vtanh.f32 %v3485_v16  ;;  %v3488_v17 = vadd.f32 %v7175_v52, %v3162_v3 }
 0x36a   :  { %v4901_v13 = vpop.eup %4900  ;;  %v3804_v32 = vadd.f32 %v4899_v56, %v7198_v5  ;;  %v3493_v30 = vadd.f32 %v7180_v63, %v3051_v37  ;;  %v3164_v47 = vpop.f32.mrb[110].mxu1  ;;  %v3923_v39 = vpack.c.bf16 %v3898_v60, %v3897_v2  ;;  %4924 = vtanh.f32 %v3480_v22 }
 0x36b   :  { %v4903_v46 = vpop.eup %4902  ;;  %v3053_v29 = vpop.f32.mrb[111].mxu0  ;;  %4926 = vtanh.f32 %v3486_v27  ;;  %v3867_v23 = vadd.f32 %v4897_v21, %v3835_v19  ;;  %v3495_v12 = vadd.f32 %v7180_v63, %v3164_v47 }
 0x36c   :  { %v4905_v58 = vpop.eup %4904  ;;  %v3836_v8 = vadd.f32 %v4903_v46, %v3804_v32  ;;  %v3166_v5 = vpop.f32.mrb[111].mxu1  ;;  %4158 = vmatpush3.bf16.msra.mxu0 %v3923_v39  ;;  %v3494_v61 = vadd.f32 %v7180_v63, %v3053_v29  ;;  %4928 = vtanh.f32 %v3487_v18 }
 0x36d   :  { %v4907_v45 = vpop.eup %4906  ;;  %4159 = vmatprep.subr.bf16.mxu0 %v8005_v44  ;;  %4930 = vtanh.f32 %v3493_v30  ;;  %v3899_v35 = vadd.f32 %v4901_v13, %v3867_v23  ;;  %v3496_v54 = vadd.f32 %v7180_v63, %v3166_v5  ;;  %v3057_v2 = vpop.f32.mrb[112].mxu0 }
 0x36e   :  { %v4909_v59 = vpop.eup %4908  ;;  %v3805_v33 = vadd.f32 %v4907_v45, %v7205_v6  ;;  %v3868_v55 = vadd.f32 %v4905_v58, %v3836_v8  ;;  %4932 = vtanh.f32 %v3488_v17  ;;  %v3501_v6 = vadd.f32 %v7194_v1, %v3057_v2  ;;  %v3170_v50 = vpop.f32.mrb[112].mxu1 }
 0x36f   :  { %v4911_v28 = vpop.eup %4910  ;;  %4934 = vtanh.f32 %v3494_v61  ;;  %v3059_v11 = vpop.f32.mrb[113].mxu0  ;;  %v3503_v19 = vadd.f32 %v7194_v1, %v3170_v50 }
 0x370   :  { %v4913_v52 = vpop.eup %4912  ;;  %v3837_v62 = vadd.f32 %v4911_v28, %v3805_v33  ;;  %v3900_v38 = vadd.f32 %v4909_v59, %v3868_v55  ;;  %4936 = vtanh.f32 %v3495_v12  ;;  %v3502_v22 = vadd.f32 %v7194_v1, %v3059_v11  ;;  %v3172_v48 = vpop.f32.mrb[113].mxu1 }
 0x371   :  { %v4915_v51 = vpop.eup %4914  ;;  %v3061_v60 = vpop.f32.mrb[114].mxu0  ;;  %4938 = vtanh.f32 %v3501_v6  ;;  %v3504_v18 = vadd.f32 %v7194_v1, %v3172_v48 }
 0x372   :  { %v4917_v36 = vpop.eup %4916  ;;  %v3806_v21 = vadd.f32 %v4915_v51, %v7214_v7  ;;  %v3509_v63 = vadd.f32 %v7196_v10, %v3061_v60  ;;  %v3174_v16 = vpop.f32.mrb[114].mxu1  ;;  %v3924_v49 = vpack.c.bf16 %v3900_v38, %v3899_v35  ;;  %4940 = vtanh.f32 %v3496_v54 }
 0x373   :  { %v4919_v56 = vpop.eup %4918  ;;  %v3063_v0 = vpop.f32.mrb[115].mxu0  ;;  %4942 = vtanh.f32 %v3502_v22  ;;  %v3869_v37 = vadd.f32 %v4913_v52, %v3837_v62  ;;  %v3511_v47 = vadd.f32 %v7196_v10, %v3174_v16 }
 0x374   :  { %v4921_v13 = vpop.eup %4920  ;;  %v3838_v32 = vadd.f32 %v4919_v56, %v3806_v21  ;;  %v3176_v7 = vpop.f32.mrb[115].mxu1  ;;  %4160 = vmatpush3.bf16.msra.mxu0 %v3924_v49  ;;  %v3510_v3 = vadd.f32 %v7196_v10, %v3063_v0  ;;  %4944 = vtanh.f32 %v3503_v19 }
 0x375   :  { %v4923_v27 = vpop.eup %4922  ;;  %4161 = vmatprep.subr.bf16.mxu0 %v8005_v44  ;;  %4946 = vtanh.f32 %v3509_v63  ;;  %v3901_v58 = vadd.f32 %v4917_v36, %v3869_v37  ;;  %v3512_v17 = vadd.f32 %v7196_v10, %v3176_v7  ;;  %v3067_v5 = vpop.f32.mrb[116].mxu0 }
 0x376   :  { %v4925_v46 = vpop.eup %4924  ;;  %v3807_v30 = vadd.f32 %v4923_v27, %v7221_v4  ;;  %v3870_v39 = vadd.f32 %v4921_v13, %v3838_v32  ;;  %4948 = vtanh.f32 %v3504_v18  ;;  %v3517_v4 = vadd.f32 %v7210_v57, %v3067_v5  ;;  %v3180_v23 = vpop.f32.mrb[116].mxu1 }
 0x377   :  { %v4927_v29 = vpop.eup %4926  ;;  %4950 = vtanh.f32 %v3510_v3  ;;  %v3069_v59 = vpop.f32.mrb[117].mxu0  ;;  %v3519_v55 = vadd.f32 %v7210_v57, %v3180_v23 }
 0x378   :  { %v4929_v1 = vpop.eup %4928  ;;  %v3839_v8 = vadd.f32 %v4927_v29, %v3807_v30  ;;  %v3902_v45 = vadd.f32 %v4925_v46, %v3870_v39  ;;  %4952 = vtanh.f32 %v3511_v47  ;;  %v3518_v28 = vadd.f32 %v7210_v57, %v3069_v59  ;;  %v3182_v35 = vpop.f32.mrb[117].mxu1 }
 0x379   :  { %v4931_v61 = vpop.eup %4930  ;;  %v3071_v52 = vpop.f32.mrb[118].mxu0  ;;  %4954 = vtanh.f32 %v3517_v4  ;;  %v3520_v50 = vadd.f32 %v7210_v57, %v3182_v35 }
 0x37a   :  { %v4933_v33 = vpop.eup %4932  ;;  %v3808_v12 = vadd.f32 %v4931_v61, %v7230_v14  ;;  %v3525_v10 = vadd.f32 %v7212_v53, %v3071_v52  ;;  %v3184_v54 = vpop.f32.mrb[118].mxu1  ;;  %v3925_v2 = vpack.c.bf16 %v3902_v45, %v3901_v58  ;;  %4956 = vtanh.f32 %v3512_v17 }
 0x37b   :  { %v4935_v62 = vpop.eup %4934  ;;  %v3073_v38 = vpop.f32.mrb[119].mxu0  ;;  %4958 = vtanh.f32 %v3518_v28  ;;  %v3871_v21 = vadd.f32 %v4929_v1, %v3839_v8  ;;  %v3527_v48 = vadd.f32 %v7212_v53, %v3184_v54 }
 0x37c   :  { %v4937_v51 = vpop.eup %4936  ;;  %v3840_v6 = vadd.f32 %v4935_v62, %v3808_v12  ;;  %v3186_v14 = vpop.f32.mrb[119].mxu1  ;;  %4162 = vmatpush3.bf16.msra.mxu0 %v3925_v2  ;;  %v3526_v36 = vadd.f32 %v7212_v53, %v3073_v38  ;;  %4960 = vtanh.f32 %v3519_v55 }
 0x37d   :  { %v4939_v11 = vpop.eup %4938  ;;  %4163 = vmatprep.subr.bf16.mxu0 %v8005_v44  ;;  %4962 = vtanh.f32 %v3525_v10  ;;  %v3903_v63 = vadd.f32 %v4933_v33, %v3871_v21  ;;  %v3528_v49 = vadd.f32 %v7212_v53, %v3186_v14  ;;  %v3077_v0 = vpop.f32.mrb[120].mxu0 }
 0x37e   :  { %v4941_v19 = vpop.eup %4940  ;;  %v3809_v22 = vadd.f32 %v4939_v11, %v7237_v20  ;;  %v3872_v60 = vadd.f32 %v4937_v51, %v3840_v6  ;;  %4964 = vtanh.f32 %v3520_v50  ;;  %v3533_v20 = vadd.f32 %v7226_v25, %v3077_v0  ;;  %v3190_v18 = vpop.f32.mrb[120].mxu1 }
 0x37f   :  { %v4943_v56 = vpop.eup %4942  ;;  %4966 = vtanh.f32 %v3526_v36  ;;  %v3079_v7 = vpop.f32.mrb[121].mxu0  ;;  %v3535_v37 = vadd.f32 %v7226_v25, %v3190_v18 }
 0x380   :  { %v4945_v57 = vpop.eup %4944  ;;  %v3841_v16 = vadd.f32 %v4943_v56, %v3809_v22  ;;  %v3904_v13 = vadd.f32 %v4941_v19, %v3872_v60  ;;  %4968 = vtanh.f32 %v3527_v48  ;;  %v3534_v46 = vadd.f32 %v7226_v25, %v3079_v7  ;;  %v3192_v30 = vpop.f32.mrb[121].mxu1 }
 0x381   :  { %v4947_v32 = vpop.eup %4946  ;;  %v3081_v47 = vpop.f32.mrb[122].mxu0  ;;  %4970 = vtanh.f32 %v3533_v20  ;;  %v3536_v5 = vadd.f32 %v7226_v25, %v3192_v30 }
 0x382   :  { %v4949_v27 = vpop.eup %4948  ;;  %v3810_v3 = vadd.f32 %v4947_v32, %v7246_v26  ;;  %v3541_v53 = vadd.f32 %v7228_v40, %v3081_v47  ;;  %v3194_v29 = vpop.f32.mrb[122].mxu1  ;;  %v3926_v58 = vpack.c.bf16 %v3904_v13, %v3903_v63  ;;  %4972 = vtanh.f32 %v3528_v49 }
 0x383   :  { %v4951_v39 = vpop.eup %4950  ;;  %v3083_v1 = vpop.f32.mrb[123].mxu0  ;;  %4974 = vtanh.f32 %v3534_v46  ;;  %v3873_v4 = vadd.f32 %v4945_v57, %v3841_v16  ;;  %v3543_v33 = vadd.f32 %v7228_v40, %v3194_v29 }
 0x384   :  { %v4953_v8 = vpop.eup %4952  ;;  %v3842_v17 = vadd.f32 %v4951_v39, %v3810_v3  ;;  %v3196_v26 = vpop.f32.mrb[123].mxu1  ;;  %4164 = vmatpush3.bf16.msra.mxu0 %v3926_v58  ;;  %v3542_v61 = vadd.f32 %v7228_v40, %v3083_v1  ;;  %4976 = vtanh.f32 %v3535_v37 }
 0x385   :  { %v4955_v45 = vpop.eup %4954  ;;  %4165 = vmatprep.subr.bf16.mxu0 %v8005_v44  ;;  %4978 = vtanh.f32 %v3541_v53  ;;  %v3905_v28 = vadd.f32 %v4949_v27, %v3873_v4  ;;  %v3544_v52 = vadd.f32 %v7228_v40, %v3196_v26  ;;  %v3087_v62 = vpop.f32.mrb[124].mxu0 }
 0x386   :  { %v4957_v23 = vpop.eup %4956  ;;  %v3811_v59 = vadd.f32 %v4955_v45, %v7253_v9  ;;  %v3874_v12 = vadd.f32 %v4953_v8, %v3842_v17  ;;  %4980 = vtanh.f32 %v3536_v5  ;;  %v3549_v9 = vadd.f32 %v7242_v24, %v3087_v62  ;;  %v3200_v2 = vpop.f32.mrb[124].mxu1 }
 0x387   :  { %v4959_v55 = vpop.eup %4958  ;;  %4982 = vtanh.f32 %v3542_v61  ;;  %v3089_v38 = vpop.f32.mrb[125].mxu0  ;;  %v3551_v50 = vadd.f32 %v7242_v24, %v3200_v2 }
 0x388   :  { %v4961_v25 = vpop.eup %4960  ;;  %v3843_v35 = vadd.f32 %v4959_v55, %v3811_v59  ;;  %v3906_v10 = vadd.f32 %v4957_v23, %v3874_v12  ;;  %4984 = vtanh.f32 %v3543_v33  ;;  %v3550_v14 = vadd.f32 %v7242_v24, %v3089_v38  ;;  %v3202_v11 = vpop.f32.mrb[125].mxu1 }
 0x389   :  { %v4963_v54 = vpop.eup %4962  ;;  %v3091_v36 = vpop.f32.mrb[126].mxu0  ;;  %4986 = vtanh.f32 %v3549_v9  ;;  %v3552_v63 = vadd.f32 %v7242_v24, %v3202_v11 }
 0x38a   :  { %v4965_v51 = vpop.eup %4964  ;;  %v3812_v6 = vadd.f32 %v4963_v54, %v7258_v31  ;;  %v3557_v40 = vadd.f32 %v7244_v42, %v3091_v36  ;;  %v3204_v19 = vpop.f32.mrb[126].mxu1  ;;  %v3927_v22 = vpack.c.bf16 %v3906_v10, %v3905_v28  ;;  %4988 = vtanh.f32 %v3544_v52  ;;  %v3922_v54 = vld [vmem:[%s7382_s8] sm:$0x1]  ;;  %s5040_s8 = smov [#allocation2]  }
 0x38b   :  { %v4967_v21 = vpop.eup %4966  ;;  %v3093_v48 = vpop.f32.mrb[127].mxu0  ;;  %4990 = vtanh.f32 %v3550_v14  ;;  %v3875_v49 = vadd.f32 %v4961_v25, %v3843_v35  ;;  %v3559_v18 = vadd.f32 %v7244_v42, %v3204_v19  ;;  %s4026_s28 = sshll.u32 %s5040_s8, 4  ;;  %s4027_s28 = int_to_ptr.vmem [resolvable:$true] %s4026_s28 }
 0x38c   :  { %v4969_v60 = vpop.eup %4968  ;;  %v3844_v56 = vadd.f32 %v4967_v21, %v3812_v6  ;;  %v3206_v31 = vpop.f32.mrb[127].mxu1  ;;  %4166 = vmatpush3.bf16.msra.mxu0 %v3927_v22  ;;  %v3558_v16 = vadd.f32 %v7244_v42, %v3093_v48  ;;  %4992 = vtanh.f32 %v3551_v50  ;;  %v4011_v6 = vld [vmem:[%s7376_s2] sm:$0x1]  ;;  %s5012_s29 = scalar_lea.vmem %s4027_s28, 16  ;;  %s5016_s30 = scalar_lea.vmem %s4027_s28, 32 }
 0x38d   :  { %v4971_v57 = vpop.eup %4970  ;;  %4167 = vmatprep.subr.bf16.mxu0 %v8005_v44  ;;  %4994 = vtanh.f32 %v3557_v40  ;;  %v3907_v7 = vadd.f32 %v4965_v51, %v3875_v49  ;;  %v3560_v46 = vadd.f32 %v7244_v42, %v3206_v31  ;;  %p5013_p0 = scmp.ne.s32.totalorder %s4027_s28, %s5012_s29  ;;  %p5017_p1 = scmp.lt.s32.totalorder %s4027_s28, %s4027_s28 }
 0x38e   :  { %v4973_v0 = vpop.eup %4972  ;;  %v3813_v13 = vadd.f32 %v4971_v57, %v7265_v15  ;;  %v3876_v32 = vadd.f32 %v4969_v60, %v3844_v56  ;;  %4996 = vtanh.f32 %v3552_v63  ;;  %p5018_p2 = scmp.lt.s32.totalorder %s5016_s30, %s5012_s29 }
 0x38f   :  { %v4975_v20 = vpop.eup %4974  ;;  %4998 = vtanh.f32 %v3558_v16 }
 0x390   :  { %v4977_v24 = vpop.eup %4976  ;;  %v3845_v27 = vadd.f32 %v4975_v20, %v3813_v13  ;;  %v3908_v3 = vadd.f32 %v4973_v0, %v3876_v32  ;;  %5000 = vtanh.f32 %v3559_v18  ;;  %p5019_p3 = por %p5018_p2, %p5017_p1 }
 0x391   :  { %v4979_v37 = vpop.eup %4978  ;;  %5002 = vtanh.f32 %v3560_v46 }
 0x392   :  { %v4981_v30 = vpop.eup %4980  ;;  %v3814_v15 = vadd.f32 %v4979_v37, %v7270_v34  ;;  %v3928_v47 = vpack.c.bf16 %v3908_v3, %v3907_v7  ;;  %v3877_v39 = vadd.f32 %v4977_v24, %v3845_v27  ;;  %p5020_p4 = pnand %p5019_p3, %p5013_p0 }
 0x393   :  { %v4983_v53 = vpop.eup %4982 }
 0x394   :  { %v4985_v29 = vpop.eup %4984  ;;  %v3846_v58 = vadd.f32 %v4983_v53, %v3814_v15  ;;  %4168 = vmatpush3.bf16.msra.mxu0 %v3928_v47  ;;  %v3909_v1 = vadd.f32 %v4981_v30, %v3877_v39 }
 0x395   :  { %v4987_v8 = vpop.eup %4986  ;;  %4169 = vmatprep.subr.bf16.mxu0 %v8005_v44 }
 0x396   :  { %v4989_v17 = vpop.eup %4988  ;;  %v3815_v5 = vadd.f32 %v4987_v8, %v7277_v41  ;;  %v3878_v26 = vadd.f32 %v4985_v29, %v3846_v58 }
 0x397   :  { %v4991_v42 = vpop.eup %4990 }
 0x398   :  { %v4993_v45 = vpop.eup %4992  ;;  %v3847_v61 = vadd.f32 %v4991_v42, %v3815_v5  ;;  %v3910_v34 = vadd.f32 %v4989_v17, %v3878_v26 }
 0x399   :  { %v4995_v4 = vpop.eup %4994 }
 0x39a   :  { %v4997_v23 = vpop.eup %4996  ;;  %v3816_v59 = vadd.f32 %v4995_v4, %v7283_v43  ;;  %v3929_v33 = vpack.c.bf16 %v3910_v34, %v3909_v1  ;;  %v3879_v12 = vadd.f32 %v4993_v45, %v3847_v61 }
 0x39b   :  { %v4999_v55 = vpop.eup %4998 }
 0x39c   :  { %v3848_v28 = vadd.f32 %v4999_v55, %v3816_v59  ;;  %4170 = vmatpush3.bf16.msra.mxu0 %v3929_v33  ;;  %v3911_v25 = vadd.f32 %v4997_v23, %v3879_v12  ;;  %v5001_v35 = vpop.eup %5000 }
 0x39d   :  { %4171 = vmatprep.subr.bf16.mxu0 %v8005_v44  ;;  %v5003_v41 = vpop.eup %5002 }
 0x39e   :  { %v3880_v52 = vadd.f32 %v5001_v35, %v3848_v28 }
 0x3a0   :  { %v3912_v62 = vadd.f32 %v5003_v41, %v3880_v52 }
 0x3a2   :  { %v3930_v10 = vpack.c.bf16 %v3912_v62, %v3911_v25 }
 0x3a4   :  { %4172 = vmatpush3.bf16.msra.mxu0 %v3930_v10 }
 0x3a7   :  { %4174 = vmatmul.mubr.bf16.vlgmr.msra.gmra.mrb[128].mxu0 %v3922_v54 }
 0x3e2   :  { %v4005_v43 = vpop.f32.mrb[128].mxu1 }
 0x3e3   :  { %v4195_v9 = vpop.f32.mrb[129].mxu1 }
 0x3e4   :  { %v4008_v2 = vpop.f32.mrb[130].mxu1 }
 0x3e5   :  { %v4196_v38 = vpop.f32.mrb[131].mxu1 }
 0x47a   :  { %v3965_v51 = vpop.f32.mrb[128].mxu0 }
 0x47b   :  { %v4006_v44 = vadd.f32 %v4005_v43, %v3965_v51  ;;  %v4175_v50 = vpop.f32.mrb[129].mxu0 }
 0x47c   :  { %v3968_v14 = vpop.f32.mrb[130].mxu0 }
 0x47d   :  { %v4012_v11 = vadd.f32 %v4011_v6, %v4006_v44  ;;  %v4176_v36 = vpop.f32.mrb[131].mxu0 }
 0x47f   :  { %v4138_v21 = vmul.f32 -1.442695, %v4012_v11 }
 0x481   :  { %5004 = vpow2.f32 %v4138_v21 }
 0x48b   :  { %v5005_v40 = vpop.eup %5004 }
 0x48c   :  { %v4016_v19 = vadd.f32 1.0, %v5005_v40 }
 0x48e   :  { %5006 = vrcp.f32 %v4016_v19 }
 0x498   :  { %v5007_v22 = vpop.eup %5006 }
 0x499   :  { %4019 = vst [vmem:[#allocation2] sm:$0x1] %v5007_v22 }
 0x49a   :  { %5023 = shalt.err (!%p5020_p4)
}
 0x49b   :  { %s5024_s10 = scalar_lea.hbm %s7383_s9, 16 }
 0x49c   :  { %p5025_p5 = scmp.ne.s32.totalorder %s7383_s9, %s5024_s10  ;;  %p5028_p6 = scmp.lt.u32.totalorder %s5024_s10, %s7383_s9 }
 0x49e   :  { %p5030_p7 = pnand %p5028_p6, %p5025_p5 }
 0x4a0   :  { %5033 = shalt.err (!%p5030_p7)
}
 0x4a1   :  { %4029 = dma.vmem_to_hbm [thread:$0]  %s4027_s28, 16, %s7383_s9, [#allocation3]  }
 0x4a2   :  { %5034 = dma.done.wait [#allocation3], 16  }
 0x4a3   :  { %5035 = vsyncadd [#allocation3], 4294967280 }
 0x4a4   :  { %4033 = vsyncpa [#allocation3], 1 }

</bundles_post_ra>
